<compile_context>
chip_gen: v7x
topology: tpu7x:2x2x1
jax: 0.10.0
libtpu: 0.0.40
codegen_flags: <defaults>
</compile_context>

<pallas_src>
import math
import functools

import jax
import jax.numpy as jnp
from jax import lax
from jax.experimental import pallas as pl
from jax.experimental.pallas import tpu as pltpu


def _fast_recip(x):
    """EUP approximate reciprocal + one Newton-Raphson step (cheap, ~f32 accurate)."""
    r = pl.reciprocal(x, approx=True)
    return r * (2.0 - x * r)


def encoder_layer_kernel(x_ref, mask_ref,
                         wqkv_ref, bqkv_ref, wo_ref, bo_ref,
                         a1_ref, g1_ref, a2_ref, g2_ref,
                         w1_ref, b1_ref, w2_ref, b2_ref,
                         o_ref, concat_ref,
                         *, batch_tile, heads, d_k, eps, ff_chunk, mx_dtype):
    M, D = x_ref.shape                       # M = batch_tile * S rows folded for the MXU
    S = M // batch_tile

    x = x_ref[...].astype(jnp.float32)       # residual stream kept in f32

    def norm(v, alpha, bias):
        # PyTorch Norm: alpha * (x - mean) / (std + eps) + bias, std unbiased (N-1).
        mean = jnp.mean(v, axis=-1, keepdims=True)
        c = v - mean
        var = jnp.sum(c * c, axis=-1, keepdims=True) * (1.0 / (D - 1))
        inv = _fast_recip(jnp.sqrt(var) + eps)           # EUP, not VALU divide
        return alpha * (c * inv) + bias

    # ---- sublayer 1: pre-norm multi-head self-attention + residual ----
    x2 = norm(x, a1_ref[...], g1_ref[...])

    # Fused QKV projection: one wide (D, 3D) matmul instead of three narrow (D, D) passes.
    qkv = jnp.dot(x2.astype(mx_dtype), wqkv_ref[...].astype(mx_dtype),
                  preferred_element_type=jnp.float32) + bqkv_ref[...]

    scale = jnp.float32(1.0 / math.sqrt(d_k))

    for b in range(batch_tile):
        r0 = b * S
        # Additive mask bias hoisted out of the head loop: one compare/select per batch
        # row, a single (1, S) add per head (no per-head re-broadcast of the select).
        mbias = jnp.where(mask_ref[b] == 0, jnp.float32(-1e9), jnp.float32(0.0))  # (1, S)
        for h in range(heads):
            c0 = h * d_k
            # Static slices of the fused QKV result; q pre-scaled by 1/sqrt(d_k)
            # (O(S*d_k) multiply instead of an O(S^2) divide on the scores).
            qh = qkv[r0:r0 + S, c0:c0 + d_k] * scale
            kh = qkv[r0:r0 + S, D + c0:D + c0 + d_k]
            vh = qkv[r0:r0 + S, 2 * D + c0:2 * D + c0 + d_k]
            # scores = qh @ kh.T (contract last dims; MXU-native "nt").
            scores = lax.dot_general(qh.astype(mx_dtype), kh.astype(mx_dtype),
                                     (((1,), (1,)), ((), ())),
                                     preferred_element_type=jnp.float32)
            scores = scores + mbias
            m = jnp.max(scores, axis=-1, keepdims=True)
            e = jnp.exp(scores - m)
            p = e * _fast_recip(jnp.sum(e, axis=-1, keepdims=True))  # EUP reciprocal
            # Store the head output directly into the concat scratch at its static
            # offset (no list of live head outputs, no lane-axis concatenates).
            concat_ref[r0:r0 + S, c0:c0 + d_k] = jnp.dot(
                p.astype(mx_dtype), vh.astype(mx_dtype),
                preferred_element_type=jnp.float32)

    attn_out = jnp.dot(concat_ref[...].astype(mx_dtype), wo_ref[...].astype(mx_dtype),
                       preferred_element_type=jnp.float32) + bo_ref[...]
    x = x + attn_out

    # ---- sublayer 2: pre-norm feed-forward + residual (streamed over d_ff) ----
    x2 = norm(x, a2_ref[...], g2_ref[...])
    x2m = x2.astype(mx_dtype)
    d_ff = w1_ref.shape[1]
    ff = jnp.zeros((M, D), jnp.float32)
    for c0 in range(0, d_ff, ff_chunk):
        h1 = jnp.dot(x2m, w1_ref[:, c0:c0 + ff_chunk].astype(mx_dtype),
                     preferred_element_type=jnp.float32) + b1_ref[:, c0:c0 + ff_chunk]
        h1 = jnp.maximum(h1, 0.0)
        ff = ff + jnp.dot(h1.astype(mx_dtype), w2_ref[c0:c0 + ff_chunk, :].astype(mx_dtype),
                          preferred_element_type=jnp.float32)
    ff = ff + b2_ref[...]

    o_ref[...] = (x + ff).astype(o_ref.dtype)


def _pick_ff_chunk(d_ff):
    for c in (512, 1024, 256, 2048, 128, 4096):
        if c <= d_ff and d_ff % c == 0:
            return c
    return d_ff


def _pick_batch_tile(B, S, D, d_ff, heads, act_bytes, w_bytes, ff_chunk, vmem_budget):
    """Largest batch tile whose full VMEM footprint (double-buffered x/out tiles,
    single-buffered weights, f32 intermediates, per-head scores, FFN chunk) fits the
    budget, while keeping grid >= 2 and the per-(batch, head) unroll bounded."""
    weight_bytes = (4 * D * D + 2 * D * d_ff) * w_bytes \
                 + (3 * D + D + 4 * D + d_ff + D) * w_bytes
    max_bt = max(1, B // 2)          # grid >= 2 so both v7x TensorCores get work
    feasible = []
    for bt in range(1, max_bt + 1):
        if B % bt:
            continue
        if bt * heads > 64:          # bound the static per-(batch, head) unroll
            continue
        m = bt * S
        io = 2 * (2 * m * D * act_bytes) + 2 * bt * S * act_bytes  # 2x-buffered x/out + mask
        # f32 intermediates: x, x2, qkv(3D), attn_out, ff, concat scratch, h1 chunk, scores.
        interm = 4 * (m * D * 8 + m * 3 * D + m * ff_chunk + 2 * S * S)
        if weight_bytes + io + interm <= vmem_budget:
            feasible.append(bt)
    if not feasible:
        return 1
    aligned = [bt for bt in feasible if (bt * S) % 128 == 0]   # prefer MXU-aligned M
    return max(aligned) if aligned else max(feasible)


def encoder_layer(x, mask, params, *, heads):
    B, S, D = x.shape
    d_k = D // heads
    d_ff = params['w1'].shape[1]

    # Generation-aware VMEM plan (64 MiB on v7x, 128 MiB on v5e/v6e).
    try:
        vmem_cap = int(pltpu.get_tpu_info().vmem_capacity_bytes)
    except Exception:
        vmem_cap = 64 * 1024 * 1024
    vmem_limit = min(int(vmem_cap * 0.8), 112 * 1024 * 1024)

    ff_chunk = _pick_ff_chunk(d_ff)
    act_bytes = x.dtype.itemsize
    w_bytes = params['w1'].dtype.itemsize
    Bt = _pick_batch_tile(B, S, D, d_ff, heads, act_bytes, w_bytes, ff_chunk,
                          int(vmem_limit * 0.75))
    grid = (B // Bt,)

    # bf16 MXU operands when the activations are bf16 (stats stay f32 in-kernel).
    mx_dtype = jnp.bfloat16 if x.dtype == jnp.bfloat16 else jnp.float32

    # Fused QKV packing (in a real model this is done once at parameter load time).
    wqkv = jnp.concatenate([params['wq'], params['wk'], params['wv']], axis=1)  # (D, 3D)
    bqkv = jnp.concatenate([params['bq'], params['bk'], params['bv']], axis=1)  # (1, 3D)

    kernel = functools.partial(encoder_layer_kernel, batch_tile=Bt, heads=heads,
                               d_k=d_k, eps=1e-6, ff_chunk=ff_chunk, mx_dtype=mx_dtype)

    # Fold batch into the matmul M dimension; no in-kernel reshapes needed.
    x_flat = x.reshape(B * S, D)
    io_spec = pl.BlockSpec((Bt * S, D), lambda t: (t, 0))
    mask_spec = pl.BlockSpec((Bt, 1, S), lambda t: (t, 0, 0))

    args = (x_flat, mask, wqkv, bqkv, params['wo'], params['bo'],
            params['a1'], params['g1'], params['a2'], params['g2'],
            params['w1'], params['b1'], params['w2'], params['b2'])

    weight_bytes = sum(int(p.size) * p.dtype.itemsize for p in params.values())
    cost = pl.CostEstimate(
        flops=int(2 * B * S * D * (4 * D + 2 * d_ff) + 4 * B * heads * S * S * d_k),
        transcendentals=int(B * heads * S * S + 2 * B * S),
        bytes_accessed=int(2 * x.size * act_bytes + mask.size * mask.dtype.itemsize
                           + weight_bytes),
    )

    def run(single_buffer_weights):
        def wspec(shape):
            idx = lambda t: (0,) * len(shape)
            if single_buffer_weights:
                # Constant block index: double-buffering only doubles weight VMEM.
                return pl.BlockSpec(shape, idx, pipeline_mode=pl.Buffered(1))
            return pl.BlockSpec(shape, idx)

        in_specs = [
            io_spec,                                   # x (flattened batch*seq rows)
            mask_spec,                                 # mask (batch tile)
            wspec((D, 3 * D)), wspec((1, 3 * D)),      # fused wqkv, bqkv
            wspec((D, D)), wspec((1, D)),              # wo, bo
            wspec((1, D)), wspec((1, D)),              # norm1 alpha, bias
            wspec((1, D)), wspec((1, D)),              # norm2 alpha, bias
            wspec((D, d_ff)), wspec((1, d_ff)),        # w1, b1
            wspec((d_ff, D)), wspec((1, D)),           # w2, b2
        ]
        return pl.pallas_call(
            kernel,
            out_shape=jax.ShapeDtypeStruct((B * S, D), x.dtype),
            grid_spec=pltpu.PrefetchScalarGridSpec(
                num_scalar_prefetch=0,
                grid=grid,
                in_specs=in_specs,
                out_specs=io_spec,
                scratch_shapes=[pltpu.VMEM((Bt * S, D), jnp.float32)],  # head-concat buffer
            ),
            compiler_params=pltpu.CompilerParams(
                dimension_semantics=("parallel",),
                vmem_limit_bytes=vmem_limit,
            ),
            cost_estimate=cost,
        )(*args)

    try:
        out_flat = run(True)
    except Exception:
        # TODO(synk): drop this fallback once pl.Buffered(1) on constant weight blocks
        # is confirmed on the deployed jax version.
        out_flat = run(False)

    return out_flat.reshape(B, S, D)


def encoder_layer_ref(x, mask, params, *, heads):
    """Pure-JAX reference mirroring the PyTorch module (eval mode)."""
    B, S, D = x.shape
    d_k = D // heads
    eps = 1e-6

    def norm(v, alpha, bias):
        mean = jnp.mean(v, axis=-1, keepdims=True)
        c = v - mean
        var = jnp.sum(c * c, axis=-1, keepdims=True) / (D - 1)
        return alpha * c / (jnp.sqrt(var) + eps) + bias

    x2 = norm(x, params['a1'], params['g1'])
    q = x2 @ params['wq'] + params['bq']
    k = x2 @ params['wk'] + params['bk']
    v = x2 @ params['wv'] + params['bv']
    qh = q.reshape(B, S, heads, d_k).transpose(0, 2, 1, 3)
    kh = k.reshape(B, S, heads, d_k).transpose(0, 2, 1, 3)
    vh = v.reshape(B, S, heads, d_k).transpose(0, 2, 1, 3)
    scores = jnp.einsum('bhqd,bhkd->bhqk', qh, kh) / math.sqrt(d_k)
    scores = jnp.where((mask == 0)[:, None, :, :], -1e9, scores)
    p = jax.nn.softmax(scores, axis=-1)
    ctx = jnp.einsum('bhqk,bhkd->bhqd', p, vh)
    concat = ctx.transpose(0, 2, 1, 3).reshape(B, S, D)
    x = x + concat @ params['wo'] + params['bo']
    x2 = norm(x, params['a2'], params['g2'])
    h1 = jnp.maximum(x2 @ params['w1'] + params['b1'], 0.0)
    return x + h1 @ params['w2'] + params['b2']


if __name__ == "__main__":
    B, S, D, H = 2, 8, 32, 4
    d_ff = 2048  # FeedForward default

    key = jax.random.PRNGKey(0)
    keys = jax.random.split(key, 12)

    def w(k, shape, scale=0.1):
        return (scale * jax.random.normal(k, shape)).astype(jnp.float32)

    # Linear weights stored pre-transposed: y = x @ W + b
    params = {
        'wq': w(keys[0], (D, D)),   'bq': w(keys[1], (1, D)),
        'wk': w(keys[2], (D, D)),   'bk': w(keys[3], (1, D)),
        'wv': w(keys[4], (D, D)),   'bv': w(keys[5], (1, D)),
        'wo': w(keys[6], (D, D)),   'bo': w(keys[7], (1, D)),
        'a1': jnp.ones((1, D), jnp.float32), 'g1': jnp.zeros((1, D), jnp.float32),
        'a2': jnp.ones((1, D), jnp.float32), 'g2': jnp.zeros((1, D), jnp.float32),
        'w1': w(keys[8], (D, d_ff)), 'b1': w(keys[9], (1, d_ff)),
        'w2': w(keys[10], (d_ff, D)), 'b2': w(keys[11], (1, D)),
    }

    xk, mk = jax.random.split(jax.random.PRNGKey(42))
    x = jax.random.normal(xk, (B, S, D), dtype=jnp.float32)
    # mask: 1 = attend, 0 = masked; mask out the last two key positions of batch 1
    mask = jnp.ones((B, 1, S), dtype=jnp.float32)
    mask = mask.at[1, 0, -2:].set(0.0)

    out = encoder_layer(x, mask, params, heads=H)
    out = jax.block_until_ready(out)

    ref = encoder_layer_ref(x, mask, params, heads=H)
    assert out.shape == (B, S, D)
    # Tolerance slightly looser than exact-divide baseline: kernel uses EUP approximate
    # reciprocal (+ Newton refinement) for 1/std and the softmax denominator.
    assert jnp.allclose(out, ref, rtol=1e-3, atol=1e-3), "mismatch vs reference"

    print("KERNEL_OK")
</pallas_src>

<mosaic_0001>
module attributes {stable_mosaic.version = 11 : i64} {
  func.func @encoder_layer_kernel(%arg0: i32, %arg1: memref<8x32xf32, #tpu.memory_space<vmem>>, %arg2: memref<1x1x8xf32, #tpu.memory_space<vmem>>, %arg3: memref<32x96xf32, #tpu.memory_space<vmem>>, %arg4: memref<1x96xf32, #tpu.memory_space<vmem>>, %arg5: memref<32x32xf32, #tpu.memory_space<vmem>>, %arg6: memref<1x32xf32, #tpu.memory_space<vmem>>, %arg7: memref<1x32xf32, #tpu.memory_space<vmem>>, %arg8: memref<1x32xf32, #tpu.memory_space<vmem>>, %arg9: memref<1x32xf32, #tpu.memory_space<vmem>>, %arg10: memref<1x32xf32, #tpu.memory_space<vmem>>, %arg11: memref<32x2048xf32, #tpu.memory_space<vmem>>, %arg12: memref<1x2048xf32, #tpu.memory_space<vmem>>, %arg13: memref<2048x32xf32, #tpu.memory_space<vmem>>, %arg14: memref<1x32xf32, #tpu.memory_space<vmem>>, %arg15: memref<8x32xf32, #tpu.memory_space<vmem>>, %arg16: memref<8x32xf32, #tpu.memory_space<vmem>>) attributes {dimension_semantics = [#tpu.dimension_semantics<parallel>], iteration_bounds = array<i64: 2>, scalar_prefetch = 0 : i64, scratch_operands = 1 : i64, tpu.core_type = #tpu.core_type<tc>, window_params = [{transform_indices = @transform_0, window_bounds = array<i64: 8, 32>}, {transform_indices = @transform_1, window_bounds = array<i64: 1, 1, 8>}, {pipeline_mode = #tpu.pipeline_mode<synchronous>, transform_indices = @transform_2, window_bounds = array<i64: 32, 96>}, {pipeline_mode = #tpu.pipeline_mode<synchronous>, transform_indices = @transform_3, window_bounds = array<i64: 1, 96>}, {pipeline_mode = #tpu.pipeline_mode<synchronous>, transform_indices = @transform_4, window_bounds = array<i64: 32, 32>}, {pipeline_mode = #tpu.pipeline_mode<synchronous>, transform_indices = @transform_5, window_bounds = array<i64: 1, 32>}, {pipeline_mode = #tpu.pipeline_mode<synchronous>, transform_indices = @transform_6, window_bounds = array<i64: 1, 32>}, {pipeline_mode = #tpu.pipeline_mode<synchronous>, transform_indices = @transform_7, window_bounds = array<i64: 1, 32>}, {pipeline_mode = #tpu.pipeline_mode<synchronous>, transform_indices = @transform_8, window_bounds = array<i64: 1, 32>}, {pipeline_mode = #tpu.pipeline_mode<synchronous>, transform_indices = @transform_9, window_bounds = array<i64: 1, 32>}, {pipeline_mode = #tpu.pipeline_mode<synchronous>, transform_indices = @transform_10, window_bounds = array<i64: 32, 2048>}, {pipeline_mode = #tpu.pipeline_mode<synchronous>, transform_indices = @transform_11, window_bounds = array<i64: 1, 2048>}, {pipeline_mode = #tpu.pipeline_mode<synchronous>, transform_indices = @transform_12, window_bounds = array<i64: 2048, 32>}, {pipeline_mode = #tpu.pipeline_mode<synchronous>, transform_indices = @transform_13, window_bounds = array<i64: 1, 32>}, {transform_indices = @transform_14, window_bounds = array<i64: 8, 32>}]} {
    %c0 = arith.constant 0 : index
    %c0_0 = arith.constant 0 : index
    %0 = vector.load %arg1[%c0, %c0_0] : memref<8x32xf32, #tpu.memory_space<vmem>>, vector<8x32xf32>
    %c0_1 = arith.constant 0 : index
    %c0_2 = arith.constant 0 : index
    %1 = vector.load %arg7[%c0_1, %c0_2] : memref<1x32xf32, #tpu.memory_space<vmem>>, vector<1x32xf32>
    %c0_3 = arith.constant 0 : index
    %c0_4 = arith.constant 0 : index
    %2 = vector.load %arg8[%c0_3, %c0_4] : memref<1x32xf32, #tpu.memory_space<vmem>>, vector<1x32xf32>
    %cst = arith.constant dense<0.000000e+00> : vector<8xf32>
    %3 = vector.multi_reduction <add>, %0, %cst [1] : vector<8x32xf32> to vector<8xf32>
    %4 = vector.shape_cast %3 : vector<8xf32> to vector<8x1xf32>
    %cst_5 = arith.constant 3.200000e+01 : f32
    %5 = vector.broadcast %cst_5 : f32 to vector<8x1xf32>
    %6 = arith.divf %4, %5 : vector<8x1xf32>
    %7 = vector.broadcast %6 : vector<8x1xf32> to vector<8x32xf32>
    %8 = arith.subf %0, %7 : vector<8x32xf32>
    %9 = arith.mulf %8, %8 : vector<8x32xf32>
    %cst_6 = arith.constant dense<0.000000e+00> : vector<8xf32>
    %10 = vector.multi_reduction <add>, %9, %cst_6 [1] : vector<8x32xf32> to vector<8xf32>
    %11 = vector.shape_cast %10 : vector<8xf32> to vector<8x1xf32>
    %cst_7 = arith.constant 0.0322580636 : f32
    %12 = vector.broadcast %cst_7 : f32 to vector<8x1xf32>
    %13 = arith.mulf %11, %12 : vector<8x1xf32>
    %14 = math.sqrt %13 : vector<8x1xf32>
    %cst_8 = arith.constant 9.99999997E-7 : f32
    %15 = vector.broadcast %cst_8 : f32 to vector<8x1xf32>
    %16 = arith.addf %14, %15 : vector<8x1xf32>
    %17 = tpu.reciprocal %16 {approx = true} : vector<8x1xf32> -> vector<8x1xf32>
    %18 = arith.mulf %16, %17 : vector<8x1xf32>
    %cst_9 = arith.constant 2.000000e+00 : f32
    %19 = vector.broadcast %cst_9 : f32 to vector<8x1xf32>
    %20 = arith.subf %19, %18 : vector<8x1xf32>
    %21 = arith.mulf %17, %20 : vector<8x1xf32>
    %22 = vector.broadcast %21 : vector<8x1xf32> to vector<8x32xf32>
    %23 = arith.mulf %8, %22 : vector<8x32xf32>
    %24 = vector.broadcast %1 : vector<1x32xf32> to vector<8x32xf32>
    %25 = arith.mulf %24, %23 : vector<8x32xf32>
    %26 = vector.broadcast %2 : vector<1x32xf32> to vector<8x32xf32>
    %27 = arith.addf %25, %26 : vector<8x32xf32>
    %c0_10 = arith.constant 0 : index
    %c0_11 = arith.constant 0 : index
    %28 = vector.load %arg3[%c0_10, %c0_11] : memref<32x96xf32, #tpu.memory_space<vmem>>, vector<32x96xf32>
    %cst_12 = arith.constant dense<0.000000e+00> : vector<8x96xf32>
    %29 = tpu.matmul %27, %28, %cst_12 {dimension_numbers = #tpu.dot_dimension_numbers<[1], [0], [0], [1], [0, 0, 1, 1], [], []>} : vector<8x32xf32>, vector<32x96xf32>, vector<8x96xf32> -> vector<8x96xf32>
    %c0_13 = arith.constant 0 : index
    %c0_14 = arith.constant 0 : index
    %30 = vector.load %arg4[%c0_13, %c0_14] : memref<1x96xf32, #tpu.memory_space<vmem>>, vector<1x96xf32>
    %31 = vector.broadcast %30 : vector<1x96xf32> to vector<8x96xf32>
    %32 = arith.addf %29, %31 : vector<8x96xf32>
    %c0_15 = arith.constant 0 : index
    %c0_16 = arith.constant 0 : index
    %c0_17 = arith.constant 0 : index
    %33 = vector.load %arg2[%c0_15, %c0_16, %c0_17] : memref<1x1x8xf32, #tpu.memory_space<vmem>>, vector<1x1x8xf32>
    %34 = vector.shape_cast %33 : vector<1x1x8xf32> to vector<1x8xf32>
    %cst_18 = arith.constant 0.000000e+00 : f32
    %35 = vector.broadcast %cst_18 : f32 to vector<1x8xf32>
    %36 = arith.cmpf oeq, %34, %35 : vector<1x8xf32>
    %cst_19 = arith.constant -1.000000e+09 : f32
    %cst_20 = arith.constant 0.000000e+00 : f32
    %37 = vector.broadcast %cst_19 : f32 to vector<1x8xf32>
    %38 = vector.broadcast %cst_20 : f32 to vector<1x8xf32>
    %39 = arith.select %36, %37, %38 : vector<1x8xi1>, vector<1x8xf32>
    %40 = vector.extract_strided_slice %32 {offsets = [0, 0], sizes = [8, 8], strides = [1, 1]} : vector<8x96xf32> to vector<8x8xf32>
    %cst_21 = arith.constant 0.353553385 : f32
    %41 = vector.broadcast %cst_21 : f32 to vector<8x8xf32>
    %42 = arith.mulf %40, %41 : vector<8x8xf32>
    %43 = vector.extract_strided_slice %32 {offsets = [0, 32], sizes = [8, 8], strides = [1, 1]} : vector<8x96xf32> to vector<8x8xf32>
    %44 = vector.extract_strided_slice %32 {offsets = [0, 64], sizes = [8, 8], strides = [1, 1]} : vector<8x96xf32> to vector<8x8xf32>
    %cst_22 = arith.constant dense<0.000000e+00> : vector<8x8xf32>
    %45 = tpu.matmul %42, %43, %cst_22 {dimension_numbers = #tpu.dot_dimension_numbers<[1], [1], [0], [0], [0, 0, 1, 0], [], []>} : vector<8x8xf32>, vector<8x8xf32>, vector<8x8xf32> -> vector<8x8xf32>
    %46 = vector.broadcast %39 : vector<1x8xf32> to vector<8x8xf32>
    %47 = arith.addf %45, %46 : vector<8x8xf32>
    %cst_23 = arith.constant dense<0xFF800000> : vector<8xf32>
    %48 = vector.multi_reduction <maximumf>, %47, %cst_23 [1] : vector<8x8xf32> to vector<8xf32>
    %49 = vector.shape_cast %48 : vector<8xf32> to vector<8x1xf32>
    %50 = vector.broadcast %49 : vector<8x1xf32> to vector<8x8xf32>
    %51 = arith.subf %47, %50 : vector<8x8xf32>
    %52 = math.exp %51 : vector<8x8xf32>
    %cst_24 = arith.constant dense<0.000000e+00> : vector<8xf32>
    %53 = vector.multi_reduction <add>, %52, %cst_24 [1] : vector<8x8xf32> to vector<8xf32>
    %54 = vector.shape_cast %53 : vector<8xf32> to vector<8x1xf32>
    %55 = tpu.reciprocal %54 {approx = true} : vector<8x1xf32> -> vector<8x1xf32>
    %56 = arith.mulf %54, %55 : vector<8x1xf32>
    %cst_25 = arith.constant 2.000000e+00 : f32
    %57 = vector.broadcast %cst_25 : f32 to vector<8x1xf32>
    %58 = arith.subf %57, %56 : vector<8x1xf32>
    %59 = arith.mulf %55, %58 : vector<8x1xf32>
    %60 = vector.broadcast %59 : vector<8x1xf32> to vector<8x8xf32>
    %61 = arith.mulf %52, %60 : vector<8x8xf32>
    %cst_26 = arith.constant dense<0.000000e+00> : vector<8x8xf32>
    %62 = tpu.matmul %61, %44, %cst_26 {dimension_numbers = #tpu.dot_dimension_numbers<[1], [0], [0], [1], [0, 0, 1, 1], [], []>} : vector<8x8xf32>, vector<8x8xf32>, vector<8x8xf32> -> vector<8x8xf32>
    %c0_27 = arith.constant 0 : index
    %c0_28 = arith.constant 0 : index
    %63 = vector.load %arg16[%c0_27, %c0_28] : memref<8x32xf32, #tpu.memory_space<vmem>>, vector<8x8xf32>
    tpu.vector_store %arg16[%c0_27, %c0_28], %62 {strides = array<i32>} : memref<8x32xf32, #tpu.memory_space<vmem>>, vector<8x8xf32>,
    %64 = vector.extract_strided_slice %32 {offsets = [0, 8], sizes = [8, 8], strides = [1, 1]} : vector<8x96xf32> to vector<8x8xf32>
    %cst_29 = arith.constant 0.353553385 : f32
    %65 = vector.broadcast %cst_29 : f32 to vector<8x8xf32>
    %66 = arith.mulf %64, %65 : vector<8x8xf32>
    %67 = vector.extract_strided_slice %32 {offsets = [0, 40], sizes = [8, 8], strides = [1, 1]} : vector<8x96xf32> to vector<8x8xf32>
    %68 = vector.extract_strided_slice %32 {offsets = [0, 72], sizes = [8, 8], strides = [1, 1]} : vector<8x96xf32> to vector<8x8xf32>
    %cst_30 = arith.constant dense<0.000000e+00> : vector<8x8xf32>
    %69 = tpu.matmul %66, %67, %cst_30 {dimension_numbers = #tpu.dot_dimension_numbers<[1], [1], [0], [0], [0, 0, 1, 0], [], []>} : vector<8x8xf32>, vector<8x8xf32>, vector<8x8xf32> -> vector<8x8xf32>
    %70 = vector.broadcast %39 : vector<1x8xf32> to vector<8x8xf32>
    %71 = arith.addf %69, %70 : vector<8x8xf32>
    %cst_31 = arith.constant dense<0xFF800000> : vector<8xf32>
    %72 = vector.multi_reduction <maximumf>, %71, %cst_31 [1] : vector<8x8xf32> to vector<8xf32>
    %73 = vector.shape_cast %72 : vector<8xf32> to vector<8x1xf32>
    %74 = vector.broadcast %73 : vector<8x1xf32> to vector<8x8xf32>
    %75 = arith.subf %71, %74 : vector<8x8xf32>
    %76 = math.exp %75 : vector<8x8xf32>
    %cst_32 = arith.constant dense<0.000000e+00> : vector<8xf32>
    %77 = vector.multi_reduction <add>, %76, %cst_32 [1] : vector<8x8xf32> to vector<8xf32>
    %78 = vector.shape_cast %77 : vector<8xf32> to vector<8x1xf32>
    %79 = tpu.reciprocal %78 {approx = true} : vector<8x1xf32> -> vector<8x1xf32>
    %80 = arith.mulf %78, %79 : vector<8x1xf32>
    %cst_33 = arith.constant 2.000000e+00 : f32
    %81 = vector.broadcast %cst_33 : f32 to vector<8x1xf32>
    %82 = arith.subf %81, %80 : vector<8x1xf32>
    %83 = arith.mulf %79, %82 : vector<8x1xf32>
    %84 = vector.broadcast %83 : vector<8x1xf32> to vector<8x8xf32>
    %85 = arith.mulf %76, %84 : vector<8x8xf32>
    %cst_34 = arith.constant dense<0.000000e+00> : vector<8x8xf32>
    %86 = tpu.matmul %85, %68, %cst_34 {dimension_numbers = #tpu.dot_dimension_numbers<[1], [0], [0], [1], [0, 0, 1, 1], [], []>} : vector<8x8xf32>, vector<8x8xf32>, vector<8x8xf32> -> vector<8x8xf32>
    %c0_35 = arith.constant 0 : index
    %c8 = arith.constant 8 : index
    %87 = vector.load %arg16[%c0_35, %c8] : memref<8x32xf32, #tpu.memory_space<vmem>>, vector<8x8xf32>
    tpu.vector_store %arg16[%c0_35, %c8], %86 {strides = array<i32>} : memref<8x32xf32, #tpu.memory_space<vmem>>, vector<8x8xf32>,
    %88 = vector.extract_strided_slice %32 {offsets = [0, 16], sizes = [8, 8], strides = [1, 1]} : vector<8x96xf32> to vector<8x8xf32>
    %cst_36 = arith.constant 0.353553385 : f32
    %89 = vector.broadcast %cst_36 : f32 to vector<8x8xf32>
    %90 = arith.mulf %88, %89 : vector<8x8xf32>
    %91 = vector.extract_strided_slice %32 {offsets = [0, 48], sizes = [8, 8], strides = [1, 1]} : vector<8x96xf32> to vector<8x8xf32>
    %92 = vector.extract_strided_slice %32 {offsets = [0, 80], sizes = [8, 8], strides = [1, 1]} : vector<8x96xf32> to vector<8x8xf32>
    %cst_37 = arith.constant dense<0.000000e+00> : vector<8x8xf32>
    %93 = tpu.matmul %90, %91, %cst_37 {dimension_numbers = #tpu.dot_dimension_numbers<[1], [1], [0], [0], [0, 0, 1, 0], [], []>} : vector<8x8xf32>, vector<8x8xf32>, vector<8x8xf32> -> vector<8x8xf32>
    %94 = vector.broadcast %39 : vector<1x8xf32> to vector<8x8xf32>
    %95 = arith.addf %93, %94 : vector<8x8xf32>
    %cst_38 = arith.constant dense<0xFF800000> : vector<8xf32>
    %96 = vector.multi_reduction <maximumf>, %95, %cst_38 [1] : vector<8x8xf32> to vector<8xf32>
    %97 = vector.shape_cast %96 : vector<8xf32> to vector<8x1xf32>
    %98 = vector.broadcast %97 : vector<8x1xf32> to vector<8x8xf32>
    %99 = arith.subf %95, %98 : vector<8x8xf32>
    %100 = math.exp %99 : vector<8x8xf32>
    %cst_39 = arith.constant dense<0.000000e+00> : vector<8xf32>
    %101 = vector.multi_reduction <add>, %100, %cst_39 [1] : vector<8x8xf32> to vector<8xf32>
    %102 = vector.shape_cast %101 : vector<8xf32> to vector<8x1xf32>
    %103 = tpu.reciprocal %102 {approx = true} : vector<8x1xf32> -> vector<8x1xf32>
    %104 = arith.mulf %102, %103 : vector<8x1xf32>
    %cst_40 = arith.constant 2.000000e+00 : f32
    %105 = vector.broadcast %cst_40 : f32 to vector<8x1xf32>
    %106 = arith.subf %105, %104 : vector<8x1xf32>
    %107 = arith.mulf %103, %106 : vector<8x1xf32>
    %108 = vector.broadcast %107 : vector<8x1xf32> to vector<8x8xf32>
    %109 = arith.mulf %100, %108 : vector<8x8xf32>
    %cst_41 = arith.constant dense<0.000000e+00> : vector<8x8xf32>
    %110 = tpu.matmul %109, %92, %cst_41 {dimension_numbers = #tpu.dot_dimension_numbers<[1], [0], [0], [1], [0, 0, 1, 1], [], []>} : vector<8x8xf32>, vector<8x8xf32>, vector<8x8xf32> -> vector<8x8xf32>
    %c0_42 = arith.constant 0 : index
    %c16 = arith.constant 16 : index
    %111 = vector.load %arg16[%c0_42, %c16] : memref<8x32xf32, #tpu.memory_space<vmem>>, vector<8x8xf32>
    tpu.vector_store %arg16[%c0_42, %c16], %110 {strides = array<i32>} : memref<8x32xf32, #tpu.memory_space<vmem>>, vector<8x8xf32>,
    %112 = vector.extract_strided_slice %32 {offsets = [0, 24], sizes = [8, 8], strides = [1, 1]} : vector<8x96xf32> to vector<8x8xf32>
    %cst_43 = arith.constant 0.353553385 : f32
    %113 = vector.broadcast %cst_43 : f32 to vector<8x8xf32>
    %114 = arith.mulf %112, %113 : vector<8x8xf32>
    %115 = vector.extract_strided_slice %32 {offsets = [0, 56], sizes = [8, 8], strides = [1, 1]} : vector<8x96xf32> to vector<8x8xf32>
    %116 = vector.extract_strided_slice %32 {offsets = [0, 88], sizes = [8, 8], strides = [1, 1]} : vector<8x96xf32> to vector<8x8xf32>
    %cst_44 = arith.constant dense<0.000000e+00> : vector<8x8xf32>
    %117 = tpu.matmul %114, %115, %cst_44 {dimension_numbers = #tpu.dot_dimension_numbers<[1], [1], [0], [0], [0, 0, 1, 0], [], []>} : vector<8x8xf32>, vector<8x8xf32>, vector<8x8xf32> -> vector<8x8xf32>
    %118 = vector.broadcast %39 : vector<1x8xf32> to vector<8x8xf32>
    %119 = arith.addf %117, %118 : vector<8x8xf32>
    %cst_45 = arith.constant dense<0xFF800000> : vector<8xf32>
    %120 = vector.multi_reduction <maximumf>, %119, %cst_45 [1] : vector<8x8xf32> to vector<8xf32>
    %121 = vector.shape_cast %120 : vector<8xf32> to vector<8x1xf32>
    %122 = vector.broadcast %121 : vector<8x1xf32> to vector<8x8xf32>
    %123 = arith.subf %119, %122 : vector<8x8xf32>
    %124 = math.exp %123 : vector<8x8xf32>
    %cst_46 = arith.constant dense<0.000000e+00> : vector<8xf32>
    %125 = vector.multi_reduction <add>, %124, %cst_46 [1] : vector<8x8xf32> to vector<8xf32>
    %126 = vector.shape_cast %125 : vector<8xf32> to vector<8x1xf32>
    %127 = tpu.reciprocal %126 {approx = true} : vector<8x1xf32> -> vector<8x1xf32>
    %128 = arith.mulf %126, %127 : vector<8x1xf32>
    %cst_47 = arith.constant 2.000000e+00 : f32
    %129 = vector.broadcast %cst_47 : f32 to vector<8x1xf32>
    %130 = arith.subf %129, %128 : vector<8x1xf32>
    %131 = arith.mulf %127, %130 : vector<8x1xf32>
    %132 = vector.broadcast %131 : vector<8x1xf32> to vector<8x8xf32>
    %133 = arith.mulf %124, %132 : vector<8x8xf32>
    %cst_48 = arith.constant dense<0.000000e+00> : vector<8x8xf32>
    %134 = tpu.matmul %133, %116, %cst_48 {dimension_numbers = #tpu.dot_dimension_numbers<[1], [0], [0], [1], [0, 0, 1, 1], [], []>} : vector<8x8xf32>, vector<8x8xf32>, vector<8x8xf32> -> vector<8x8xf32>
    %c0_49 = arith.constant 0 : index
    %c24 = arith.constant 24 : index
    %135 = vector.load %arg16[%c0_49, %c24] : memref<8x32xf32, #tpu.memory_space<vmem>>, vector<8x8xf32>
    tpu.vector_store %arg16[%c0_49, %c24], %134 {strides = array<i32>} : memref<8x32xf32, #tpu.memory_space<vmem>>, vector<8x8xf32>,
    %c0_50 = arith.constant 0 : index
    %c0_51 = arith.constant 0 : index
    %136 = vector.load %arg16[%c0_50, %c0_51] : memref<8x32xf32, #tpu.memory_space<vmem>>, vector<8x32xf32>
    %c0_52 = arith.constant 0 : index
    %c0_53 = arith.constant 0 : index
    %137 = vector.load %arg5[%c0_52, %c0_53] : memref<32x32xf32, #tpu.memory_space<vmem>>, vector<32x32xf32>
    %cst_54 = arith.constant dense<0.000000e+00> : vector<8x32xf32>
    %138 = tpu.matmul %136, %137, %cst_54 {dimension_numbers = #tpu.dot_dimension_numbers<[1], [0], [0], [1], [0, 0, 1, 1], [], []>} : vector<8x32xf32>, vector<32x32xf32>, vector<8x32xf32> -> vector<8x32xf32>
    %c0_55 = arith.constant 0 : index
    %c0_56 = arith.constant 0 : index
    %139 = vector.load %arg6[%c0_55, %c0_56] : memref<1x32xf32, #tpu.memory_space<vmem>>, vector<1x32xf32>
    %140 = vector.broadcast %139 : vector<1x32xf32> to vector<8x32xf32>
    %141 = arith.addf %138, %140 : vector<8x32xf32>
    %142 = arith.addf %0, %141 : vector<8x32xf32>
    %c0_57 = arith.constant 0 : index
    %c0_58 = arith.constant 0 : index
    %143 = vector.load %arg9[%c0_57, %c0_58] : memref<1x32xf32, #tpu.memory_space<vmem>>, vector<1x32xf32>
    %c0_59 = arith.constant 0 : index
    %c0_60 = arith.constant 0 : index
    %144 = vector.load %arg10[%c0_59, %c0_60] : memref<1x32xf32, #tpu.memory_space<vmem>>, vector<1x32xf32>
    %cst_61 = arith.constant dense<0.000000e+00> : vector<8xf32>
    %145 = vector.multi_reduction <add>, %142, %cst_61 [1] : vector<8x32xf32> to vector<8xf32>
    %146 = vector.shape_cast %145 : vector<8xf32> to vector<8x1xf32>
    %cst_62 = arith.constant 3.200000e+01 : f32
    %147 = vector.broadcast %cst_62 : f32 to vector<8x1xf32>
    %148 = arith.divf %146, %147 : vector<8x1xf32>
    %149 = vector.broadcast %148 : vector<8x1xf32> to vector<8x32xf32>
    %150 = arith.subf %142, %149 : vector<8x32xf32>
    %151 = arith.mulf %150, %150 : vector<8x32xf32>
    %cst_63 = arith.constant dense<0.000000e+00> : vector<8xf32>
    %152 = vector.multi_reduction <add>, %151, %cst_63 [1] : vector<8x32xf32> to vector<8xf32>
    %153 = vector.shape_cast %152 : vector<8xf32> to vector<8x1xf32>
    %cst_64 = arith.constant 0.0322580636 : f32
    %154 = vector.broadcast %cst_64 : f32 to vector<8x1xf32>
    %155 = arith.mulf %153, %154 : vector<8x1xf32>
    %156 = math.sqrt %155 : vector<8x1xf32>
    %cst_65 = arith.constant 9.99999997E-7 : f32
    %157 = vector.broadcast %cst_65 : f32 to vector<8x1xf32>
    %158 = arith.addf %156, %157 : vector<8x1xf32>
    %159 = tpu.reciprocal %158 {approx = true} : vector<8x1xf32> -> vector<8x1xf32>
    %160 = arith.mulf %158, %159 : vector<8x1xf32>
    %cst_66 = arith.constant 2.000000e+00 : f32
    %161 = vector.broadcast %cst_66 : f32 to vector<8x1xf32>
    %162 = arith.subf %161, %160 : vector<8x1xf32>
    %163 = arith.mulf %159, %162 : vector<8x1xf32>
    %164 = vector.broadcast %163 : vector<8x1xf32> to vector<8x32xf32>
    %165 = arith.mulf %150, %164 : vector<8x32xf32>
    %166 = vector.broadcast %143 : vector<1x32xf32> to vector<8x32xf32>
    %167 = arith.mulf %166, %165 : vector<8x32xf32>
    %168 = vector.broadcast %144 : vector<1x32xf32> to vector<8x32xf32>
    %169 = arith.addf %167, %168 : vector<8x32xf32>
    %cst_67 = arith.constant 0.000000e+00 : f32
    %170 = vector.broadcast %cst_67 : f32 to vector<8x32xf32>
    %c0_68 = arith.constant 0 : index
    %c0_69 = arith.constant 0 : index
    %171 = vector.load %arg11[%c0_68, %c0_69] : memref<32x2048xf32, #tpu.memory_space<vmem>>, vector<32x512xf32>
    %cst_70 = arith.constant dense<0.000000e+00> : vector<8x512xf32>
    %172 = tpu.matmul %169, %171, %cst_70 {dimension_numbers = #tpu.dot_dimension_numbers<[1], [0], [0], [1], [0, 0, 1, 1], [], []>} : vector<8x32xf32>, vector<32x512xf32>, vector<8x512xf32> -> vector<8x512xf32>
    %c0_71 = arith.constant 0 : index
    %c0_72 = arith.constant 0 : index
    %173 = vector.load %arg12[%c0_71, %c0_72] : memref<1x2048xf32, #tpu.memory_space<vmem>>, vector<1x512xf32>
    %174 = vector.broadcast %173 : vector<1x512xf32> to vector<8x512xf32>
    %175 = arith.addf %172, %174 : vector<8x512xf32>
    %cst_73 = arith.constant 0.000000e+00 : f32
    %176 = vector.broadcast %cst_73 : f32 to vector<8x512xf32>
    %177 = arith.maximumf %175, %176 : vector<8x512xf32>
    %c0_74 = arith.constant 0 : index
    %c0_75 = arith.constant 0 : index
    %178 = vector.load %arg13[%c0_74, %c0_75] : memref<2048x32xf32, #tpu.memory_space<vmem>>, vector<512x32xf32>
    %cst_76 = arith.constant dense<0.000000e+00> : vector<8x32xf32>
    %179 = tpu.matmul %177, %178, %cst_76 {dimension_numbers = #tpu.dot_dimension_numbers<[1], [0], [0], [1], [0, 0, 1, 1], [], []>} : vector<8x512xf32>, vector<512x32xf32>, vector<8x32xf32> -> vector<8x32xf32>
    %180 = arith.addf %170, %179 : vector<8x32xf32>
    %c0_77 = arith.constant 0 : index
    %c512 = arith.constant 512 : index
    %181 = vector.load %arg11[%c0_77, %c512] : memref<32x2048xf32, #tpu.memory_space<vmem>>, vector<32x512xf32>
    %cst_78 = arith.constant dense<0.000000e+00> : vector<8x512xf32>
    %182 = tpu.matmul %169, %181, %cst_78 {dimension_numbers = #tpu.dot_dimension_numbers<[1], [0], [0], [1], [0, 0, 1, 1], [], []>} : vector<8x32xf32>, vector<32x512xf32>, vector<8x512xf32> -> vector<8x512xf32>
    %c0_79 = arith.constant 0 : index
    %c512_80 = arith.constant 512 : index
    %183 = vector.load %arg12[%c0_79, %c512_80] : memref<1x2048xf32, #tpu.memory_space<vmem>>, vector<1x512xf32>
    %184 = vector.broadcast %183 : vector<1x512xf32> to vector<8x512xf32>
    %185 = arith.addf %182, %184 : vector<8x512xf32>
    %cst_81 = arith.constant 0.000000e+00 : f32
    %186 = vector.broadcast %cst_81 : f32 to vector<8x512xf32>
    %187 = arith.maximumf %185, %186 : vector<8x512xf32>
    %c512_82 = arith.constant 512 : index
    %c0_83 = arith.constant 0 : index
    %188 = vector.load %arg13[%c512_82, %c0_83] : memref<2048x32xf32, #tpu.memory_space<vmem>>, vector<512x32xf32>
    %cst_84 = arith.constant dense<0.000000e+00> : vector<8x32xf32>
    %189 = tpu.matmul %187, %188, %cst_84 {dimension_numbers = #tpu.dot_dimension_numbers<[1], [0], [0], [1], [0, 0, 1, 1], [], []>} : vector<8x512xf32>, vector<512x32xf32>, vector<8x32xf32> -> vector<8x32xf32>
    %190 = arith.addf %180, %189 : vector<8x32xf32>
    %c0_85 = arith.constant 0 : index
    %c1024 = arith.constant 1024 : index
    %191 = vector.load %arg11[%c0_85, %c1024] : memref<32x2048xf32, #tpu.memory_space<vmem>>, vector<32x512xf32>
    %cst_86 = arith.constant dense<0.000000e+00> : vector<8x512xf32>
    %192 = tpu.matmul %169, %191, %cst_86 {dimension_numbers = #tpu.dot_dimension_numbers<[1], [0], [0], [1], [0, 0, 1, 1], [], []>} : vector<8x32xf32>, vector<32x512xf32>, vector<8x512xf32> -> vector<8x512xf32>
    %c0_87 = arith.constant 0 : index
    %c1024_88 = arith.constant 1024 : index
    %193 = vector.load %arg12[%c0_87, %c1024_88] : memref<1x2048xf32, #tpu.memory_space<vmem>>, vector<1x512xf32>
    %194 = vector.broadcast %193 : vector<1x512xf32> to vector<8x512xf32>
    %195 = arith.addf %192, %194 : vector<8x512xf32>
    %cst_89 = arith.constant 0.000000e+00 : f32
    %196 = vector.broadcast %cst_89 : f32 to vector<8x512xf32>
    %197 = arith.maximumf %195, %196 : vector<8x512xf32>
    %c1024_90 = arith.constant 1024 : index
    %c0_91 = arith.constant 0 : index
    %198 = vector.load %arg13[%c1024_90, %c0_91] : memref<2048x32xf32, #tpu.memory_space<vmem>>, vector<512x32xf32>
    %cst_92 = arith.constant dense<0.000000e+00> : vector<8x32xf32>
    %199 = tpu.matmul %197, %198, %cst_92 {dimension_numbers = #tpu.dot_dimension_numbers<[1], [0], [0], [1], [0, 0, 1, 1], [], []>} : vector<8x512xf32>, vector<512x32xf32>, vector<8x32xf32> -> vector<8x32xf32>
    %200 = arith.addf %190, %199 : vector<8x32xf32>
    %c0_93 = arith.constant 0 : index
    %c1536 = arith.constant 1536 : index
    %201 = vector.load %arg11[%c0_93, %c1536] : memref<32x2048xf32, #tpu.memory_space<vmem>>, vector<32x512xf32>
    %cst_94 = arith.constant dense<0.000000e+00> : vector<8x512xf32>
    %202 = tpu.matmul %169, %201, %cst_94 {dimension_numbers = #tpu.dot_dimension_numbers<[1], [0], [0], [1], [0, 0, 1, 1], [], []>} : vector<8x32xf32>, vector<32x512xf32>, vector<8x512xf32> -> vector<8x512xf32>
    %c0_95 = arith.constant 0 : index
    %c1536_96 = arith.constant 1536 : index
    %203 = vector.load %arg12[%c0_95, %c1536_96] : memref<1x2048xf32, #tpu.memory_space<vmem>>, vector<1x512xf32>
    %204 = vector.broadcast %203 : vector<1x512xf32> to vector<8x512xf32>
    %205 = arith.addf %202, %204 : vector<8x512xf32>
    %cst_97 = arith.constant 0.000000e+00 : f32
    %206 = vector.broadcast %cst_97 : f32 to vector<8x512xf32>
    %207 = arith.maximumf %205, %206 : vector<8x512xf32>
    %c1536_98 = arith.constant 1536 : index
    %c0_99 = arith.constant 0 : index
    %208 = vector.load %arg13[%c1536_98, %c0_99] : memref<2048x32xf32, #tpu.memory_space<vmem>>, vector<512x32xf32>
    %cst_100 = arith.constant dense<0.000000e+00> : vector<8x32xf32>
    %209 = tpu.matmul %207, %208, %cst_100 {dimension_numbers = #tpu.dot_dimension_numbers<[1], [0], [0], [1], [0, 0, 1, 1], [], []>} : vector<8x512xf32>, vector<512x32xf32>, vector<8x32xf32> -> vector<8x32xf32>
    %210 = arith.addf %200, %209 : vector<8x32xf32>
    %c0_101 = arith.constant 0 : index
    %c0_102 = arith.constant 0 : index
    %211 = vector.load %arg14[%c0_101, %c0_102] : memref<1x32xf32, #tpu.memory_space<vmem>>, vector<1x32xf32>
    %212 = vector.broadcast %211 : vector<1x32xf32> to vector<8x32xf32>
    %213 = arith.addf %210, %212 : vector<8x32xf32>
    %214 = arith.addf %142, %213 : vector<8x32xf32>
    %c0_103 = arith.constant 0 : index
    %c0_104 = arith.constant 0 : index
    %215 = vector.load %arg15[%c0_103, %c0_104] : memref<8x32xf32, #tpu.memory_space<vmem>>, vector<8x32xf32>
    tpu.vector_store %arg15[%c0_103, %c0_104], %214 {strides = array<i32>} : memref<8x32xf32, #tpu.memory_space<vmem>>, vector<8x32xf32>,
    return
  }
  func.func @transform_0(%arg0: i32) -> (i32, i32) {
    %c0_i32 = arith.constant 0 : i32
    %c0_i32_0 = arith.constant 0 : i32
    return %arg0, %c0_i32 : i32, i32
  }
  func.func @transform_1(%arg0: i32) -> (i32, i32, i32) {
    %c0_i32 = arith.constant 0 : i32
    %c0_i32_0 = arith.constant 0 : i32
    %c0_i32_1 = arith.constant 0 : i32
    return %arg0, %c0_i32, %c0_i32_0 : i32, i32, i32
  }
  func.func @transform_2(%arg0: i32) -> (i32, i32) {
    %c0_i32 = arith.constant 0 : i32
    %c0_i32_0 = arith.constant 0 : i32
    %c0_i32_1 = arith.constant 0 : i32
    return %c0_i32, %c0_i32_0 : i32, i32
  }
  func.func @transform_3(%arg0: i32) -> (i32, i32) {
    %c0_i32 = arith.constant 0 : i32
    %c0_i32_0 = arith.constant 0 : i32
    %c0_i32_1 = arith.constant 0 : i32
    return %c0_i32, %c0_i32_0 : i32, i32
  }
  func.func @transform_4(%arg0: i32) -> (i32, i32) {
    %c0_i32 = arith.constant 0 : i32
    %c0_i32_0 = arith.constant 0 : i32
    %c0_i32_1 = arith.constant 0 : i32
    return %c0_i32, %c0_i32_0 : i32, i32
  }
  func.func @transform_5(%arg0: i32) -> (i32, i32) {
    %c0_i32 = arith.constant 0 : i32
    %c0_i32_0 = arith.constant 0 : i32
    %c0_i32_1 = arith.constant 0 : i32
    return %c0_i32, %c0_i32_0 : i32, i32
  }
  func.func @transform_6(%arg0: i32) -> (i32, i32) {
    %c0_i32 = arith.constant 0 : i32
    %c0_i32_0 = arith.constant 0 : i32
    %c0_i32_1 = arith.constant 0 : i32
    return %c0_i32, %c0_i32_0 : i32, i32
  }
  func.func @transform_7(%arg0: i32) -> (i32, i32) {
    %c0_i32 = arith.constant 0 : i32
    %c0_i32_0 = arith.constant 0 : i32
    %c0_i32_1 = arith.constant 0 : i32
    return %c0_i32, %c0_i32_0 : i32, i32
  }
  func.func @transform_8(%arg0: i32) -> (i32, i32) {
    %c0_i32 = arith.constant 0 : i32
    %c0_i32_0 = arith.constant 0 : i32
    %c0_i32_1 = arith.constant 0 : i32
    return %c0_i32, %c0_i32_0 : i32, i32
  }
  func.func @transform_9(%arg0: i32) -> (i32, i32) {
    %c0_i32 = arith.constant 0 : i32
    %c0_i32_0 = arith.constant 0 : i32
    %c0_i32_1 = arith.constant 0 : i32
    return %c0_i32, %c0_i32_0 : i32, i32
  }
  func.func @transform_10(%arg0: i32) -> (i32, i32) {
    %c0_i32 = arith.constant 0 : i32
    %c0_i32_0 = arith.constant 0 : i32
    %c0_i32_1 = arith.constant 0 : i32
    return %c0_i32, %c0_i32_0 : i32, i32
  }
  func.func @transform_11(%arg0: i32) -> (i32, i32) {
    %c0_i32 = arith.constant 0 : i32
    %c0_i32_0 = arith.constant 0 : i32
    %c0_i32_1 = arith.constant 0 : i32
    return %c0_i32, %c0_i32_0 : i32, i32
  }
  func.func @transform_12(%arg0: i32) -> (i32, i32) {
    %c0_i32 = arith.constant 0 : i32
    %c0_i32_0 = arith.constant 0 : i32
    %c0_i32_1 = arith.constant 0 : i32
    return %c0_i32, %c0_i32_0 : i32, i32
  }
  func.func @transform_13(%arg0: i32) -> (i32, i32) {
    %c0_i32 = arith.constant 0 : i32
    %c0_i32_0 = arith.constant 0 : i32
    %c0_i32_1 = arith.constant 0 : i32
    return %c0_i32, %c0_i32_0 : i32, i32
  }
  func.func @transform_14(%arg0: i32) -> (i32, i32) {
    %c0_i32 = arith.constant 0 : i32
    %c0_i32_0 = arith.constant 0 : i32
    return %arg0, %c0_i32 : i32, i32
  }
}

module attributes {stable_mosaic.version = 11 : i64} {
  func.func @encoder_layer_kernel(%arg0: i32, %arg1: memref<8x32xf32, #tpu.memory_space<vmem>>, %arg2: memref<1x1x8xf32, #tpu.memory_space<vmem>>, %arg3: memref<32x96xf32, #tpu.memory_space<vmem>>, %arg4: memref<1x96xf32, #tpu.memory_space<vmem>>, %arg5: memref<32x32xf32, #tpu.memory_space<vmem>>, %arg6: memref<1x32xf32, #tpu.memory_space<vmem>>, %arg7: memref<1x32xf32, #tpu.memory_space<vmem>>, %arg8: memref<1x32xf32, #tpu.memory_space<vmem>>, %arg9: memref<1x32xf32, #tpu.memory_space<vmem>>, %arg10: memref<1x32xf32, #tpu.memory_space<vmem>>, %arg11: memref<32x2048xf32, #tpu.memory_space<vmem>>, %arg12: memref<1x2048xf32, #tpu.memory_space<vmem>>, %arg13: memref<2048x32xf32, #tpu.memory_space<vmem>>, %arg14: memref<1x32xf32, #tpu.memory_space<vmem>>, %arg15: memref<8x32xf32, #tpu.memory_space<vmem>>, %arg16: memref<8x32xf32, #tpu.memory_space<vmem>>) attributes {dimension_semantics = [#tpu.dimension_semantics<parallel>], iteration_bounds = array<i64: 2>, scalar_prefetch = 0 : i64, scratch_operands = 1 : i64, tpu.core_type = #tpu.core_type<tc>, window_params = [{transform_indices = @transform_0, window_bounds = array<i64: 8, 32>}, {transform_indices = @transform_1, window_bounds = array<i64: 1, 1, 8>}, {pipeline_mode = #tpu.pipeline_mode<synchronous>, transform_indices = @transform_2, window_bounds = array<i64: 32, 96>}, {pipeline_mode = #tpu.pipeline_mode<synchronous>, transform_indices = @transform_3, window_bounds = array<i64: 1, 96>}, {pipeline_mode = #tpu.pipeline_mode<synchronous>, transform_indices = @transform_4, window_bounds = array<i64: 32, 32>}, {pipeline_mode = #tpu.pipeline_mode<synchronous>, transform_indices = @transform_5, window_bounds = array<i64: 1, 32>}, {pipeline_mode = #tpu.pipeline_mode<synchronous>, transform_indices = @transform_6, window_bounds = array<i64: 1, 32>}, {pipeline_mode = #tpu.pipeline_mode<synchronous>, transform_indices = @transform_7, window_bounds = array<i64: 1, 32>}, {pipeline_mode = #tpu.pipeline_mode<synchronous>, transform_indices = @transform_8, window_bounds = array<i64: 1, 32>}, {pipeline_mode = #tpu.pipeline_mode<synchronous>, transform_indices = @transform_9, window_bounds = array<i64: 1, 32>}, {pipeline_mode = #tpu.pipeline_mode<synchronous>, transform_indices = @transform_10, window_bounds = array<i64: 32, 2048>}, {pipeline_mode = #tpu.pipeline_mode<synchronous>, transform_indices = @transform_11, window_bounds = array<i64: 1, 2048>}, {pipeline_mode = #tpu.pipeline_mode<synchronous>, transform_indices = @transform_12, window_bounds = array<i64: 2048, 32>}, {pipeline_mode = #tpu.pipeline_mode<synchronous>, transform_indices = @transform_13, window_bounds = array<i64: 1, 32>}, {transform_indices = @transform_14, window_bounds = array<i64: 8, 32>}]} {
    %c0 = arith.constant 0 : index
    %c0_0 = arith.constant 0 : index
    %0 = vector.load %arg1[%c0, %c0_0] : memref<8x32xf32, #tpu.memory_space<vmem>>, vector<8x32xf32>
    %c0_1 = arith.constant 0 : index
    %c0_2 = arith.constant 0 : index
    %1 = vector.load %arg7[%c0_1, %c0_2] : memref<1x32xf32, #tpu.memory_space<vmem>>, vector<1x32xf32>
    %c0_3 = arith.constant 0 : index
    %c0_4 = arith.constant 0 : index
    %2 = vector.load %arg8[%c0_3, %c0_4] : memref<1x32xf32, #tpu.memory_space<vmem>>, vector<1x32xf32>
    %cst = arith.constant dense<0.000000e+00> : vector<8xf32>
    %3 = vector.multi_reduction <add>, %0, %cst [1] : vector<8x32xf32> to vector<8xf32>
    %4 = vector.shape_cast %3 : vector<8xf32> to vector<8x1xf32>
    %cst_5 = arith.constant 3.200000e+01 : f32
    %5 = vector.broadcast %cst_5 : f32 to vector<8x1xf32>
    %6 = arith.divf %4, %5 : vector<8x1xf32>
    %7 = vector.broadcast %6 : vector<8x1xf32> to vector<8x32xf32>
    %8 = arith.subf %0, %7 : vector<8x32xf32>
    %9 = arith.mulf %8, %8 : vector<8x32xf32>
    %cst_6 = arith.constant dense<0.000000e+00> : vector<8xf32>
    %10 = vector.multi_reduction <add>, %9, %cst_6 [1] : vector<8x32xf32> to vector<8xf32>
    %11 = vector.shape_cast %10 : vector<8xf32> to vector<8x1xf32>
    %cst_7 = arith.constant 0.0322580636 : f32
    %12 = vector.broadcast %cst_7 : f32 to vector<8x1xf32>
    %13 = arith.mulf %11, %12 : vector<8x1xf32>
    %14 = math.sqrt %13 : vector<8x1xf32>
    %cst_8 = arith.constant 9.99999997E-7 : f32
    %15 = vector.broadcast %cst_8 : f32 to vector<8x1xf32>
    %16 = arith.addf %14, %15 : vector<8x1xf32>
    %17 = tpu.reciprocal %16 {approx = true} : vector<8x1xf32> -> vector<8x1xf32>
    %18 = arith.mulf %16, %17 : vector<8x1xf32>
    %cst_9 = arith.constant 2.000000e+00 : f32
    %19 = vector.broadcast %cst_9 : f32 to vector<8x1xf32>
    %20 = arith.subf %19, %18 : vector<8x1xf32>
    %21 = arith.mulf %17, %20 : vector<8x1xf32>
    %22 = vector.broadcast %21 : vector<8x1xf32> to vector<8x32xf32>
    %23 = arith.mulf %8, %22 : vector<8x32xf32>
    %24 = vector.broadcast %1 : vector<1x32xf32> to vector<8x32xf32>
    %25 = arith.mulf %24, %23 : vector<8x32xf32>
    %26 = vector.broadcast %2 : vector<1x32xf32> to vector<8x32xf32>
    %27 = arith.addf %25, %26 : vector<8x32xf32>
    %c0_10 = arith.constant 0 : index
    %c0_11 = arith.constant 0 : index
    %28 = vector.load %arg3[%c0_10, %c0_11] : memref<32x96xf32, #tpu.memory_space<vmem>>, vector<32x96xf32>
    %cst_12 = arith.constant dense<0.000000e+00> : vector<8x96xf32>
    %29 = tpu.matmul %27, %28, %cst_12 {dimension_numbers = #tpu.dot_dimension_numbers<[1], [0], [0], [1], [0, 0, 1, 1], [], []>} : vector<8x32xf32>, vector<32x96xf32>, vector<8x96xf32> -> vector<8x96xf32>
    %c0_13 = arith.constant 0 : index
    %c0_14 = arith.constant 0 : index
    %30 = vector.load %arg4[%c0_13, %c0_14] : memref<1x96xf32, #tpu.memory_space<vmem>>, vector<1x96xf32>
    %31 = vector.broadcast %30 : vector<1x96xf32> to vector<8x96xf32>
    %32 = arith.addf %29, %31 : vector<8x96xf32>
    %c0_15 = arith.constant 0 : index
    %c0_16 = arith.constant 0 : index
    %c0_17 = arith.constant 0 : index
    %33 = vector.load %arg2[%c0_15, %c0_16, %c0_17] : memref<1x1x8xf32, #tpu.memory_space<vmem>>, vector<1x1x8xf32>
    %34 = vector.shape_cast %33 : vector<1x1x8xf32> to vector<1x8xf32>
    %cst_18 = arith.constant 0.000000e+00 : f32
    %35 = vector.broadcast %cst_18 : f32 to vector<1x8xf32>
    %36 = arith.cmpf oeq, %34, %35 : vector<1x8xf32>
    %cst_19 = arith.constant -1.000000e+09 : f32
    %cst_20 = arith.constant 0.000000e+00 : f32
    %37 = vector.broadcast %cst_19 : f32 to vector<1x8xf32>
    %38 = vector.broadcast %cst_20 : f32 to vector<1x8xf32>
    %39 = arith.select %36, %37, %38 : vector<1x8xi1>, vector<1x8xf32>
    %40 = vector.extract_strided_slice %32 {offsets = [0, 0], sizes = [8, 8], strides = [1, 1]} : vector<8x96xf32> to vector<8x8xf32>
    %cst_21 = arith.constant 0.353553385 : f32
    %41 = vector.broadcast %cst_21 : f32 to vector<8x8xf32>
    %42 = arith.mulf %40, %41 : vector<8x8xf32>
    %43 = vector.extract_strided_slice %32 {offsets = [0, 32], sizes = [8, 8], strides = [1, 1]} : vector<8x96xf32> to vector<8x8xf32>
    %44 = vector.extract_strided_slice %32 {offsets = [0, 64], sizes = [8, 8], strides = [1, 1]} : vector<8x96xf32> to vector<8x8xf32>
    %cst_22 = arith.constant dense<0.000000e+00> : vector<8x8xf32>
    %45 = tpu.matmul %42, %43, %cst_22 {dimension_numbers = #tpu.dot_dimension_numbers<[1], [1], [0], [0], [0, 0, 1, 0], [], []>} : vector<8x8xf32>, vector<8x8xf32>, vector<8x8xf32> -> vector<8x8xf32>
    %46 = vector.broadcast %39 : vector<1x8xf32> to vector<8x8xf32>
    %47 = arith.addf %45, %46 : vector<8x8xf32>
    %cst_23 = arith.constant dense<0xFF800000> : vector<8xf32>
    %48 = vector.multi_reduction <maximumf>, %47, %cst_23 [1] : vector<8x8xf32> to vector<8xf32>
    %49 = vector.shape_cast %48 : vector<8xf32> to vector<8x1xf32>
    %50 = vector.broadcast %49 : vector<8x1xf32> to vector<8x8xf32>
    %51 = arith.subf %47, %50 : vector<8x8xf32>
    %52 = math.exp %51 : vector<8x8xf32>
    %cst_24 = arith.constant dense<0.000000e+00> : vector<8xf32>
    %53 = vector.multi_reduction <add>, %52, %cst_24 [1] : vector<8x8xf32> to vector<8xf32>
    %54 = vector.shape_cast %53 : vector<8xf32> to vector<8x1xf32>
    %55 = tpu.reciprocal %54 {approx = true} : vector<8x1xf32> -> vector<8x1xf32>
    %56 = arith.mulf %54, %55 : vector<8x1xf32>
    %cst_25 = arith.constant 2.000000e+00 : f32
    %57 = vector.broadcast %cst_25 : f32 to vector<8x1xf32>
    %58 = arith.subf %57, %56 : vector<8x1xf32>
    %59 = arith.mulf %55, %58 : vector<8x1xf32>
    %60 = vector.broadcast %59 : vector<8x1xf32> to vector<8x8xf32>
    %61 = arith.mulf %52, %60 : vector<8x8xf32>
    %cst_26 = arith.constant dense<0.000000e+00> : vector<8x8xf32>
    %62 = tpu.matmul %61, %44, %cst_26 {dimension_numbers = #tpu.dot_dimension_numbers<[1], [0], [0], [1], [0, 0, 1, 1], [], []>} : vector<8x8xf32>, vector<8x8xf32>, vector<8x8xf32> -> vector<8x8xf32>
    %c0_27 = arith.constant 0 : index
    %c0_28 = arith.constant 0 : index
    %63 = vector.load %arg16[%c0_27, %c0_28] : memref<8x32xf32, #tpu.memory_space<vmem>>, vector<8x8xf32>
    tpu.vector_store %arg16[%c0_27, %c0_28], %62 {strides = array<i32>} : memref<8x32xf32, #tpu.memory_space<vmem>>, vector<8x8xf32>,
    %64 = vector.extract_strided_slice %32 {offsets = [0, 8], sizes = [8, 8], strides = [1, 1]} : vector<8x96xf32> to vector<8x8xf32>
    %cst_29 = arith.constant 0.353553385 : f32
    %65 = vector.broadcast %cst_29 : f32 to vector<8x8xf32>
    %66 = arith.mulf %64, %65 : vector<8x8xf32>
    %67 = vector.extract_strided_slice %32 {offsets = [0, 40], sizes = [8, 8], strides = [1, 1]} : vector<8x96xf32> to vector<8x8xf32>
    %68 = vector.extract_strided_slice %32 {offsets = [0, 72], sizes = [8, 8], strides = [1, 1]} : vector<8x96xf32> to vector<8x8xf32>
    %cst_30 = arith.constant dense<0.000000e+00> : vector<8x8xf32>
    %69 = tpu.matmul %66, %67, %cst_30 {dimension_numbers = #tpu.dot_dimension_numbers<[1], [1], [0], [0], [0, 0, 1, 0], [], []>} : vector<8x8xf32>, vector<8x8xf32>, vector<8x8xf32> -> vector<8x8xf32>
    %70 = vector.broadcast %39 : vector<1x8xf32> to vector<8x8xf32>
    %71 = arith.addf %69, %70 : vector<8x8xf32>
    %cst_31 = arith.constant dense<0xFF800000> : vector<8xf32>
    %72 = vector.multi_reduction <maximumf>, %71, %cst_31 [1] : vector<8x8xf32> to vector<8xf32>
    %73 = vector.shape_cast %72 : vector<8xf32> to vector<8x1xf32>
    %74 = vector.broadcast %73 : vector<8x1xf32> to vector<8x8xf32>
    %75 = arith.subf %71, %74 : vector<8x8xf32>
    %76 = math.exp %75 : vector<8x8xf32>
    %cst_32 = arith.constant dense<0.000000e+00> : vector<8xf32>
    %77 = vector.multi_reduction <add>, %76, %cst_32 [1] : vector<8x8xf32> to vector<8xf32>
    %78 = vector.shape_cast %77 : vector<8xf32> to vector<8x1xf32>
    %79 = tpu.reciprocal %78 {approx = true} : vector<8x1xf32> -> vector<8x1xf32>
    %80 = arith.mulf %78, %79 : vector<8x1xf32>
    %cst_33 = arith.constant 2.000000e+00 : f32
    %81 = vector.broadcast %cst_33 : f32 to vector<8x1xf32>
    %82 = arith.subf %81, %80 : vector<8x1xf32>
    %83 = arith.mulf %79, %82 : vector<8x1xf32>
    %84 = vector.broadcast %83 : vector<8x1xf32> to vector<8x8xf32>
    %85 = arith.mulf %76, %84 : vector<8x8xf32>
    %cst_34 = arith.constant dense<0.000000e+00> : vector<8x8xf32>
    %86 = tpu.matmul %85, %68, %cst_34 {dimension_numbers = #tpu.dot_dimension_numbers<[1], [0], [0], [1], [0, 0, 1, 1], [], []>} : vector<8x8xf32>, vector<8x8xf32>, vector<8x8xf32> -> vector<8x8xf32>
    %c0_35 = arith.constant 0 : index
    %c8 = arith.constant 8 : index
    %87 = vector.load %arg16[%c0_35, %c8] : memref<8x32xf32, #tpu.memory_space<vmem>>, vector<8x8xf32>
    tpu.vector_store %arg16[%c0_35, %c8], %86 {strides = array<i32>} : memref<8x32xf32, #tpu.memory_space<vmem>>, vector<8x8xf32>,
    %88 = vector.extract_strided_slice %32 {offsets = [0, 16], sizes = [8, 8], strides = [1, 1]} : vector<8x96xf32> to vector<8x8xf32>
    %cst_36 = arith.constant 0.353553385 : f32
    %89 = vector.broadcast %cst_36 : f32 to vector<8x8xf32>
    %90 = arith.mulf %88, %89 : vector<8x8xf32>
    %91 = vector.extract_strided_slice %32 {offsets = [0, 48], sizes = [8, 8], strides = [1, 1]} : vector<8x96xf32> to vector<8x8xf32>
    %92 = vector.extract_strided_slice %32 {offsets = [0, 80], sizes = [8, 8], strides = [1, 1]} : vector<8x96xf32> to vector<8x8xf32>
    %cst_37 = arith.constant dense<0.000000e+00> : vector<8x8xf32>
    %93 = tpu.matmul %90, %91, %cst_37 {dimension_numbers = #tpu.dot_dimension_numbers<[1], [1], [0], [0], [0, 0, 1, 0], [], []>} : vector<8x8xf32>, vector<8x8xf32>, vector<8x8xf32> -> vector<8x8xf32>
    %94 = vector.broadcast %39 : vector<1x8xf32> to vector<8x8xf32>
    %95 = arith.addf %93, %94 : vector<8x8xf32>
    %cst_38 = arith.constant dense<0xFF800000> : vector<8xf32>
    %96 = vector.multi_reduction <maximumf>, %95, %cst_38 [1] : vector<8x8xf32> to vector<8xf32>
    %97 = vector.shape_cast %96 : vector<8xf32> to vector<8x1xf32>
    %98 = vector.broadcast %97 : vector<8x1xf32> to vector<8x8xf32>
    %99 = arith.subf %95, %98 : vector<8x8xf32>
    %100 = math.exp %99 : vector<8x8xf32>
    %cst_39 = arith.constant dense<0.000000e+00> : vector<8xf32>
    %101 = vector.multi_reduction <add>, %100, %cst_39 [1] : vector<8x8xf32> to vector<8xf32>
    %102 = vector.shape_cast %101 : vector<8xf32> to vector<8x1xf32>
    %103 = tpu.reciprocal %102 {approx = true} : vector<8x1xf32> -> vector<8x1xf32>
    %104 = arith.mulf %102, %103 : vector<8x1xf32>
    %cst_40 = arith.constant 2.000000e+00 : f32
    %105 = vector.broadcast %cst_40 : f32 to vector<8x1xf32>
    %106 = arith.subf %105, %104 : vector<8x1xf32>
    %107 = arith.mulf %103, %106 : vector<8x1xf32>
    %108 = vector.broadcast %107 : vector<8x1xf32> to vector<8x8xf32>
    %109 = arith.mulf %100, %108 : vector<8x8xf32>
    %cst_41 = arith.constant dense<0.000000e+00> : vector<8x8xf32>
    %110 = tpu.matmul %109, %92, %cst_41 {dimension_numbers = #tpu.dot_dimension_numbers<[1], [0], [0], [1], [0, 0, 1, 1], [], []>} : vector<8x8xf32>, vector<8x8xf32>, vector<8x8xf32> -> vector<8x8xf32>
    %c0_42 = arith.constant 0 : index
    %c16 = arith.constant 16 : index
    %111 = vector.load %arg16[%c0_42, %c16] : memref<8x32xf32, #tpu.memory_space<vmem>>, vector<8x8xf32>
    tpu.vector_store %arg16[%c0_42, %c16], %110 {strides = array<i32>} : memref<8x32xf32, #tpu.memory_space<vmem>>, vector<8x8xf32>,
    %112 = vector.extract_strided_slice %32 {offsets = [0, 24], sizes = [8, 8], strides = [1, 1]} : vector<8x96xf32> to vector<8x8xf32>
    %cst_43 = arith.constant 0.353553385 : f32
    %113 = vector.broadcast %cst_43 : f32 to vector<8x8xf32>
    %114 = arith.mulf %112, %113 : vector<8x8xf32>
    %115 = vector.extract_strided_slice %32 {offsets = [0, 56], sizes = [8, 8], strides = [1, 1]} : vector<8x96xf32> to vector<8x8xf32>
    %116 = vector.extract_strided_slice %32 {offsets = [0, 88], sizes = [8, 8], strides = [1, 1]} : vector<8x96xf32> to vector<8x8xf32>
    %cst_44 = arith.constant dense<0.000000e+00> : vector<8x8xf32>
    %117 = tpu.matmul %114, %115, %cst_44 {dimension_numbers = #tpu.dot_dimension_numbers<[1], [1], [0], [0], [0, 0, 1, 0], [], []>} : vector<8x8xf32>, vector<8x8xf32>, vector<8x8xf32> -> vector<8x8xf32>
    %118 = vector.broadcast %39 : vector<1x8xf32> to vector<8x8xf32>
    %119 = arith.addf %117, %118 : vector<8x8xf32>
    %cst_45 = arith.constant dense<0xFF800000> : vector<8xf32>
    %120 = vector.multi_reduction <maximumf>, %119, %cst_45 [1] : vector<8x8xf32> to vector<8xf32>
    %121 = vector.shape_cast %120 : vector<8xf32> to vector<8x1xf32>
    %122 = vector.broadcast %121 : vector<8x1xf32> to vector<8x8xf32>
    %123 = arith.subf %119, %122 : vector<8x8xf32>
    %124 = math.exp %123 : vector<8x8xf32>
    %cst_46 = arith.constant dense<0.000000e+00> : vector<8xf32>
    %125 = vector.multi_reduction <add>, %124, %cst_46 [1] : vector<8x8xf32> to vector<8xf32>
    %126 = vector.shape_cast %125 : vector<8xf32> to vector<8x1xf32>
    %127 = tpu.reciprocal %126 {approx = true} : vector<8x1xf32> -> vector<8x1xf32>
    %128 = arith.mulf %126, %127 : vector<8x1xf32>
    %cst_47 = arith.constant 2.000000e+00 : f32
    %129 = vector.broadcast %cst_47 : f32 to vector<8x1xf32>
    %130 = arith.subf %129, %128 : vector<8x1xf32>
    %131 = arith.mulf %127, %130 : vector<8x1xf32>
    %132 = vector.broadcast %131 : vector<8x1xf32> to vector<8x8xf32>
    %133 = arith.mulf %124, %132 : vector<8x8xf32>
    %cst_48 = arith.constant dense<0.000000e+00> : vector<8x8xf32>
    %134 = tpu.matmul %133, %116, %cst_48 {dimension_numbers = #tpu.dot_dimension_numbers<[1], [0], [0], [1], [0, 0, 1, 1], [], []>} : vector<8x8xf32>, vector<8x8xf32>, vector<8x8xf32> -> vector<8x8xf32>
    %c0_49 = arith.constant 0 : index
    %c24 = arith.constant 24 : index
    %135 = vector.load %arg16[%c0_49, %c24] : memref<8x32xf32, #tpu.memory_space<vmem>>, vector<8x8xf32>
    tpu.vector_store %arg16[%c0_49, %c24], %134 {strides = array<i32>} : memref<8x32xf32, #tpu.memory_space<vmem>>, vector<8x8xf32>,
    %c0_50 = arith.constant 0 : index
    %c0_51 = arith.constant 0 : index
    %136 = vector.load %arg16[%c0_50, %c0_51] : memref<8x32xf32, #tpu.memory_space<vmem>>, vector<8x32xf32>
    %c0_52 = arith.constant 0 : index
    %c0_53 = arith.constant 0 : index
    %137 = vector.load %arg5[%c0_52, %c0_53] : memref<32x32xf32, #tpu.memory_space<vmem>>, vector<32x32xf32>
    %cst_54 = arith.constant dense<0.000000e+00> : vector<8x32xf32>
    %138 = tpu.matmul %136, %137, %cst_54 {dimension_numbers = #tpu.dot_dimension_numbers<[1], [0], [0], [1], [0, 0, 1, 1], [], []>} : vector<8x32xf32>, vector<32x32xf32>, vector<8x32xf32> -> vector<8x32xf32>
    %c0_55 = arith.constant 0 : index
    %c0_56 = arith.constant 0 : index
    %139 = vector.load %arg6[%c0_55, %c0_56] : memref<1x32xf32, #tpu.memory_space<vmem>>, vector<1x32xf32>
    %140 = vector.broadcast %139 : vector<1x32xf32> to vector<8x32xf32>
    %141 = arith.addf %138, %140 : vector<8x32xf32>
    %142 = arith.addf %0, %141 : vector<8x32xf32>
    %c0_57 = arith.constant 0 : index
    %c0_58 = arith.constant 0 : index
    %143 = vector.load %arg9[%c0_57, %c0_58] : memref<1x32xf32, #tpu.memory_space<vmem>>, vector<1x32xf32>
    %c0_59 = arith.constant 0 : index
    %c0_60 = arith.constant 0 : index
    %144 = vector.load %arg10[%c0_59, %c0_60] : memref<1x32xf32, #tpu.memory_space<vmem>>, vector<1x32xf32>
    %cst_61 = arith.constant dense<0.000000e+00> : vector<8xf32>
    %145 = vector.multi_reduction <add>, %142, %cst_61 [1] : vector<8x32xf32> to vector<8xf32>
    %146 = vector.shape_cast %145 : vector<8xf32> to vector<8x1xf32>
    %cst_62 = arith.constant 3.200000e+01 : f32
    %147 = vector.broadcast %cst_62 : f32 to vector<8x1xf32>
    %148 = arith.divf %146, %147 : vector<8x1xf32>
    %149 = vector.broadcast %148 : vector<8x1xf32> to vector<8x32xf32>
    %150 = arith.subf %142, %149 : vector<8x32xf32>
    %151 = arith.mulf %150, %150 : vector<8x32xf32>
    %cst_63 = arith.constant dense<0.000000e+00> : vector<8xf32>
    %152 = vector.multi_reduction <add>, %151, %cst_63 [1] : vector<8x32xf32> to vector<8xf32>
    %153 = vector.shape_cast %152 : vector<8xf32> to vector<8x1xf32>
    %cst_64 = arith.constant 0.0322580636 : f32
    %154 = vector.broadcast %cst_64 : f32 to vector<8x1xf32>
    %155 = arith.mulf %153, %154 : vector<8x1xf32>
    %156 = math.sqrt %155 : vector<8x1xf32>
    %cst_65 = arith.constant 9.99999997E-7 : f32
    %157 = vector.broadcast %cst_65 : f32 to vector<8x1xf32>
    %158 = arith.addf %156, %157 : vector<8x1xf32>
    %159 = tpu.reciprocal %158 {approx = true} : vector<8x1xf32> -> vector<8x1xf32>
    %160 = arith.mulf %158, %159 : vector<8x1xf32>
    %cst_66 = arith.constant 2.000000e+00 : f32
    %161 = vector.broadcast %cst_66 : f32 to vector<8x1xf32>
    %162 = arith.subf %161, %160 : vector<8x1xf32>
    %163 = arith.mulf %159, %162 : vector<8x1xf32>
    %164 = vector.broadcast %163 : vector<8x1xf32> to vector<8x32xf32>
    %165 = arith.mulf %150, %164 : vector<8x32xf32>
    %166 = vector.broadcast %143 : vector<1x32xf32> to vector<8x32xf32>
    %167 = arith.mulf %166, %165 : vector<8x32xf32>
    %168 = vector.broadcast %144 : vector<1x32xf32> to vector<8x32xf32>
    %169 = arith.addf %167, %168 : vector<8x32xf32>
    %cst_67 = arith.constant 0.000000e+00 : f32
    %170 = vector.broadcast %cst_67 : f32 to vector<8x32xf32>
    %c0_68 = arith.constant 0 : index
    %c0_69 = arith.constant 0 : index
    %171 = vector.load %arg11[%c0_68, %c0_69] : memref<32x2048xf32, #tpu.memory_space<vmem>>, vector<32x512xf32>
    %cst_70 = arith.constant dense<0.000000e+00> : vector<8x512xf32>
    %172 = tpu.matmul %169, %171, %cst_70 {dimension_numbers = #tpu.dot_dimension_numbers<[1], [0], [0], [1], [0, 0, 1, 1], [], []>} : vector<8x32xf32>, vector<32x512xf32>, vector<8x512xf32> -> vector<8x512xf32>
    %c0_71 = arith.constant 0 : index
    %c0_72 = arith.constant 0 : index
    %173 = vector.load %arg12[%c0_71, %c0_72] : memref<1x2048xf32, #tpu.memory_space<vmem>>, vector<1x512xf32>
    %174 = vector.broadcast %173 : vector<1x512xf32> to vector<8x512xf32>
    %175 = arith.addf %172, %174 : vector<8x512xf32>
    %cst_73 = arith.constant 0.000000e+00 : f32
    %176 = vector.broadcast %cst_73 : f32 to vector<8x512xf32>
    %177 = arith.maximumf %175, %176 : vector<8x512xf32>
    %c0_74 = arith.constant 0 : index
    %c0_75 = arith.constant 0 : index
    %178 = vector.load %arg13[%c0_74, %c0_75] : memref<2048x32xf32, #tpu.memory_space<vmem>>, vector<512x32xf32>
    %cst_76 = arith.constant dense<0.000000e+00> : vector<8x32xf32>
    %179 = tpu.matmul %177, %178, %cst_76 {dimension_numbers = #tpu.dot_dimension_numbers<[1], [0], [0], [1], [0, 0, 1, 1], [], []>} : vector<8x512xf32>, vector<512x32xf32>, vector<8x32xf32> -> vector<8x32xf32>
    %180 = arith.addf %170, %179 : vector<8x32xf32>
    %c0_77 = arith.constant 0 : index
    %c512 = arith.constant 512 : index
    %181 = vector.load %arg11[%c0_77, %c512] : memref<32x2048xf32, #tpu.memory_space<vmem>>, vector<32x512xf32>
    %cst_78 = arith.constant dense<0.000000e+00> : vector<8x512xf32>
    %182 = tpu.matmul %169, %181, %cst_78 {dimension_numbers = #tpu.dot_dimension_numbers<[1], [0], [0], [1], [0, 0, 1, 1], [], []>} : vector<8x32xf32>, vector<32x512xf32>, vector<8x512xf32> -> vector<8x512xf32>
    %c0_79 = arith.constant 0 : index
    %c512_80 = arith.constant 512 : index
    %183 = vector.load %arg12[%c0_79, %c512_80] : memref<1x2048xf32, #tpu.memory_space<vmem>>, vector<1x512xf32>
    %184 = vector.broadcast %183 : vector<1x512xf32> to vector<8x512xf32>
    %185 = arith.addf %182, %184 : vector<8x512xf32>
    %cst_81 = arith.constant 0.000000e+00 : f32
    %186 = vector.broadcast %cst_81 : f32 to vector<8x512xf32>
    %187 = arith.maximumf %185, %186 : vector<8x512xf32>
    %c512_82 = arith.constant 512 : index
    %c0_83 = arith.constant 0 : index
    %188 = vector.load %arg13[%c512_82, %c0_83] : memref<2048x32xf32, #tpu.memory_space<vmem>>, vector<512x32xf32>
    %cst_84 = arith.constant dense<0.000000e+00> : vector<8x32xf32>
    %189 = tpu.matmul %187, %188, %cst_84 {dimension_numbers = #tpu.dot_dimension_numbers<[1], [0], [0], [1], [0, 0, 1, 1], [], []>} : vector<8x512xf32>, vector<512x32xf32>, vector<8x32xf32> -> vector<8x32xf32>
    %190 = arith.addf %180, %189 : vector<8x32xf32>
    %c0_85 = arith.constant 0 : index
    %c1024 = arith.constant 1024 : index
    %191 = vector.load %arg11[%c0_85, %c1024] : memref<32x2048xf32, #tpu.memory_space<vmem>>, vector<32x512xf32>
    %cst_86 = arith.constant dense<0.000000e+00> : vector<8x512xf32>
    %192 = tpu.matmul %169, %191, %cst_86 {dimension_numbers = #tpu.dot_dimension_numbers<[1], [0], [0], [1], [0, 0, 1, 1], [], []>} : vector<8x32xf32>, vector<32x512xf32>, vector<8x512xf32> -> vector<8x512xf32>
    %c0_87 = arith.constant 0 : index
    %c1024_88 = arith.constant 1024 : index
    %193 = vector.load %arg12[%c0_87, %c1024_88] : memref<1x2048xf32, #tpu.memory_space<vmem>>, vector<1x512xf32>
    %194 = vector.broadcast %193 : vector<1x512xf32> to vector<8x512xf32>
    %195 = arith.addf %192, %194 : vector<8x512xf32>
    %cst_89 = arith.constant 0.000000e+00 : f32
    %196 = vector.broadcast %cst_89 : f32 to vector<8x512xf32>
    %197 = arith.maximumf %195, %196 : vector<8x512xf32>
    %c1024_90 = arith.constant 1024 : index
    %c0_91 = arith.constant 0 : index
    %198 = vector.load %arg13[%c1024_90, %c0_91] : memref<2048x32xf32, #tpu.memory_space<vmem>>, vector<512x32xf32>
    %cst_92 = arith.constant dense<0.000000e+00> : vector<8x32xf32>
    %199 = tpu.matmul %197, %198, %cst_92 {dimension_numbers = #tpu.dot_dimension_numbers<[1], [0], [0], [1], [0, 0, 1, 1], [], []>} : vector<8x512xf32>, vector<512x32xf32>, vector<8x32xf32> -> vector<8x32xf32>
    %200 = arith.addf %190, %199 : vector<8x32xf32>
    %c0_93 = arith.constant 0 : index
    %c1536 = arith.constant 1536 : index
    %201 = vector.load %arg11[%c0_93, %c1536] : memref<32x2048xf32, #tpu.memory_space<vmem>>, vector<32x512xf32>
    %cst_94 = arith.constant dense<0.000000e+00> : vector<8x512xf32>
    %202 = tpu.matmul %169, %201, %cst_94 {dimension_numbers = #tpu.dot_dimension_numbers<[1], [0], [0], [1], [0, 0, 1, 1], [], []>} : vector<8x32xf32>, vector<32x512xf32>, vector<8x512xf32> -> vector<8x512xf32>
    %c0_95 = arith.constant 0 : index
    %c1536_96 = arith.constant 1536 : index
    %203 = vector.load %arg12[%c0_95, %c1536_96] : memref<1x2048xf32, #tpu.memory_space<vmem>>, vector<1x512xf32>
    %204 = vector.broadcast %203 : vector<1x512xf32> to vector<8x512xf32>
    %205 = arith.addf %202, %204 : vector<8x512xf32>
    %cst_97 = arith.constant 0.000000e+00 : f32
    %206 = vector.broadcast %cst_97 : f32 to vector<8x512xf32>
    %207 = arith.maximumf %205, %206 : vector<8x512xf32>
    %c1536_98 = arith.constant 1536 : index
    %c0_99 = arith.constant 0 : index
    %208 = vector.load %arg13[%c1536_98, %c0_99] : memref<2048x32xf32, #tpu.memory_space<vmem>>, vector<512x32xf32>
    %cst_100 = arith.constant dense<0.000000e+00> : vector<8x32xf32>
    %209 = tpu.matmul %207, %208, %cst_100 {dimension_numbers = #tpu.dot_dimension_numbers<[1], [0], [0], [1], [0, 0, 1, 1], [], []>} : vector<8x512xf32>, vector<512x32xf32>, vector<8x32xf32> -> vector<8x32xf32>
    %210 = arith.addf %200, %209 : vector<8x32xf32>
    %c0_101 = arith.constant 0 : index
    %c0_102 = arith.constant 0 : index
    %211 = vector.load %arg14[%c0_101, %c0_102] : memref<1x32xf32, #tpu.memory_space<vmem>>, vector<1x32xf32>
    %212 = vector.broadcast %211 : vector<1x32xf32> to vector<8x32xf32>
    %213 = arith.addf %210, %212 : vector<8x32xf32>
    %214 = arith.addf %142, %213 : vector<8x32xf32>
    %c0_103 = arith.constant 0 : index
    %c0_104 = arith.constant 0 : index
    %215 = vector.load %arg15[%c0_103, %c0_104] : memref<8x32xf32, #tpu.memory_space<vmem>>, vector<8x32xf32>
    tpu.vector_store %arg15[%c0_103, %c0_104], %214 {strides = array<i32>} : memref<8x32xf32, #tpu.memory_space<vmem>>, vector<8x32xf32>,
    return
  }
  func.func @transform_0(%arg0: i32) -> (i32, i32) {
    %c0_i32 = arith.constant 0 : i32
    %c0_i32_0 = arith.constant 0 : i32
    return %arg0, %c0_i32 : i32, i32
  }
  func.func @transform_1(%arg0: i32) -> (i32, i32, i32) {
    %c0_i32 = arith.constant 0 : i32
    %c0_i32_0 = arith.constant 0 : i32
    %c0_i32_1 = arith.constant 0 : i32
    return %arg0, %c0_i32, %c0_i32_0 : i32, i32, i32
  }
  func.func @transform_2(%arg0: i32) -> (i32, i32) {
    %c0_i32 = arith.constant 0 : i32
    %c0_i32_0 = arith.constant 0 : i32
    %c0_i32_1 = arith.constant 0 : i32
    return %c0_i32, %c0_i32_0 : i32, i32
  }
  func.func @transform_3(%arg0: i32) -> (i32, i32) {
    %c0_i32 = arith.constant 0 : i32
    %c0_i32_0 = arith.constant 0 : i32
    %c0_i32_1 = arith.constant 0 : i32
    return %c0_i32, %c0_i32_0 : i32, i32
  }
  func.func @transform_4(%arg0: i32) -> (i32, i32) {
    %c0_i32 = arith.constant 0 : i32
    %c0_i32_0 = arith.constant 0 : i32
    %c0_i32_1 = arith.constant 0 : i32
    return %c0_i32, %c0_i32_0 : i32, i32
  }
  func.func @transform_5(%arg0: i32) -> (i32, i32) {
    %c0_i32 = arith.constant 0 : i32
    %c0_i32_0 = arith.constant 0 : i32
    %c0_i32_1 = arith.constant 0 : i32
    return %c0_i32, %c0_i32_0 : i32, i32
  }
  func.func @transform_6(%arg0: i32) -> (i32, i32) {
    %c0_i32 = arith.constant 0 : i32
    %c0_i32_0 = arith.constant 0 : i32
    %c0_i32_1 = arith.constant 0 : i32
    return %c0_i32, %c0_i32_0 : i32, i32
  }
  func.func @transform_7(%arg0: i32) -> (i32, i32) {
    %c0_i32 = arith.constant 0 : i32
    %c0_i32_0 = arith.constant 0 : i32
    %c0_i32_1 = arith.constant 0 : i32
    return %c0_i32, %c0_i32_0 : i32, i32
  }
  func.func @transform_8(%arg0: i32) -> (i32, i32) {
    %c0_i32 = arith.constant 0 : i32
    %c0_i32_0 = arith.constant 0 : i32
    %c0_i32_1 = arith.constant 0 : i32
    return %c0_i32, %c0_i32_0 : i32, i32
  }
  func.func @transform_9(%arg0: i32) -> (i32, i32) {
    %c0_i32 = arith.constant 0 : i32
    %c0_i32_0 = arith.constant 0 : i32
    %c0_i32_1 = arith.constant 0 : i32
    return %c0_i32, %c0_i32_0 : i32, i32
  }
  func.func @transform_10(%arg0: i32) -> (i32, i32) {
    %c0_i32 = arith.constant 0 : i32
    %c0_i32_0 = arith.constant 0 : i32
    %c0_i32_1 = arith.constant 0 : i32
    return %c0_i32, %c0_i32_0 : i32, i32
  }
  func.func @transform_11(%arg0: i32) -> (i32, i32) {
    %c0_i32 = arith.constant 0 : i32
    %c0_i32_0 = arith.constant 0 : i32
    %c0_i32_1 = arith.constant 0 : i32
    return %c0_i32, %c0_i32_0 : i32, i32
  }
  func.func @transform_12(%arg0: i32) -> (i32, i32) {
    %c0_i32 = arith.constant 0 : i32
    %c0_i32_0 = arith.constant 0 : i32
    %c0_i32_1 = arith.constant 0 : i32
    return %c0_i32, %c0_i32_0 : i32, i32
  }
  func.func @transform_13(%arg0: i32) -> (i32, i32) {
    %c0_i32 = arith.constant 0 : i32
    %c0_i32_0 = arith.constant 0 : i32
    %c0_i32_1 = arith.constant 0 : i32
    return %c0_i32, %c0_i32_0 : i32, i32
  }
  func.func @transform_14(%arg0: i32) -> (i32, i32) {
    %c0_i32 = arith.constant 0 : i32
    %c0_i32_0 = arith.constant 0 : i32
    return %arg0, %c0_i32 : i32, i32
  }
}

</mosaic_0001>

<bundles_post_ra>
// kernel: tpu_custom_call.1
= control target key start
LH: loop header
LB: loop body
LE: loop exit
PB: predicated region body
PF: predicated region fallthrough
CT: control target
= control target key end

     0   :  { %s5344_s0 = inlined_call_operand.vmem [shape: f32[16,32], index: 0, kind: input, shape index: {}]   ;;  %s5345_s1 = inlined_call_operand.vmem [shape: f32[2,1,8], index: 1, kind: input, shape index: {}]   ;;  %s5346_s2 = inlined_call_operand.vmem [shape: f32[32,96], index: 2, kind: input, shape index: {}]   ;;  %s5347_s3 = inlined_call_operand.vmem [shape: f32[1,96], index: 3, kind: input, shape index: {}]   ;;  %s5348_s4 = inlined_call_operand.vmem [shape: f32[32,32], index: 4, kind: input, shape index: {}]   ;;  %s5349_s5 = inlined_call_operand.vmem [shape: f32[1,32], index: 5, kind: input, shape index: {}]   ;;  %s5350_s6 = inlined_call_operand.vmem [shape: f32[1,32], index: 6, kind: input, shape index: {}]   ;;  %s5351_s7 = inlined_call_operand.vmem [shape: f32[1,32], index: 7, kind: input, shape index: {}]   ;;  %s5352_s8 = inlined_call_operand.vmem [shape: f32[1,32], index: 8, kind: input, shape index: {}]   ;;  %s5353_s9 = inlined_call_operand.vmem [shape: f32[1,32], index: 9, kind: input, shape index: {}]   ;;  %s5354_s10 = inlined_call_operand.vmem [shape: f32[32,2048], index: 10, kind: input, shape index: {}]   ;;  %s5355_s11 = inlined_call_operand.vmem [shape: f32[1,2048], index: 11, kind: input, shape index: {}]   ;;  %s5356_s12 = inlined_call_operand.vmem [shape: f32[2048,32], index: 12, kind: input, shape index: {}]   ;;  %s5357_s13 = inlined_call_operand.vmem [shape: f32[1,32], index: 13, kind: input, shape index: {}]   ;;  %s5358_s14 = inlined_call_operand.hbm [shape: f32[16,32], index: 14, kind: output, shape index: {}]  }
   0x1   :  { %5359 = sst [smem:[#allocation7_spill]] %s5344_s0 }
   0x2   :  { %5360 = sst [smem:[#allocation8_spill]] %s5345_s1 }
   0x3   :  { %5361 = sst [smem:[#allocation9_spill]] %s5346_s2 }
   0x4   :  { %5362 = sst [smem:[#allocation10_spill]] %s5347_s3 }
   0x5   :  { %19 = vsyncpa [#allocation4], 0 }
   0x6   :  { %21 = vsyncpa [#allocation4 + $0x1], 0  ;;  %s4055_s29 = smov 0   ;;  %s4057_s30 = smov 0  }
   0x7   :  { %s4059_s15 = smov 0   ;;  %s4061_s16 = smov 0  }
   0x8 LB: > { %s4076_s17 = sadd.s32 4294967295, %s3960_s16   ;;  %s3079_s18 = sadd.s32 4294967294, %s3960_s16   ;;  %s3960_s16 = sphi %s4061_s16, %s5374_s16   ;;  %s3956_s15 = sphi %s4059_s15, %s5373_s15   ;;  %s3952_s30 = sphi %s4057_s30, %s5372_s30   ;;  %s3948_s29 = sphi %s4055_s29, %s5371_s29  }
   0x9   : > { %s4080_s19 = sadd.s32 1, %s3960_s16   ;;  %s338_s20 = sadd.s32 1, %s3956_s15 }
   0xa   : > { %s335_s21 = ssub.s32 %s3960_s16, %s4080_s19  ;;  %p348_p0 = scmp.ne.s32.totalorder %s3956_s15, %s3952_s30 }
   0xb   : > { %p336_p1 = scmp.eq.s32.totalorder %s335_s21, 0  ;;  %p349_p2 = scmp.eq.s32.totalorder %s4076_s17, 1 }
   0xc   : > { %p354_p3 = scmp.ne.s32.totalorder %s3952_s30, %s3948_s29  ;;  %p355_p4 = scmp.eq.s32.totalorder %s3079_s18, 1 }
   0xd   : > { %s4091_s22 = scalar_select %p336_p1, %s3956_s15, %s338_s20  }
   0xe   : > { %p4093_p5 = por %p349_p2, %p348_p0  ;;  %p4097_p6 = por %p355_p4, %p354_p3 }
   0xf   : > { %5363 = sst [smem:[#allocation6_spill]] %s4091_s22  ;;  %p3082_p7 = scmp.ge.s32.totalorder %s3960_s16, 1 }
  0x10   : > { %p422_p8 = scmp.lt.s32.totalorder %s3960_s16, 3 }
  0x12   : > { %p423_p9 = pnand %p3082_p7, %p422_p8 }
  0x13   : > { %p470_p10 = scmp.lt.s32.totalorder (!%p423_p9), %s4076_s17, 1  ;;  %v3962_v0 = vmov (!%p423_p9), 0.0   ;;  %vm480_vm0 = vcmask (!%p423_p9), 261120   ;;  %s5366_s0 = sld [smem:[#allocation7_spill]] (!%p423_p9)  ;;  %v3963_v11 = vmov (!%p423_p9), 0.0|0.0   ;;  %vm3964_vm1 = vmmov (!%p423_p9), 0  }
  0x14   : > { %426 = sbr.rel (%p423_p9) target bundleno = 3611 (0xe1b), region = 76  ;;  %3435 = vmatprep.subr.mxu1 (!%p423_p9), %v3962_v0  ;;  %s5367_s2 = sld [smem:[#allocation9_spill]] (!%p423_p9)  ;;  %3486 = vmatprep.subr.bf16.mxu0 (!%p423_p9), %v3963_v11  ;;  %v3085_v27 = vld [vmem:[%s5350_s6] ss:$0 sm:$0xff] (!%p423_p9)  ;;  %vm616_vm4 = vcmask (!%p423_p9), 64512   ;;  %v608_v39 = vlaneseq (!%p423_p9)  ;;  %vm955_vm6 = vcmask (!%p423_p9), 130112  }
  0x15   : > { %3432 = vmatprep.mubr.msk.f32.mxu0 (!%p423_p9), %vm3964_vm1, %v3962_v0  ;;  %3437 = vmatprep.mubr.msk.f32.mxu1 (!%p423_p9), %vm3964_vm1, %v3962_v0  ;;  %v3086_v29 = vld [vmem:[%s5351_s7] ss:$0 sm:$0xff] (!%p423_p9)  ;;  %s5368_s3 = sld [smem:[#allocation10_spill]] (!%p423_p9)  ;;  %s3965_s28 = smov (!%p423_p9), 64   ;;  %vm1129_vm7 = vcmask (!%p423_p9), 195712   ;;  %vm1303_vm8 = vcmask (!%p423_p9), 261312  }
  0x16   : > { %s5369_s1 = sld [smem:[#allocation8_spill]] (!%p423_p9)  ;;  %v4164_v41 = vshrl.u32 (!%p423_p9), %v608_v39, 7  ;;  %s3968_s21 = smov (!%p423_p9), 88  }
  0x17   : > { %s3969_s27 = smov (!%p423_p9), 120   ;;  %s3974_s22 = smov (!%p423_p9), 40  }
  0x18   : > { %v4167_v42 = vsub.s32 (!%p423_p9), 0, %v4164_v41 }
  0x1a   : > { %v519_v8 = vld [vmem:[%s5367_s2] sm:$0xff] (!%p423_p9)  ;;  %v520_v9 = vld [vmem:[%s5367_s2 + $0x8] sm:$0xff] (!%p423_p9)  ;;  %v521_v10 = vld [vmem:[%s5367_s2 + $0x10] sm:$0xff] (!%p423_p9) }
  0x1b   : > { %s4106_s25 = scalar_select %p470_p10, %s4076_s17, 1  ;;  %v3487_v12 = vpack.c.bf16 %v520_v9, %v519_v8  ;;  %v522_v13 = vld [vmem:[%s5367_s2 + $0x18] sm:$0xff]  ;;  %v3087_v32 = vld [vmem:[%s5368_s3] ss:$0 sm:$0xff] }
  0x1c   : > { %v3490_v14 = vpack.c.bf16 %v522_v13, %v521_v10 }
  0x1d   : > { %s3084_s26 = sshll.u32 %s4106_s25, 3  ;;  %3488 = vmatpush3.bf16.msra.mxu0 %v3487_v12  ;;  %s476_s20 = scalar_lea.vmem %s5369_s1, %s4106_s25 }
  0x1e   : > { %s473_s18 = scalar_lea.vmem %s5366_s0, %s3084_s26  ;;  %3489 = vmatprep.subr.bf16.mxu0 %v3963_v11  ;;  %v603_v40 = vld [vmem:[%s476_s20] sm:$0x1]  ;;  %s3967_s25 = smov 80  }
  0x1f   : > { %v4112_v1 = vld [vmem:[%s473_s18] sm:$0xff]  ;;  %s3966_s18 = smov 96   ;;  %vm604_vm5 = vcmp.eq.f32.partialorder %v603_v40, 0.0  ;;  %s3970_s26 = smov 112  }
  0x20   : > { %v481_v2 = vsel %vm480_vm0, %v4112_v1, 0.0  ;;  %v605_v43 = vsel %vm604_vm5, -1e+09, %v3962_v0  ;;  %s3973_s0 = smov 48   ;;  %s3975_s20 = smov 56  }
  0x21   : > { %482 = vadd.xlane.f32.xlu0 %v481_v2  ;;  %3491 = vmatpush3.bf16.msra.mxu0 %v3490_v14  ;;  %v4171_v44 = vrot.slane %v605_v43, %v4167_v42 }
  0x22   : > { %3455 = vmatprep.subr.mxu0 %v3962_v0 }
  0xae   : > { %v483_v3 = vpop.xlane.xlu0 %482 }
  0xaf   : > { %v485_v4 = vmul.f32 0.03125, %v483_v3 }
  0xb1   : > { %v486_v5 = vsub.f32 %v4112_v1, %v485_v4 }
  0xb3   : > { %v487_v6 = vmul.f32 %v486_v5, %v486_v5 }
  0xb5   : > { %v488_v7 = vsel %vm480_vm0, %v487_v6, 0.0 }
  0xb6   : > { %489 = vadd.xlane.f32.xlu0 %v488_v7 }
 0x143   : > { %v490_v15 = vpop.xlane.xlu0 %489 }
 0x144   : > { %v491_v16 = vmul.f32 0.032258064, %v490_v15 }
 0x146   : > { %3874 = vrsqrt.f32 %v491_v16  ;;  %vm494_vm2 = vcmp.eq.f32.partialorder %v491_v16, inf  ;;  %v497_v19 = vand.u32 2147483648, %v491_v16  ;;  %vm496_vm3 = vcmp.eq.f32.partialorder %v491_v16, 0.0 }
 0x150   : > { %v3875_v17 = vpop.eup %3874 }
 0x151   : > { %v493_v18 = vmul.f32 %v3875_v17, %v491_v16 }
 0x153   : > { %v495_v20 = vsel %vm494_vm2, %v491_v16, %v493_v18 }
 0x154   : > { %v498_v21 = vsel %vm496_vm3, %v497_v19, %v495_v20 }
 0x155   : > { %v499_v22 = vadd.f32 1e-06, %v498_v21 }
 0x157   : > { %3876 = vrcp.f32 %v499_v22 }
 0x161   : > { %v3877_v23 = vpop.eup %3876 }
 0x162   : > { %v501_v24 = vmul.f32 %v3877_v23, %v499_v22 }
 0x164   : > { %v502_v25 = vsub.f32 2.0, %v501_v24 }
 0x166   : > { %v503_v26 = vmul.f32 %v3877_v23, %v502_v25 }
 0x168   : > { %v504_v28 = vmul.f32 %v503_v26, %v486_v5 }
 0x16a   : > { %v511_v30 = vmul.f32 %v3085_v27, %v504_v28 }
 0x16c   : > { %v518_v31 = vadd.f32 %v3086_v29, %v511_v30 }
 0x16e   : > { %3433 = vmatmul.mubr.msk.f32.vlgmr.msra.gmra.mrb[0].mxu0 %vm480_vm0, %v518_v31 }
 0x16f   : > { %3457 = vmatprep.mubr.msk.f32.mxu0 %vm3964_vm1, %v3962_v0 }
 0x241   : > { %v599_v33 = vpop.f32.mrb[0].mxu0 }
 0x242   : > { %v4149_v34 = vadd.f32 %v3087_v32, %v599_v33  ;;  %v3434_v35 = vpop.f32.mrb[1].mxu0 }
 0x244   : > { %706 = vrot.lane.b32.xlu0 %v4149_v34, %s3965_s28  ;;  %614 = vrot.lane.b32.xlu1 %v4149_v34, %s3966_s18  ;;  %v606_v37 = vmul.f32 0.35355338, %v4149_v34  ;;  %s3971_s28 = smov 72   ;;  %s3972_s18 = smov 104  }
 0x2b6   : > { %v615_v36 = vpop.permute.xlu1 %614  ;;  %v707_v38 = vpop.permute.xlu0 %706 }
 0x2b7   : > { %3436 = vmatpush3.xpose.msk.msra.mxu1 %vm616_vm4, %v615_v36 }
 0x2b8   : > { %3440 = vmatprep.subr.mxu1 %v3962_v0 }
 0x2ba   : > { %3438 = vmatmul.mubr.msk.f32.vlgmr.msra.gmra.mrb[0].mxu1 %vm616_vm4, %v606_v37 }
 0x2bb   : > { %3441 = vmatpush3.msra.mxu1 %v707_v38  ;;  %3442 = vmatprep.mubr.msk.f32.mxu1 %vm3964_vm1, %v3962_v0 }
 0x2bc   : > { %3445 = vmatprep.subr.mxu1 %v3962_v0 }
 0x38d   : > { %v688_v45 = vpop.f32.mrb[0].mxu1 }
 0x38e   : > { %v689_v46 = vadd.f32 %v688_v45, %v4171_v44  ;;  %v3439_v47 = vpop.f32.mrb[1].mxu1 }
 0x390   : > { %v692_v48 = vsel %vm616_vm4, %v689_v46, -inf }
 0x391   : > { %693 = vmax.xlane.f32.xlu1 %v692_v48 }
 0x3a2   : > { %959 = vrot.lane.b32.xlu1 %v4149_v34, %s3967_s25  ;;  %s3977_s25 = smov 16  }
 0x41e   : > { %v694_v49 = vpop.xlane.xlu1 %693 }
 0x41f   : > { %v695_v50 = vsub.f32 %v689_v46, %v694_v49 }
 0x421   : > { %v696_v51 = vmul.f32 1.442695, %v695_v50 }
 0x422   : > { %v960_v52 = vpop.permute.xlu1 %959 }
 0x423   : > { %3878 = vpow2.f32 %v696_v51  ;;  %3456 = vmatpush3.xpose.msk.msra.mxu0 %vm616_vm4, %v960_v52 }
 0x424   : > { %3465 = vmatprep.subr.mxu0 %v3962_v0 }
 0x42d   : > { %v3879_v53 = vpop.eup %3878 }
 0x42e   : > { %v698_v54 = vsel %vm616_vm4, %v3879_v53, 0.0 }
 0x42f   : > { %699 = vadd.xlane.f32.xlu0 %v698_v54 }
 0x445   : > { %785 = vrot.lane.b32.xlu0 %v4149_v34, %s3968_s21  ;;  %s3978_s21 = smov 24  }
 0x449   : > { %783 = vrot.lane.b32.xlu0 %v606_v37, %s3969_s27 }
 0x44d   : > { %957 = vrot.lane.b32.xlu0 %v606_v37, %s3970_s26 }
 0x451   : > { %1133 = vrot.lane.b32.xlu0 %v4149_v34, %s3971_s28  ;;  %s3115_s28 = sshll.u32 %s4076_s17, 7  ;;  %s3979_s17 = smov [#allocation3]  }
 0x452   : > { %s5301_s1 = scalar_lea.hbm %s5358_s14, %s3115_s28 }
 0x455   : > { %1131 = vrot.lane.b32.xlu0 %v606_v37, %s3972_s18 }
 0x4bc   : > { %v700_v55 = vpop.xlane.xlu0 %699 }
 0x4bd   : > { %3880 = vrcp.f32 %v700_v55 }
 0x4c0   : > { %v786_v56 = vpop.permute.xlu0 %785 }
 0x4c4   : > { %v784_v57 = vpop.permute.xlu0 %783 }
 0x4c7   : > { %v3881_v58 = vpop.eup %3880 }
 0x4c8   : > { %v702_v59 = vmul.f32 %v3881_v58, %v700_v55  ;;  %v958_v60 = vpop.permute.xlu0 %957 }
 0x4c9   : > { %3458 = vmatmul.mubr.msk.f32.vlgmr.msra.gmra.mrb[2].mxu0 %vm616_vm4, %v958_v60  ;;  %v1308_v60 = vld [vmem:[%s5348_s4 + $0x10] sm:$0xff] }
 0x4ca   : > { %v703_v61 = vsub.f32 2.0, %v702_v59  ;;  %3467 = vmatprep.mubr.msk.f32.mxu0 %vm3964_vm1, %v3962_v0 }
 0x4cc   : > { %v704_v62 = vmul.f32 %v3881_v58, %v703_v61  ;;  %v1134_v63 = vpop.permute.xlu0 %1133  ;;  %v1307_v58 = vld [vmem:[%s5348_s4 + $0x8] sm:$0xff]  ;;  %v1309_v61 = vld [vmem:[%s5348_s4 + $0x18] sm:$0xff] }
 0x4cd   : > { %3466 = vmatpush3.xpose.msk.msra.mxu0 %vm616_vm4, %v1134_v63 }
 0x4ce   : > { %v705_v2 = vmul.f32 %v3879_v53, %v704_v62  ;;  %3492 = vmatprep.subr.bf16.mxu0 %v3963_v11  ;;  %v3496_v62 = vpack.c.bf16 %v1309_v61, %v1308_v60 }
 0x4d0   : > { %3443 = vmatmul.mubr.msk.f32.vlgmr.msra.gmra.mrb[2].mxu1 %vm616_vm4, %v705_v2  ;;  %v1132_v3 = vpop.permute.xlu0 %1131 }
 0x4d1   : > { %3446 = vmatpush3.xpose.msk.msra.mxu1 %vm616_vm4, %v786_v56  ;;  %3468 = vmatmul.mubr.msk.f32.vlgmr.msra.gmra.mrb[4].mxu0 %vm616_vm4, %v1132_v3 }
 0x4d2   : > { %3447 = vmatprep.mubr.msk.f32.mxu1 %vm3964_vm1, %v3962_v0  ;;  %3450 = vmatprep.subr.mxu1 %v3962_v0 }
 0x4d3   : > { %3483 = vmatprep.mubr.msk.f32.mxu0 %vm3964_vm1, %v3962_v0 }
 0x4d4   : > { %3448 = vmatmul.mubr.msk.f32.vlgmr.msra.gmra.mrb[4].mxu1 %vm616_vm4, %v784_v57  ;;  %v1306_v57 = vld [vmem:[%s5348_s4] sm:$0xff] }
 0x4d5   : > { %3452 = vmatprep.mubr.msk.f32.mxu1 %vm3964_vm1, %v3962_v0  ;;  %v3493_v59 = vpack.c.bf16 %v1307_v58, %v1306_v57 }
 0x4d7   : > { %3494 = vmatpush3.bf16.msra.mxu0 %v3493_v59 }
 0x4d8   : > { %3495 = vmatprep.subr.bf16.mxu0 %v3963_v11 }
 0x4db   : > { %3497 = vmatpush3.bf16.msra.mxu0 %v3496_v62 }
 0x59c   : > { %v1031_v4 = vpop.f32.mrb[2].mxu0 }
 0x59d   : > { %v1032_v5 = vadd.f32 %v1031_v4, %v4171_v44  ;;  %v3459_v6 = vpop.f32.mrb[3].mxu0 }
 0x59f   : > { %v1035_v7 = vsel %vm616_vm4, %v1032_v5, -inf }
 0x5a0   : > { %1036 = vmax.xlane.f32.xlu1 %v1035_v7 }
 0x5a3   : > { %v778_v8 = vpop.f32.mrb[2].mxu1 }
 0x5a4   : > { %782 = vst.msk [vmem:[#allocation2] sm:$0xff] %vm616_vm4, %v778_v8  ;;  %v3444_v9 = vpop.f32.mrb[3].mxu1  ;;  %v1205_v10 = vpop.f32.mrb[4].mxu0 }
 0x5a5   : > { %v3469_v12 = vpop.f32.mrb[5].mxu0  ;;  %v1206_v16 = vadd.f32 %v1205_v10, %v4171_v44  ;;  %v3101_v10 = vld [vmem:[%s5349_s5] ss:$0 sm:$0xff] }
 0x5a7   : > { %v857_v13 = vpop.f32.mrb[4].mxu1  ;;  %v1209_v18 = vsel %vm616_vm4, %v1206_v16, -inf }
 0x5a8   : > { %v858_v14 = vadd.f32 %v857_v13, %v4171_v44  ;;  %v3449_v15 = vpop.f32.mrb[5].mxu1 }
 0x5aa   : > { %v861_v17 = vsel %vm616_vm4, %v858_v14, -inf }
 0x5ab   : > { %862 = vmax.xlane.f32.xlu0 %v861_v17 }
 0x5af   : > { %1210 = vmax.xlane.f32.xlu0 %v1209_v18 }
 0x62d   : > { %v1037_v19 = vpop.xlane.xlu1 %1036 }
 0x62e   : > { %v1038_v20 = vsub.f32 %v1032_v5, %v1037_v19 }
 0x630   : > { %v1039_v23 = vmul.f32 1.442695, %v1038_v20 }
 0x638   : > { %v863_v21 = vpop.xlane.xlu0 %862 }
 0x639   : > { %v864_v22 = vsub.f32 %v858_v14, %v863_v21 }
 0x63b   : > { %v865_v24 = vmul.f32 1.442695, %v864_v22  ;;  %v1435_v22 = vld [vmem:[%s5354_s10 + $0x88] sm:$0xff] }
 0x63c   : > { %v1211_v25 = vpop.xlane.xlu0 %1210 }
 0x63d   : > { %3882 = vpow2.f32 %v865_v24  ;;  %v1212_v26 = vsub.f32 %v1206_v16, %v1211_v25  ;;  %v1437_v25 = vld [vmem:[%s5354_s10 + $0x98] sm:$0xff] }
 0x63e   : > { %3884 = vpow2.f32 %v1039_v23  ;;  %v1433_v23 = vld [vmem:[%s5354_s10 + $0x18] sm:$0xff] }
 0x63f   : > { %v1213_v27 = vmul.f32 1.442695, %v1212_v26  ;;  %v1430_v26 = vld [vmem:[%s5354_s10] sm:$0xff] }
 0x641   : > { %3886 = vpow2.f32 %v1213_v27  ;;  %v1434_v27 = vld [vmem:[%s5354_s10 + $0x80] sm:$0xff] }
 0x647   : > { %v3883_v28 = vpop.eup %3882 }
 0x648   : > { %v867_v29 = vsel %vm616_vm4, %v3883_v28, 0.0  ;;  %v3885_v30 = vpop.eup %3884 }
 0x649   : > { %868 = vadd.xlane.f32.xlu0 %v867_v29  ;;  %v1041_v32 = vsel %vm616_vm4, %v3885_v30, 0.0  ;;  %v3500_v29 = vpack.c.bf16 %v1434_v27, %v1430_v26  ;;  %v1913_v26 = vld [vmem:[%s5356_s12 + $0x380] sm:$0xff]  ;;  %v1914_v27 = vld [vmem:[%s5356_s12 + $0x388] sm:$0xff] }
 0x64b   : > { %v3887_v31 = vpop.eup %3886 }
 0x64c   : > { %v1215_v33 = vsel %vm616_vm4, %v3887_v31, 0.0 }
 0x64d   : > { %1042 = vadd.xlane.f32.xlu0 %v1041_v32  ;;  %1216 = vadd.xlane.f32.xlu1 %v1215_v33  ;;  %v1439_v33 = vld [vmem:[%s5354_s10 + $0x108] sm:$0xff] }
 0x65e   : > { %1049 = vrot.lane.b32.xlu1 %v4149_v34, %s3973_s0 }
 0x662   : > { %1223 = vrot.lane.b32.xlu1 %v4149_v34, %s3974_s22 }
 0x663   : > { %875 = vrot.lane.b32.xlu0 %v4149_v34, %s3975_s20  ;;  %s3976_s20 = smov 8  }
 0x6d6   : > { %v869_v35 = vpop.xlane.xlu0 %868 }
 0x6d7   : > { %3888 = vrcp.f32 %v869_v35 }
 0x6da   : > { %v1217_v36 = vpop.xlane.xlu1 %1216  ;;  %v1043_v37 = vpop.xlane.xlu0 %1042 }
 0x6db   : > { %3890 = vrcp.f32 %v1217_v36 }
 0x6dc   : > { %3892 = vrcp.f32 %v1043_v37 }
 0x6de   : > { %v876_v38 = vpop.permute.xlu0 %875  ;;  %v1050_v51 = vpop.permute.xlu1 %1049 }
 0x6df   : > { %3451 = vmatpush3.msra.mxu1 %v876_v38  ;;  %v1445_v38 = vld [vmem:[%s5354_s10 + $0x198] sm:$0xff] }
 0x6e0   : > { %3460 = vmatprep.subr.mxu1 %v3962_v0 }
 0x6e1   : > { %v3889_v39 = vpop.eup %3888 }
 0x6e2   : > { %v871_v40 = vmul.f32 %v3889_v39, %v869_v35  ;;  %v1224_v55 = vpop.permute.xlu1 %1223  ;;  %v1443_v35 = vld [vmem:[%s5354_s10 + $0x188] sm:$0xff] }
 0x6e4   : > { %v872_v43 = vsub.f32 2.0, %v871_v40  ;;  %v1442_v40 = vld [vmem:[%s5354_s10 + $0x180] sm:$0xff] }
 0x6e5   : > { %v3891_v44 = vpop.eup %3890 }
 0x6e6   : > { %v3893_v45 = vpop.eup %3892  ;;  %v873_v46 = vmul.f32 %v3889_v39, %v872_v43  ;;  %v1219_v47 = vmul.f32 %v3891_v44, %v1217_v36  ;;  %v1441_v36 = vld [vmem:[%s5354_s10 + $0x118] sm:$0xff]  ;;  %v1438_v39 = vld [vmem:[%s5354_s10 + $0x100] sm:$0xff] }
 0x6e7   : > { %v1045_v48 = vmul.f32 %v3893_v45, %v1043_v37  ;;  %v3502_v37 = vpack.c.bf16 %v1443_v35, %v1439_v33  ;;  %v3510_v43 = vpack.c.bf16 %v1445_v38, %v1441_v36  ;;  %v3562_v33 = vpack.c.bf16 %v1914_v27, %v1913_v26  ;;  %v1897_v35 = vld [vmem:[%s5356_s12 + $0x300] sm:$0xff]  ;;  %v1898_v36 = vld [vmem:[%s5356_s12 + $0x308] sm:$0xff]  ;;  %v1884_v38 = vld [vmem:[%s5356_s12 + $0x298] sm:$0xff] }
 0x6e8   : > { %v874_v49 = vmul.f32 %v3883_v28, %v873_v46  ;;  %v1220_v34 = vsub.f32 2.0, %v1219_v47  ;;  %v3506_v28 = vpack.c.bf16 %v1437_v25, %v1433_v23  ;;  %v1444_v46 = vld [vmem:[%s5354_s10 + $0x190] sm:$0xff]  ;;  %v1882_v25 = vld [vmem:[%s5356_s12 + $0x288] sm:$0xff] }
 0x6e9   : > { %v1046_v50 = vsub.f32 2.0, %v1045_v48  ;;  %v1682_v48 = vld [vmem:[%s5354_s10 + $0x28] sm:$0xff]  ;;  %v1695_v23 = vld [vmem:[%s5354_s10 + $0x1b0] sm:$0xff] }
 0x6ea   : > { %3453 = vmatmul.mubr.msk.f32.vlgmr.msra.gmra.mrb[6].mxu1 %vm616_vm4, %v874_v49  ;;  %v1221_v53 = vmul.f32 %v3891_v44, %v1220_v34  ;;  %3507 = vmatprep.subr.bf16.mxu0 %v3506_v28  ;;  %v3504_v44 = vpack.c.bf16 %v1442_v40, %v1438_v39  ;;  %v1686_v49 = vld [vmem:[%s5354_s10 + $0xa8] sm:$0xff]  ;;  %v1684_v34 = vld [vmem:[%s5354_s10 + $0x38] sm:$0xff]  ;;  %v1915_v39 = vld [vmem:[%s5356_s12 + $0x390] sm:$0xff] }
 0x6eb   : > { %v1047_v52 = vmul.f32 %v3893_v45, %v1046_v50  ;;  %3461 = vmatpush3.msra.mxu1 %v1050_v51  ;;  %3462 = vmatprep.mubr.msk.f32.mxu1 %vm3964_vm1, %v3962_v0  ;;  %v1440_v45 = vld [vmem:[%s5354_s10 + $0x110] sm:$0xff]  ;;  %v3514_v50 = vpack.c.bf16 %v1686_v49, %v1682_v48  ;;  %v1688_v51 = vld [vmem:[%s5354_s10 + $0xb8] sm:$0xff] }
 0x6ec   : > { %3470 = vmatprep.subr.mxu1 %v3962_v0  ;;  %v1222_v56 = vmul.f32 %v3887_v31, %v1221_v53  ;;  %v1436_v31 = vld [vmem:[%s5354_s10 + $0x90] sm:$0xff]  ;;  %v3512_v47 = vpack.c.bf16 %v1444_v46, %v1440_v45  ;;  %v1916_v40 = vld [vmem:[%s5356_s12 + $0x398] sm:$0xff] }
 0x6ed   : > { %v1048_v54 = vmul.f32 %v3885_v30, %v1047_v52  ;;  %v1432_v30 = vld [vmem:[%s5354_s10 + $0x10] sm:$0xff]  ;;  %v3522_v52 = vpack.c.bf16 %v1688_v51, %v1684_v34  ;;  %v1868_v46 = vld [vmem:[%s5356_s12 + $0x218] sm:$0xff]  ;;  %v3566_v48 = vpack.c.bf16 %v1916_v40, %v1915_v39  ;;  %v1886_v51 = vld [vmem:[%s5356_s12 + $0x2a8] sm:$0xff] }
 0x6ee   : > { %v3508_v32 = vpack.c.bf16 %v1436_v31, %v1432_v30  ;;  %v1865_v30 = vld [vmem:[%s5356_s12 + $0x200] sm:$0xff]  ;;  %v1866_v31 = vld [vmem:[%s5356_s12 + $0x208] sm:$0xff]  ;;  %v1867_v45 = vld [vmem:[%s5356_s12 + $0x210] sm:$0xff] }
 0x6ef   : > { %3463 = vmatmul.mubr.msk.f32.vlgmr.msra.gmra.mrb[8].mxu1 %vm616_vm4, %v1048_v54  ;;  %v1899_v49 = vld [vmem:[%s5356_s12 + $0x310] sm:$0xff]  ;;  %v1900_v34 = vld [vmem:[%s5356_s12 + $0x318] sm:$0xff]  ;;  %v1893_v40 = vld [vmem:[%s5356_s12 + $0x2e0] sm:$0xff] }
 0x6f0   : > { %3471 = vmatpush3.msra.mxu1 %v1224_v55  ;;  %3472 = vmatprep.mubr.msk.f32.mxu1 %vm3964_vm1, %v3962_v0  ;;  %v1891_v27 = vld [vmem:[%s5356_s12 + $0x2d0] sm:$0xff] }
 0x6f3   : > { %3473 = vmatmul.mubr.msk.f32.vlgmr.msra.gmra.mrb[10].mxu1 %vm616_vm4, %v1222_v56 }
 0x6f4   : > { %1535 = vmatprep.mubr.f32.mxu1 %v3962_v0 }
 0x7bd   : > { %v947_v63 = vpop.f32.mrb[6].mxu1 }
 0x7be   : > { %952 = vrot.lane.b32.xlu1 %v947_v63, %s3976_s20  ;;  %v3454_v2 = vpop.f32.mrb[7].mxu1 }
 0x7bf   : > { %v3103_v2 = vld [vmem:[%s5352_s8] ss:$0 sm:$0xff] }
 0x7c2   : > { %v1121_v3 = vpop.f32.mrb[8].mxu1 }
 0x7c3   : > { %1126 = vrot.lane.b32.xlu0 %v1121_v3, %s3977_s25  ;;  %v3464_v4 = vpop.f32.mrb[9].mxu1 }
 0x7c4   : > { %v3104_v4 = vld [vmem:[%s5353_s9] ss:$0 sm:$0xff] }
 0x7c6   : > { %v1295_v5 = vpop.f32.mrb[10].mxu1 }
 0x7c7   : > { %1300 = vrot.lane.b32.xlu1 %v1295_v5, %s3978_s21  ;;  %v3474_v6 = vpop.f32.mrb[11].mxu1  ;;  %v1681_v5 = vld [vmem:[%s5354_s10 + $0x20] sm:$0xff]  ;;  %s467_s21 = sand.u32 1, %s3952_s30  }
 0x7c8   : > { %v1685_v6 = vld [vmem:[%s5354_s10 + $0xa0] sm:$0xff]  ;;  %s3083_s27 = sshll.u32 %s467_s21, 3  ;;  %s2998_s25 = scalar_lea.sflag [#allocation4], %s467_s21 }
 0x7c9   : > { %s469_s18 = scalar_lea.vmem [#allocation3], %s3083_s27  ;;  %s3902_s27 = sshll.u32 %s3979_s17, 4  ;;  %s3903_s27 = int_to_ptr.vmem [resolvable:$false] %s3902_s27 }
 0x7ca   : > { %s3011_s0 = sshll.u32 %s469_s18, 4  ;;  %s3904_s3 = scalar_lea.vmem %s3903_s27, 256  ;;  %s5303_s0 = int_to_ptr.vmem [resolvable:$true] %s3011_s0 }
 0x7cb   : > { %s3898_s2 = scalar_lea.vmem %s5303_s0, 128  ;;  %p3905_p0 = scmp.lt.s32.totalorder %s5303_s0, %s3903_s27 }
 0x7cc   : > { %p3899_p11 = scmp.ne.s32.totalorder %s5303_s0, %s3898_s2  ;;  %p3906_p1 = scmp.lt.s32.totalorder %s3904_s3, %s3898_s2 }
 0x7ce   : > { %p3900_p12 = pnand %p3899_p11, %p4093_p5  ;;  %p3907_p2 = por %p3906_p1, %p3905_p0 }
 0x7d0   : > { %p3901_p13 = pneg %p3900_p12 }
 0x7d2   : > { %p3908_p3 = pnand %p3907_p2, %p3901_p13 }
 0x830   : > { %v953_v7 = vpop.permute.xlu1 %952 }
 0x831   : > { %956 = vst.msk [vmem:[#allocation2] sm:$0xff] %vm955_vm6, %v953_v7 }
 0x835   : > { %v1127_v8 = vpop.permute.xlu0 %1126 }
 0x836   : > { %1130 = vst.msk [vmem:[#allocation2] sm:$0xff] %vm1129_vm7, %v1127_v8  ;;  %v1683_v8 = vld [vmem:[%s5354_s10 + $0x30] sm:$0xff] }
 0x839   : > { %v1301_v11 = vpop.permute.xlu1 %1300 }
 0x83a   : > { %1304 = vst.msk [vmem:[#allocation2] sm:$0xff] %vm1303_vm8, %v1301_v11  ;;  %v1687_v11 = vld [vmem:[%s5354_s10 + $0xb0] sm:$0xff] }
 0x841   : > { %v1305_v9 = vld [vmem:[#allocation2] sm:$0xff] }
 0x842   : > { %3484 = vmatmul.mubr.msk.f32.vlgmr.msra.gmra.mrb[6].mxu0 %vm480_vm0, %v1305_v9  ;;  %v1690_v9 = vld [vmem:[%s5354_s10 + $0x128] sm:$0xff] }
 0x843   : > { %1606 = vmatprep.mubr.f32.mxu0 %v3962_v0  ;;  %3509 = vmatpush1.bf16.msra.mxu0 %v3508_v32 }
 0x844   : > { %3511 = vmatprep.subr.bf16.mxu0 %v3510_v43  ;;  %v3532_v43 = vpack.c.bf16 %v1866_v31, %v1865_v30  ;;  %v1924_v31 = vld [vmem:[%s5356_s12 + $0x3d8] sm:$0xff] }
 0x847   : > { %3513 = vmatpush1.bf16.msra.mxu0 %v3512_v47 }
 0x848   : > { %3523 = vmatprep.subr.bf16.mxu0 %v3522_v52  ;;  %v1917_v52 = vld [vmem:[%s5356_s12 + $0x3a0] sm:$0xff] }
 0x915   : > { %v1386_v12 = vpop.f32.mrb[6].mxu0 }
 0x916   : > { %v1387_v13 = vadd.f32 %v3101_v10, %v1386_v12  ;;  %v3485_v14 = vpop.f32.mrb[7].mxu0  ;;  %v1694_v10 = vld [vmem:[%s5354_s10 + $0x1a8] sm:$0xff]  ;;  %v1692_v12 = vld [vmem:[%s5354_s10 + $0x138] sm:$0xff] }
 0x918   : > { %v4239_v15 = vadd.f32 %v1387_v13, %v4112_v1  ;;  %v1431_v1 = vld [vmem:[%s5354_s10 + $0x8] sm:$0xff]  ;;  %v1696_v13 = vld [vmem:[%s5354_s10 + $0x1b8] sm:$0xff] }
 0x919   : > { %v3498_v24 = vpack.c.bf16 %v1435_v22, %v1431_v1  ;;  %v3526_v1 = vpack.c.bf16 %v1696_v13, %v1692_v12  ;;  %v1691_v22 = vld [vmem:[%s5354_s10 + $0x130] sm:$0xff]  ;;  %v1889_v12 = vld [vmem:[%s5356_s12 + $0x2c0] sm:$0xff]  ;;  %v1890_v13 = vld [vmem:[%s5356_s12 + $0x2c8] sm:$0xff] }
 0x91a   : > { %v1393_v16 = vsel %vm480_vm0, %v4239_v15, 0.0 }
 0x91b   : > { %1394 = vadd.xlane.f32.xlu0 %v1393_v16  ;;  %3499 = vmatprep.subr.bf16.mxu1 %v3498_v24  ;;  %v3516_v16 = vpack.c.bf16 %v1685_v6, %v1681_v5  ;;  %v1881_v24 = vld [vmem:[%s5356_s12 + $0x280] sm:$0xff]  ;;  %v1871_v6 = vld [vmem:[%s5356_s12 + $0x230] sm:$0xff] }
 0x91c   : > { %3501 = vmatpush1.bf16.msra.mxu1 %v3500_v29  ;;  %v3528_v29 = vpack.c.bf16 %v1695_v23, %v1691_v22  ;;  %v3530_v32 = vpack.c.bf16 %v1882_v25, %v1881_v24  ;;  %v1874_v22 = vld [vmem:[%s5356_s12 + $0x248] sm:$0xff]  ;;  %v1905_v23 = vld [vmem:[%s5356_s12 + $0x340] sm:$0xff] }
 0x91d   : > { %3503 = vmatprep.subr.bf16.mxu1 %v3502_v37  ;;  %v1883_v37 = vld [vmem:[%s5356_s12 + $0x290] sm:$0xff]  ;;  %v1906_v24 = vld [vmem:[%s5356_s12 + $0x348] sm:$0xff] }
 0x91e   : > { %v3534_v47 = vpack.c.bf16 %v1884_v38, %v1883_v37  ;;  %v3580_v26 = vpack.c.bf16 %v1906_v24, %v1905_v23  ;;  %v1907_v37 = vld [vmem:[%s5356_s12 + $0x350] sm:$0xff]  ;;  %v1908_v38 = vld [vmem:[%s5356_s12 + $0x358] sm:$0xff] }
 0x91f   : > { %v3584_v39 = vpack.c.bf16 %v1908_v38, %v1907_v37  ;;  %v1635_v37 = vld [vmem:[%s5356_s12 + $0x90] sm:$0xff] }
 0x920   : > { %3505 = vmatpush1.bf16.msra.mxu1 %v3504_v44  ;;  %v3564_v44 = vpack.c.bf16 %v1898_v36, %v1897_v35 }
 0x921   : > { %3515 = vmatprep.subr.bf16.mxu1 %v3514_v50  ;;  %v1885_v50 = vld [vmem:[%s5356_s12 + $0x2a0] sm:$0xff] }
 0x9a8   : > { %v1395_v17 = vpop.xlane.xlu0 %1394 }
 0x9a9   : > { %v1396_v18 = vmul.f32 0.03125, %v1395_v17  ;;  %v3524_v17 = vpack.c.bf16 %v1687_v11, %v1683_v8 }
 0x9ab   : > { %v4244_v19 = vsub.f32 %v4239_v15, %v1396_v18  ;;  %v1689_v18 = vld [vmem:[%s5354_s10 + $0x120] sm:$0xff] }
 0x9ad   : > { %v1398_v20 = vmul.f32 %v4244_v19, %v4244_v19 }
 0x9af   : > { %v1399_v21 = vsel %vm480_vm0, %v1398_v20, 0.0 }
 0x9b0   : > { %1400 = vadd.xlane.f32.xlu1 %v1399_v21  ;;  %v3518_v21 = vpack.c.bf16 %v1694_v10, %v1690_v9  ;;  %v1903_v9 = vld [vmem:[%s5356_s12 + $0x330] sm:$0xff]  ;;  %v1904_v10 = vld [vmem:[%s5356_s12 + $0x338] sm:$0xff] }
 0xa3d   : > { %v1401_v53 = vpop.xlane.xlu1 %1400 }
 0xa3e   : > { %v1402_v54 = vmul.f32 0.032258064, %v1401_v53  ;;  %v1918_v53 = vld [vmem:[%s5356_s12 + $0x3a8] sm:$0xff] }
 0xa40   : > { %3894 = vrsqrt.f32 %v1402_v54  ;;  %vm1405_vm9 = vcmp.eq.f32.partialorder %v1402_v54, inf  ;;  %v1408_v57 = vand.u32 2147483648, %v1402_v54  ;;  %vm1407_vm10 = vcmp.eq.f32.partialorder %v1402_v54, 0.0 }
 0xa4a   : > { %v3895_v55 = vpop.eup %3894 }
 0xa4b   : > { %v1404_v56 = vmul.f32 %v3895_v55, %v1402_v54  ;;  %v3568_v55 = vpack.c.bf16 %v1900_v34, %v1899_v49 }
 0xa4d   : > { %v1406_v58 = vsel %vm1405_vm9, %v1402_v54, %v1404_v56  ;;  %v3536_v54 = vpack.c.bf16 %v1868_v46, %v1867_v45  ;;  %v1869_v56 = vld [vmem:[%s5356_s12 + $0x220] sm:$0xff]  ;;  %v1926_v46 = vld [vmem:[%s5356_s12 + $0x3e8] sm:$0xff] }
 0xa4e   : > { %v1409_v59 = vsel %vm1407_vm10, %v1408_v57, %v1406_v58  ;;  %v1870_v57 = vld [vmem:[%s5356_s12 + $0x228] sm:$0xff]  ;;  %v3538_v58 = vpack.c.bf16 %v1886_v51, %v1885_v50  ;;  %v1909_v50 = vld [vmem:[%s5356_s12 + $0x360] sm:$0xff] }
 0xa4f   : > { %v1410_v60 = vadd.f32 1e-06, %v1409_v59  ;;  %v3570_v59 = vpack.c.bf16 %v1918_v53, %v1917_v52  ;;  %v1910_v51 = vld [vmem:[%s5356_s12 + $0x368] sm:$0xff]  ;;  %v1895_v53 = vld [vmem:[%s5356_s12 + $0x2f0] sm:$0xff] }
 0xa50   : > { %v3588_v52 = vpack.c.bf16 %v1910_v51, %v1909_v50 }
 0xa51   : > { %3896 = vrcp.f32 %v1410_v60 }
 0xa5b   : > { %v3897_v61 = vpop.eup %3896 }
 0xa5c   : > { %v1412_v62 = vmul.f32 %v3897_v61, %v1410_v60  ;;  %v1901_v60 = vld [vmem:[%s5356_s12 + $0x320] sm:$0xff] }
 0xa5e   : > { %v1413_v63 = vsub.f32 2.0, %v1412_v62  ;;  %v1887_v62 = vld [vmem:[%s5356_s12 + $0x2b0] sm:$0xff] }
 0xa60   : > { %v1414_v3 = vmul.f32 %v3897_v61, %v1413_v63  ;;  %v1902_v61 = vld [vmem:[%s5356_s12 + $0x328] sm:$0xff]  ;;  %v1888_v63 = vld [vmem:[%s5356_s12 + $0x2b8] sm:$0xff] }
 0xa61   : > { %v3572_v5 = vpack.c.bf16 %v1902_v61, %v1901_v60  ;;  %v3542_v8 = vpack.c.bf16 %v1888_v63, %v1887_v62  ;;  %v1911_v62 = vld [vmem:[%s5356_s12 + $0x370] sm:$0xff]  ;;  %v1912_v63 = vld [vmem:[%s5356_s12 + $0x378] sm:$0xff] }
 0xa62   : > { %v1415_v7 = vmul.f32 %v1414_v3, %v4244_v19  ;;  %v1693_v19 = vld [vmem:[%s5354_s10 + $0x1a0] sm:$0xff]  ;;  %v1920_v3 = vld [vmem:[%s5356_s12 + $0x3b8] sm:$0xff] }
 0xa63   : > { %v3520_v28 = vpack.c.bf16 %v1693_v19, %v1689_v18  ;;  %v3576_v18 = vpack.c.bf16 %v1904_v10, %v1903_v9  ;;  %v1873_v19 = vld [vmem:[%s5356_s12 + $0x240] sm:$0xff] }
 0xa64   : > { %v1422_v14 = vmul.f32 %v3103_v2, %v1415_v7  ;;  %v1919_v2 = vld [vmem:[%s5356_s12 + $0x3b0] sm:$0xff]  ;;  %v1872_v7 = vld [vmem:[%s5356_s12 + $0x238] sm:$0xff]  ;;  %v3548_v25 = vpack.c.bf16 %v1874_v22, %v1873_v19 }
 0xa65   : > { %v3574_v11 = vpack.c.bf16 %v1920_v3, %v1919_v2  ;;  %v3592_v2 = vpack.c.bf16 %v1912_v63, %v1911_v62  ;;  %v1633_v3 = vld [vmem:[%s5356_s12 + $0x80] sm:$0xff] }
 0xa66   : > { %v4346_v20 = vadd.f32 %v3104_v4, %v1422_v14  ;;  %v3540_v4 = vpack.c.bf16 %v1870_v57, %v1869_v56  ;;  %v1921_v14 = vld [vmem:[%s5356_s12 + $0x3c0] sm:$0xff]  ;;  %v1928_v57 = vld [vmem:[%s5356_s12 + $0x3f8] sm:$0xff] }
 0xa68   : > { %3105 = vmatmul.mubr.msk.f32.vlgmr.msra.gmra.mrb[12].mxu1 %vm480_vm0, %v4346_v20  ;;  %3106 = vmatmul.mubr.msk.f32.vlgmr.msra.gmra.mrb[8].mxu0 %vm480_vm0, %v4346_v20 }
 0xa69   : > { %3517 = vmatpush1.bf16.msra.mxu1 %v3516_v16  ;;  %3525 = vmatpush1.bf16.msra.mxu0 %v3524_v17  ;;  %v1922_v16 = vld [vmem:[%s5356_s12 + $0x3c8] sm:$0xff]  ;;  %v3544_v17 = vpack.c.bf16 %v1872_v7, %v1871_v6 }
 0xa6a   : > { %3519 = vmatprep.subr.bf16.mxu1 %v3518_v21  ;;  %3527 = vmatprep.subr.bf16.mxu0 %v3526_v1  ;;  %v3546_v21 = vpack.c.bf16 %v1890_v13, %v1889_v12  ;;  %v3578_v1 = vpack.c.bf16 %v1922_v16, %v1921_v14  ;;  %v1666_v7 = vld [vmem:[%s5356_s12 + $0x188] sm:$0xff]  ;;  %v1697_v13 = vld [vmem:[%s5355_s11 + $0x4] sm:$0xf]  ;;  %v4576_v14 = vsub.s32 2, %v4164_v41  ;;  %v4579_v16 = vsub.s32 1, %v4164_v41 }
 0xa6b   : > { %1783 = vmatprep.mubr.f32.mxu1 %v3962_v0  ;;  %1854 = vmatprep.mubr.f32.mxu0 %v3962_v0  ;;  %v1702_v19 = vrot.slane %v1697_v13, %v4167_v42 }
 0xa6d   : > { %3521 = vmatpush1.bf16.msra.mxu1 %v3520_v28  ;;  %3529 = vmatpush1.bf16.msra.mxu0 %v3528_v29  ;;  %v1892_v28 = vld [vmem:[%s5356_s12 + $0x2d8] sm:$0xff]  ;;  %v1923_v29 = vld [vmem:[%s5356_s12 + $0x3d0] sm:$0xff] }
 0xa6e   : > { %3531 = vmatprep.subr.bf16.mxu1 %v3530_v32  ;;  %3563 = vmatprep.subr.bf16.mxu0 %v3562_v33  ;;  %v3550_v30 = vpack.c.bf16 %v1892_v28, %v1891_v27  ;;  %v1875_v32 = vld [vmem:[%s5356_s12 + $0x250] sm:$0xff]  ;;  %v1876_v33 = vld [vmem:[%s5356_s12 + $0x258] sm:$0xff]  ;;  %v3582_v35 = vpack.c.bf16 %v1924_v31, %v1923_v29  ;;  %v1618_v31 = vld [vmem:[%s5356_s12 + $0x8] sm:$0xff] }
 0xa6f   : > { %v3552_v36 = vpack.c.bf16 %v1876_v33, %v1875_v32  ;;  %v1649_v32 = vld [vmem:[%s5356_s12 + $0x100] sm:$0xff]  ;;  %v1650_v33 = vld [vmem:[%s5356_s12 + $0x108] sm:$0xff] }
 0xa70   : > { %3107 = vmatmul.mubr.msk.f32.vlgmr.msra.gmra.mrb[14].mxu1 %vm480_vm0, %v4346_v20  ;;  %3108 = vmatmul.mubr.msk.f32.vlgmr.msra.gmra.mrb[10].mxu0 %vm480_vm0, %v4346_v20 }
 0xa71   : > { %3533 = vmatpush3.bf16.msra.mxu1 %v3532_v43  ;;  %3565 = vmatpush3.bf16.msra.mxu0 %v3564_v44  ;;  %v1894_v43 = vld [vmem:[%s5356_s12 + $0x2e8] sm:$0xff]  ;;  %v1925_v44 = vld [vmem:[%s5356_s12 + $0x3e0] sm:$0xff] }
 0xa72   : > { %3535 = vmatprep.subr.bf16.mxu1 %v3534_v47  ;;  %3567 = vmatprep.subr.bf16.mxu0 %v3566_v48  ;;  %v3554_v45 = vpack.c.bf16 %v1894_v43, %v1893_v40  ;;  %v1877_v47 = vld [vmem:[%s5356_s12 + $0x260] sm:$0xff]  ;;  %v1878_v48 = vld [vmem:[%s5356_s12 + $0x268] sm:$0xff]  ;;  %v3586_v49 = vpack.c.bf16 %v1926_v46, %v1925_v44  ;;  %v1636_v40 = vld [vmem:[%s5356_s12 + $0x98] sm:$0xff] }
 0xa73   : > { %v3556_v34 = vpack.c.bf16 %v1878_v48, %v1877_v47  ;;  %v1667_v43 = vld [vmem:[%s5356_s12 + $0x190] sm:$0xff]  ;;  %v1668_v44 = vld [vmem:[%s5356_s12 + $0x198] sm:$0xff]  ;;  %v3628_v48 = vpack.c.bf16 %v1650_v33, %v1649_v32  ;;  %v1625_v32 = vld [vmem:[%s5356_s12 + $0x40] sm:$0xff] }
 0xa74   : > { %v1626_v33 = vld [vmem:[%s5356_s12 + $0x48] sm:$0xff] }
 0xa75   : > { %3537 = vmatpush3.bf16.msra.mxu1 %v3536_v54  ;;  %3569 = vmatpush3.bf16.msra.mxu0 %v3568_v55  ;;  %v1896_v54 = vld [vmem:[%s5356_s12 + $0x2f8] sm:$0xff]  ;;  %v1927_v55 = vld [vmem:[%s5356_s12 + $0x3f0] sm:$0xff] }
 0xa76   : > { %3539 = vmatprep.subr.bf16.mxu1 %v3538_v58  ;;  %3571 = vmatprep.subr.bf16.mxu0 %v3570_v59  ;;  %v3558_v56 = vpack.c.bf16 %v1896_v54, %v1895_v53  ;;  %v1879_v58 = vld [vmem:[%s5356_s12 + $0x270] sm:$0xff]  ;;  %v1880_v59 = vld [vmem:[%s5356_s12 + $0x278] sm:$0xff]  ;;  %v3590_v60 = vpack.c.bf16 %v1928_v57, %v1927_v55  ;;  %v1637_v54 = vld [vmem:[%s5356_s12 + $0xa0] sm:$0xff]  ;;  %v3598_v55 = vpack.c.bf16 %v1636_v40, %v1635_v37 }
 0xa77   : > { %v3560_v61 = vpack.c.bf16 %v1880_v59, %v1879_v58  ;;  %v1652_v53 = vld [vmem:[%s5356_s12 + $0x118] sm:$0xff]  ;;  %v1638_v57 = vld [vmem:[%s5356_s12 + $0xa8] sm:$0xff]  ;;  %v1669_v58 = vld [vmem:[%s5356_s12 + $0x1a0] sm:$0xff] }
 0xa78   : > { %v1670_v59 = vld [vmem:[%s5356_s12 + $0x1a8] sm:$0xff]  ;;  %v1657_v37 = vld [vmem:[%s5356_s12 + $0x140] sm:$0xff]  ;;  %v1644_v40 = vld [vmem:[%s5356_s12 + $0xd8] sm:$0xff] }
 0xa79   : > { %3541 = vmatpush3.bf16.msra.mxu1 %v3540_v4  ;;  %3573 = vmatpush3.bf16.msra.mxu0 %v3572_v5  ;;  %v1634_v4 = vld [vmem:[%s5356_s12 + $0x88] sm:$0xff]  ;;  %v1665_v5 = vld [vmem:[%s5356_s12 + $0x180] sm:$0xff] }
 0xa7a   : > { %3543 = vmatprep.subr.bf16.mxu1 %v3542_v8  ;;  %3575 = vmatprep.subr.bf16.mxu0 %v3574_v11  ;;  %v3594_v6 = vpack.c.bf16 %v1634_v4, %v1633_v3  ;;  %v3626_v8 = vpack.c.bf16 %v1666_v7, %v1665_v5  ;;  %v1622_v3 = vld [vmem:[%s5356_s12 + $0x28] sm:$0xff]  ;;  %v3602_v4 = vpack.c.bf16 %v1638_v57, %v1637_v54  ;;  %v1677_v54 = vld [vmem:[%s5356_s12 + $0x1e0] sm:$0xff] }
 0xa7b   : > { %v3634_v5 = vpack.c.bf16 %v1670_v59, %v1669_v58  ;;  %v1654_v7 = vld [vmem:[%s5356_s12 + $0x128] sm:$0xff]  ;;  %v1629_v58 = vld [vmem:[%s5356_s12 + $0x60] sm:$0xff] }
 0xa7c   : > { %v1630_v59 = vld [vmem:[%s5356_s12 + $0x68] sm:$0xff] }
 0xa7d   : > { %3545 = vmatpush3.bf16.msra.mxu1 %v3544_v17  ;;  %3577 = vmatpush3.bf16.msra.mxu0 %v3576_v18  ;;  %v4582_v17 = vsub.s32 3, %v4164_v41  ;;  %v4587_v18 = vld [vmem:[%s5355_s11] sm:$0xf] }
 0xa7e   : > { %3547 = vmatprep.subr.bf16.mxu1 %v3546_v21  ;;  %3579 = vmatprep.subr.bf16.mxu0 %v3578_v1  ;;  %v1710_v21 = vrot.slane %v1697_v13, %v4576_v14  ;;  %v1706_v1 = vrot.slane %v1697_v13, %v4579_v16  ;;  %v1455_v23 = vrot.slane %v4587_v18, %v4579_v16 }
 0xa7f   : > { %v1714_v22 = vrot.slane %v1697_v13, %v4582_v17  ;;  %v1463_v41 = vrot.slane %v4587_v18, %v4582_v17  ;;  %v1672_v13 = vld [vmem:[%s5356_s12 + $0x1b8] sm:$0xff] }
 0xa81   : > { %3549 = vmatpush3.bf16.msra.mxu1 %v3548_v25  ;;  %3581 = vmatpush3.bf16.msra.mxu0 %v3580_v26  ;;  %v1617_v26 = vld [vmem:[%s5356_s12] sm:$0xff] }
 0xa82   : > { %3551 = vmatprep.subr.bf16.mxu1 %v3550_v30  ;;  %3583 = vmatprep.subr.bf16.mxu0 %v3582_v35  ;;  %v3596_v47 = vpack.c.bf16 %v1618_v31, %v1617_v26  ;;  %v1641_v26 = vld [vmem:[%s5356_s12 + $0xc0] sm:$0xff] }
 0xa85   : > { %3553 = vmatpush3.bf16.msra.mxu1 %v3552_v36  ;;  %3585 = vmatpush3.bf16.msra.mxu0 %v3584_v39 }
 0xa86   : > { %3555 = vmatprep.subr.bf16.mxu1 %v3554_v45  ;;  %3587 = vmatprep.subr.bf16.mxu0 %v3586_v49  ;;  %v1619_v49 = vld [vmem:[%s5356_s12 + $0x10] sm:$0xff] }
 0xa89   : > { %3557 = vmatpush3.bf16.msra.mxu1 %v3556_v34  ;;  %3589 = vmatpush3.bf16.msra.mxu0 %v3588_v52  ;;  %v1620_v34 = vld [vmem:[%s5356_s12 + $0x18] sm:$0xff]  ;;  %v1651_v52 = vld [vmem:[%s5356_s12 + $0x110] sm:$0xff] }
 0xa8a   : > { %3559 = vmatprep.subr.bf16.mxu1 %v3558_v56  ;;  %3591 = vmatprep.subr.bf16.mxu0 %v3590_v60  ;;  %v3630_v56 = vpack.c.bf16 %v1668_v44, %v1667_v43  ;;  %v3600_v62 = vpack.c.bf16 %v1620_v34, %v1619_v49  ;;  %v3632_v63 = vpack.c.bf16 %v1652_v53, %v1651_v52  ;;  %v1675_v43 = vld [vmem:[%s5356_s12 + $0x1d0] sm:$0xff]  ;;  %v1676_v44 = vld [vmem:[%s5356_s12 + $0x1d8] sm:$0xff]  ;;  %v1645_v52 = vld [vmem:[%s5356_s12 + $0xe0] sm:$0xff] }
 0xa8b   : > { %v3646_v34 = vpack.c.bf16 %v1676_v44, %v1675_v43  ;;  %v1646_v53 = vld [vmem:[%s5356_s12 + $0xe8] sm:$0xff] }
 0xa8d   : > { %3561 = vmatpush3.bf16.msra.mxu1 %v3560_v61  ;;  %3593 = vmatpush3.bf16.msra.mxu0 %v3592_v2  ;;  %v1621_v2 = vld [vmem:[%s5356_s12 + $0x20] sm:$0xff] }
 0xa8e   : > { %3595 = vmatprep.subr.bf16.mxu1 %v3594_v6  ;;  %3627 = vmatprep.subr.bf16.mxu0 %v3626_v8  ;;  %v1653_v6 = vld [vmem:[%s5356_s12 + $0x120] sm:$0xff]  ;;  %v1639_v8 = vld [vmem:[%s5356_s12 + $0xb0] sm:$0xff] }
 0xb3b   : > { %v4568_v11 = vpop.f32.mrb[12].mxu1  ;;  %v4570_v9 = vpop.f32.mrb[8].mxu0 }
 0xb3c   : > { %v1539_v10 = vpop.f32.mrb[13].mxu1  ;;  %v1610_v12 = vpop.f32.mrb[9].mxu0 }
 0xb3d   : > { %v1540_v38 = vadd.f32 %v1539_v10, %v1455_v23  ;;  %v1611_v39 = vadd.f32 %v1610_v12, %v1463_v41  ;;  %v1640_v10 = vld [vmem:[%s5356_s12 + $0xb8] sm:$0xff]  ;;  %v1671_v12 = vld [vmem:[%s5356_s12 + $0x1b0] sm:$0xff] }
 0xb3e   : > { %v3606_v23 = vpack.c.bf16 %v1640_v10, %v1639_v8  ;;  %v3638_v41 = vpack.c.bf16 %v1672_v13, %v1671_v12  ;;  %v1631_v10 = vld [vmem:[%s5356_s12 + $0x70] sm:$0xff]  ;;  %v1632_v12 = vld [vmem:[%s5356_s12 + $0x78] sm:$0xff] }
 0xb3f   : > { %v1614_v60 = vmax.f32 %v1540_v38, 0.0  ;;  %v1616_v61 = vmax.f32 %v1611_v39, 0.0  ;;  %v1658_v38 = vld [vmem:[%s5356_s12 + $0x148] sm:$0xff]  ;;  %v1643_v39 = vld [vmem:[%s5356_s12 + $0xd0] sm:$0xff] }
 0xb40   : > { %v3614_v49 = vpack.c.bf16 %v1644_v40, %v1643_v39  ;;  %v1663_v13 = vld [vmem:[%s5356_s12 + $0x170] sm:$0xff]  ;;  %v2217_v40 = vld [vmem:[%s5354_s10 + $0x140] sm:$0xff] }
 0xb43   : > { %v1785_v24 = vpop.f32.mrb[14].mxu1  ;;  %v1856_v25 = vpop.f32.mrb[10].mxu0 }
 0xb44   : > { %v1786_v27 = vadd.f32 %v1785_v24, %v1702_v19  ;;  %v1857_v28 = vadd.f32 %v1856_v25, %v1710_v21  ;;  %v1787_v29 = vpop.f32.mrb[15].mxu1  ;;  %v1858_v30 = vpop.f32.mrb[11].mxu0  ;;  %v3604_v19 = vpack.c.bf16 %v1622_v3, %v1621_v2  ;;  %v3636_v21 = vpack.c.bf16 %v1654_v7, %v1653_v6  ;;  %v1655_v24 = vld [vmem:[%s5356_s12 + $0x130] sm:$0xff]  ;;  %v1656_v25 = vld [vmem:[%s5356_s12 + $0x138] sm:$0xff] }
 0xb45   : > { %v1788_v35 = vadd.f32 %v1787_v29, %v1706_v1  ;;  %v1859_v36 = vadd.f32 %v1858_v30, %v1714_v22  ;;  %v1623_v1 = vld [vmem:[%s5356_s12 + $0x30] sm:$0xff]  ;;  %v1624_v22 = vld [vmem:[%s5356_s12 + $0x38] sm:$0xff]  ;;  %v1674_v29 = vld [vmem:[%s5356_s12 + $0x1c8] sm:$0xff]  ;;  %v3640_v31 = vpack.c.bf16 %v1656_v25, %v1655_v24  ;;  %v1451_v6 = vrot.slane %v4587_v18, %v4167_v42 }
 0xb46   : > { %v1861_v50 = vmax.f32 %v1786_v27, 0.0  ;;  %v1863_v51 = vmax.f32 %v1857_v28, 0.0  ;;  %v1642_v27 = vld [vmem:[%s5356_s12 + $0xc8] sm:$0xff]  ;;  %v1673_v28 = vld [vmem:[%s5356_s12 + $0x1c0] sm:$0xff]  ;;  %v3608_v30 = vpack.c.bf16 %v1624_v22, %v1623_v1  ;;  %v1647_v2 = vld [vmem:[%s5356_s12 + $0xf0] sm:$0xff]  ;;  %v3620_v7 = vpack.c.bf16 %v1630_v59, %v1629_v58 }
 0xb47   : > { %v1862_v45 = vmax.f32 %v1788_v35, 0.0  ;;  %v1864_v46 = vmax.f32 %v1859_v36, 0.0  ;;  %v3610_v35 = vpack.c.bf16 %v1642_v27, %v1641_v26  ;;  %v3642_v36 = vpack.c.bf16 %v1674_v29, %v1673_v28  ;;  %v1648_v3 = vld [vmem:[%s5356_s12 + $0xf8] sm:$0xff]  ;;  %v2209_v28 = vld [vmem:[%s5354_s10 + $0x40] sm:$0xff] }
 0xb48   : > { %v1664_v22 = vld [vmem:[%s5356_s12 + $0x178] sm:$0xff]  ;;  %v3624_v25 = vpack.c.bf16 %v1632_v12, %v1631_v10  ;;  %v2213_v29 = vld [vmem:[%s5354_s10 + $0xc0] sm:$0xff]  ;;  %v2427_v10 = vld [vmem:[%s5356_s12 + $0x510] sm:$0xff] }
 0xb49   : > { %1993 = vmatprep.mubr.f32.mxu1 %v1862_v45  ;;  %2063 = vmatprep.mubr.f32.mxu0 %v1864_v46  ;;  %v3612_v45 = vpack.c.bf16 %v1626_v33, %v1625_v32  ;;  %v3644_v46 = vpack.c.bf16 %v1658_v38, %v1657_v37  ;;  %v2216_v24 = vld [vmem:[%s5354_s10 + $0xd8] sm:$0xff]  ;;  %v3656_v26 = vpack.c.bf16 %v1664_v22, %v1663_v13  ;;  %v2211_v33 = vld [vmem:[%s5354_s10 + $0x50] sm:$0xff] }
 0xb4a   : > { %1994 = vmatmul.mubr.f32.vlgmr.msra.gmra.mrb[16].mxu1 %v1861_v50  ;;  %2064 = vmatmul.mubr.f32.vlgmr.msra.gmra.mrb[12].mxu0 %v1863_v51  ;;  %v1659_v50 = vld [vmem:[%s5356_s12 + $0x150] sm:$0xff]  ;;  %v1660_v51 = vld [vmem:[%s5356_s12 + $0x158] sm:$0xff]  ;;  %v3660_v38 = vpack.c.bf16 %v2213_v29, %v2209_v28 }
 0xb4b   : > { %3597 = vmatpush3.bf16.msra.mxu1 %v3596_v47  ;;  %3629 = vmatpush3.bf16.msra.mxu0 %v3628_v48  ;;  %v1627_v47 = vld [vmem:[%s5356_s12 + $0x50] sm:$0xff]  ;;  %v1628_v48 = vld [vmem:[%s5356_s12 + $0x58] sm:$0xff]  ;;  %v3648_v57 = vpack.c.bf16 %v1660_v51, %v1659_v50  ;;  %v2409_v51 = vld [vmem:[%s5356_s12 + $0x480] sm:$0xff] }
 0xb4c   : > { %2133 = vmatprep.mubr.f32.mxu1 %v1614_v60  ;;  %2203 = vmatprep.mubr.f32.mxu0 %v1616_v61  ;;  %v3618_v60 = vpack.c.bf16 %v1646_v53, %v1645_v52  ;;  %v2224_v37 = vld [vmem:[%s5354_s10 + $0x1d8] sm:$0xff]  ;;  %v2410_v52 = vld [vmem:[%s5356_s12 + $0x488] sm:$0xff]  ;;  %v2441_v53 = vld [vmem:[%s5356_s12 + $0x580] sm:$0xff] }
 0xb4d   : > { %3599 = vmatprep.subr.bf16.mxu1 %v3598_v55  ;;  %3631 = vmatprep.subr.bf16.mxu0 %v3630_v56  ;;  %v1678_v55 = vld [vmem:[%s5356_s12 + $0x1e8] sm:$0xff]  ;;  %v3616_v56 = vpack.c.bf16 %v1628_v48, %v1627_v47  ;;  %v2221_v47 = vld [vmem:[%s5354_s10 + $0x1c0] sm:$0xff]  ;;  %v2219_v48 = vld [vmem:[%s5354_s10 + $0x150] sm:$0xff] }
 0xb4e   : > { %v3650_v61 = vpack.c.bf16 %v1678_v55, %v1677_v54  ;;  %v3674_v54 = vpack.c.bf16 %v2410_v52, %v2409_v51  ;;  %v2442_v55 = vld [vmem:[%s5356_s12 + $0x588] sm:$0xff]  ;;  %v2428_v13 = vld [vmem:[%s5356_s12 + $0x518] sm:$0xff]  ;;  %v2415_v29 = vld [vmem:[%s5356_s12 + $0x4b0] sm:$0xff] }
 0xb4f   : > { %3601 = vmatpush3.bf16.msra.mxu1 %v3600_v62  ;;  %3633 = vmatpush3.bf16.msra.mxu0 %v3632_v63  ;;  %v1661_v62 = vld [vmem:[%s5356_s12 + $0x160] sm:$0xff]  ;;  %v1662_v63 = vld [vmem:[%s5356_s12 + $0x168] sm:$0xff]  ;;  %v3706_v58 = vpack.c.bf16 %v2442_v55, %v2441_v53  ;;  %v2420_v55 = vld [vmem:[%s5356_s12 + $0x4d8] sm:$0xff] }
 0xb50   : > { %3603 = vmatprep.subr.bf16.mxu1 %v3602_v4  ;;  %3635 = vmatprep.subr.bf16.mxu0 %v3634_v5  ;;  %v1679_v4 = vld [vmem:[%s5356_s12 + $0x1f0] sm:$0xff]  ;;  %v1680_v5 = vld [vmem:[%s5356_s12 + $0x1f8] sm:$0xff]  ;;  %v3652_v8 = vpack.c.bf16 %v1662_v63, %v1661_v62  ;;  %v2434_v51 = vld [vmem:[%s5356_s12 + $0x548] sm:$0xff] }
 0xb51   : > { %v3654_v1 = vpack.c.bf16 %v1680_v5, %v1679_v4  ;;  %v2411_v62 = vld [vmem:[%s5356_s12 + $0x490] sm:$0xff]  ;;  %v2444_v4 = vld [vmem:[%s5356_s12 + $0x598] sm:$0xff] }
 0xb53   : > { %3605 = vmatpush3.bf16.msra.mxu1 %v3604_v19  ;;  %3637 = vmatpush3.bf16.msra.mxu0 %v3636_v21  ;;  %v1459_v19 = vrot.slane %v4587_v18, %v4576_v14  ;;  %v3622_v21 = vpack.c.bf16 %v1648_v3, %v1647_v2  ;;  %v2212_v18 = vld [vmem:[%s5354_s10 + $0x58] sm:$0xff]  ;;  %v2443_v3 = vld [vmem:[%s5356_s12 + $0x590] sm:$0xff] }
 0xb54   : > { %3607 = vmatprep.subr.bf16.mxu1 %v3606_v23  ;;  %3639 = vmatprep.subr.bf16.mxu0 %v3638_v41  ;;  %v2210_v23 = vld [vmem:[%s5354_s10 + $0x48] sm:$0xff]  ;;  %v3666_v32 = vpack.c.bf16 %v2216_v24, %v2212_v18  ;;  %v2412_v2 = vld [vmem:[%s5356_s12 + $0x498] sm:$0xff]  ;;  %v2397_v18 = vld [vmem:[%s5356_s12 + $0x420] sm:$0xff] }
 0xb55   : > { %v2214_v41 = vld [vmem:[%s5354_s10 + $0xc8] sm:$0xff]  ;;  %v3678_v5 = vpack.c.bf16 %v2412_v2, %v2411_v62  ;;  %v2436_v2 = vld [vmem:[%s5356_s12 + $0x558] sm:$0xff] }
 0xb56   : > { %v3658_v27 = vpack.c.bf16 %v2214_v41, %v2210_v23  ;;  %v2445_v23 = vld [vmem:[%s5356_s12 + $0x5a0] sm:$0xff]  ;;  %v2446_v41 = vld [vmem:[%s5356_s12 + $0x5a8] sm:$0xff] }
 0xb57   : > { %3609 = vmatpush3.bf16.msra.mxu1 %v3608_v30  ;;  %3641 = vmatpush3.bf16.msra.mxu0 %v3640_v31  ;;  %v1538_v30 = vadd.f32 %v4568_v11, %v1451_v6  ;;  %v1609_v31 = vadd.f32 %v4570_v9, %v1459_v19  ;;  %v2222_v11 = vld [vmem:[%s5354_s10 + $0x1c8] sm:$0xff]  ;;  %v2220_v9 = vld [vmem:[%s5354_s10 + $0x158] sm:$0xff]  ;;  %v3710_v6 = vpack.c.bf16 %v2444_v4, %v2443_v3  ;;  %v2413_v19 = vld [vmem:[%s5356_s12 + $0x4a0] sm:$0xff] }
 0xb58   : > { %3611 = vmatprep.subr.bf16.mxu1 %v3610_v35  ;;  %3643 = vmatprep.subr.bf16.mxu0 %v3642_v36  ;;  %v2215_v35 = vld [vmem:[%s5354_s10 + $0xd0] sm:$0xff]  ;;  %v2218_v36 = vld [vmem:[%s5354_s10 + $0x148] sm:$0xff]  ;;  %v3714_v24 = vpack.c.bf16 %v2446_v41, %v2445_v23  ;;  %v2421_v4 = vld [vmem:[%s5356_s12 + $0x4e0] sm:$0xff] }
 0xb59   : > { %v3668_v39 = vpack.c.bf16 %v2215_v35, %v2211_v33  ;;  %v1613_v43 = vmax.f32 %v1538_v30, 0.0  ;;  %v1615_v44 = vmax.f32 %v1609_v31, 0.0  ;;  %v2416_v30 = vld [vmem:[%s5356_s12 + $0x4b8] sm:$0xff]  ;;  %v2447_v31 = vld [vmem:[%s5356_s12 + $0x5b0] sm:$0xff] }
 0xb5a   : > { %v3686_v33 = vpack.c.bf16 %v2416_v30, %v2415_v29  ;;  %v2448_v35 = vld [vmem:[%s5356_s12 + $0x5b8] sm:$0xff]  ;;  %v2423_v23 = vld [vmem:[%s5356_s12 + $0x4f0] sm:$0xff] }
 0xb5b   : > { %3613 = vmatpush3.bf16.msra.mxu1 %v3612_v45  ;;  %3645 = vmatpush3.bf16.msra.mxu0 %v3644_v46  ;;  %v3662_v45 = vpack.c.bf16 %v2222_v11, %v2218_v36  ;;  %v3670_v46 = vpack.c.bf16 %v2224_v37, %v2220_v9  ;;  %v2399_v36 = vld [vmem:[%s5356_s12 + $0x430] sm:$0xff]  ;;  %v2400_v11 = vld [vmem:[%s5356_s12 + $0x438] sm:$0xff]  ;;  %v3718_v9 = vpack.c.bf16 %v2448_v35, %v2447_v31  ;;  %v2603_v35 = vld [vmem:[%s5354_s10 + $0xe8] sm:$0xff] }
 0xb5c   : > { %3615 = vmatprep.subr.bf16.mxu1 %v3614_v49  ;;  %3647 = vmatprep.subr.bf16.mxu0 %v3646_v34  ;;  %v2223_v49 = vld [vmem:[%s5354_s10 + $0x1d0] sm:$0xff]  ;;  %v3664_v34 = vpack.c.bf16 %v2221_v47, %v2217_v40  ;;  %v2418_v40 = vld [vmem:[%s5356_s12 + $0x4c8] sm:$0xff]  ;;  %v2424_v41 = vld [vmem:[%s5356_s12 + $0x4f8] sm:$0xff] }
 0xb5d   : > { %v3672_v50 = vpack.c.bf16 %v2223_v49, %v2219_v48  ;;  %v2431_v37 = vld [vmem:[%s5356_s12 + $0x530] sm:$0xff]  ;;  %v2401_v48 = vld [vmem:[%s5356_s12 + $0x440] sm:$0xff]  ;;  %v2402_v49 = vld [vmem:[%s5356_s12 + $0x448] sm:$0xff] }
 0xb5e   : > { %v3692_v52 = vpack.c.bf16 %v2402_v49, %v2401_v48  ;;  %v2439_v30 = vld [vmem:[%s5356_s12 + $0x570] sm:$0xff]  ;;  %v2440_v31 = vld [vmem:[%s5356_s12 + $0x578] sm:$0xff] }
 0xb5f   : > { %3617 = vmatpush3.bf16.msra.mxu1 %v3616_v56  ;;  %3649 = vmatpush3.bf16.msra.mxu0 %v3648_v57  ;;  %v2393_v56 = vld [vmem:[%s5356_s12 + $0x400] sm:$0xff]  ;;  %v2394_v57 = vld [vmem:[%s5356_s12 + $0x408] sm:$0xff] }
 0xb60   : > { %3619 = vmatprep.subr.bf16.mxu1 %v3618_v60  ;;  %3651 = vmatprep.subr.bf16.mxu0 %v3650_v61  ;;  %v3676_v59 = vpack.c.bf16 %v2394_v57, %v2393_v56  ;;  %v2425_v60 = vld [vmem:[%s5356_s12 + $0x500] sm:$0xff]  ;;  %v2426_v61 = vld [vmem:[%s5356_s12 + $0x508] sm:$0xff]  ;;  %v2451_v56 = vld [vmem:[%s5356_s12 + $0x5d0] sm:$0xff] }
 0xb61   : > { %v3708_v63 = vpack.c.bf16 %v2426_v61, %v2425_v60  ;;  %v2404_v60 = vld [vmem:[%s5356_s12 + $0x458] sm:$0xff] }
 0xb63   : > { %3621 = vmatpush3.bf16.msra.mxu1 %v3620_v7  ;;  %3653 = vmatpush3.bf16.msra.mxu0 %v3652_v8  ;;  %v2395_v7 = vld [vmem:[%s5356_s12 + $0x410] sm:$0xff]  ;;  %v2396_v8 = vld [vmem:[%s5356_s12 + $0x418] sm:$0xff] }
 0xb64   : > { %3623 = vmatprep.subr.bf16.mxu1 %v3622_v21  ;;  %3655 = vmatprep.subr.bf16.mxu0 %v3654_v1  ;;  %v3680_v12 = vpack.c.bf16 %v2396_v8, %v2395_v7  ;;  %v2414_v21 = vld [vmem:[%s5356_s12 + $0x4a8] sm:$0xff]  ;;  %v3712_v1 = vpack.c.bf16 %v2428_v13, %v2427_v10  ;;  %v2405_v10 = vld [vmem:[%s5356_s12 + $0x460] sm:$0xff] }
 0xb65   : > { %v3682_v22 = vpack.c.bf16 %v2414_v21, %v2413_v19  ;;  %v2454_v8 = vld [vmem:[%s5356_s12 + $0x5e8] sm:$0xff]  ;;  %v2437_v21 = vld [vmem:[%s5356_s12 + $0x560] sm:$0xff] }
 0xb67   : > { %3625 = vmatpush3.bf16.msra.mxu1 %v3624_v25  ;;  %3657 = vmatpush3.bf16.msra.mxu0 %v3656_v26  ;;  %v2398_v25 = vld [vmem:[%s5356_s12 + $0x428] sm:$0xff]  ;;  %v2429_v26 = vld [vmem:[%s5356_s12 + $0x520] sm:$0xff] }
 0xb68   : > { %3659 = vmatprep.subr.bf16.mxu1 %v3658_v27  ;;  %3667 = vmatprep.subr.bf16.mxu0 %v3666_v32  ;;  %v2430_v27 = vld [vmem:[%s5356_s12 + $0x528] sm:$0xff]  ;;  %v3684_v28 = vpack.c.bf16 %v2398_v25, %v2397_v18  ;;  %v2455_v18 = vld [vmem:[%s5356_s12 + $0x5f0] sm:$0xff]  ;;  %v2456_v25 = vld [vmem:[%s5356_s12 + $0x5f8] sm:$0xff] }
 0xb69   : > { %v3716_v32 = vpack.c.bf16 %v2430_v27, %v2429_v26  ;;  %v2407_v26 = vld [vmem:[%s5356_s12 + $0x470] sm:$0xff]  ;;  %v2408_v27 = vld [vmem:[%s5356_s12 + $0x478] sm:$0xff] }
 0xb6a   : > { %2134 = vmatmul.mubr.f32.vlgmr.msra.gmra.mrb[18].mxu1 %v1613_v43  ;;  %2204 = vmatmul.mubr.f32.vlgmr.msra.gmra.mrb[14].mxu0 %v1615_v44  ;;  %v2449_v43 = vld [vmem:[%s5356_s12 + $0x5c0] sm:$0xff]  ;;  %v2450_v44 = vld [vmem:[%s5356_s12 + $0x5c8] sm:$0xff]  ;;  %v3704_v29 = vpack.c.bf16 %v2408_v27, %v2407_v26 }
 0xb6b   : > { %3661 = vmatpush1.bf16.msra.mxu1 %v3660_v38  ;;  %3669 = vmatpush1.bf16.msra.mxu0 %v3668_v39  ;;  %v2432_v38 = vld [vmem:[%s5356_s12 + $0x538] sm:$0xff]  ;;  %v2417_v39 = vld [vmem:[%s5356_s12 + $0x4c0] sm:$0xff] }
 0xb6c   : > { %3663 = vmatprep.subr.bf16.mxu1 %v3662_v45  ;;  %3671 = vmatprep.subr.bf16.mxu0 %v3670_v46  ;;  %v3688_v45 = vpack.c.bf16 %v2400_v11, %v2399_v36  ;;  %v3720_v46 = vpack.c.bf16 %v2432_v38, %v2431_v37  ;;  %v3690_v47 = vpack.c.bf16 %v2418_v40, %v2417_v39  ;;  %v2601_v36 = vld [vmem:[%s5354_s10 + $0x78] sm:$0xff] }
 0xb6d   : > { %2311 = vmatprep.mubr.f32.mxu1 %v3962_v0  ;;  %2382 = vmatprep.mubr.f32.mxu0 %v3962_v0 }
 0xb6f   : > { %3665 = vmatpush1.bf16.msra.mxu1 %v3664_v34  ;;  %3673 = vmatpush1.bf16.msra.mxu0 %v3672_v50  ;;  %v3722_v34 = vpack.c.bf16 %v2450_v44, %v2449_v43  ;;  %v2433_v50 = vld [vmem:[%s5356_s12 + $0x540] sm:$0xff] }
 0xb70   : > { %3675 = vmatprep.subr.bf16.mxu1 %v3674_v54  ;;  %3707 = vmatprep.subr.bf16.mxu0 %v3706_v58  ;;  %v3724_v53 = vpack.c.bf16 %v2434_v51, %v2433_v50  ;;  %v2419_v54 = vld [vmem:[%s5356_s12 + $0x4d0] sm:$0xff]  ;;  %v2452_v58 = vld [vmem:[%s5356_s12 + $0x5d8] sm:$0xff] }
 0xb71   : > { %v3694_v57 = vpack.c.bf16 %v2420_v55, %v2419_v54  ;;  %v3726_v61 = vpack.c.bf16 %v2452_v58, %v2451_v56 }
 0xb72   : > { %3109 = vmatmul.mubr.msk.f32.vlgmr.msra.gmra.mrb[20].mxu1 %vm480_vm0, %v4346_v20  ;;  %3110 = vmatmul.mubr.msk.f32.vlgmr.msra.gmra.mrb[16].mxu0 %vm480_vm0, %v4346_v20 }
 0xb73   : > { %3677 = vmatpush3.bf16.msra.mxu1 %v3676_v59  ;;  %3709 = vmatpush3.bf16.msra.mxu0 %v3708_v63  ;;  %v2403_v59 = vld [vmem:[%s5356_s12 + $0x450] sm:$0xff] }
 0xb74   : > { %3679 = vmatprep.subr.bf16.mxu1 %v3678_v5  ;;  %3711 = vmatprep.subr.bf16.mxu0 %v3710_v6  ;;  %v3696_v62 = vpack.c.bf16 %v2404_v60, %v2403_v59  ;;  %v2435_v63 = vld [vmem:[%s5356_s12 + $0x550] sm:$0xff]  ;;  %v2422_v5 = vld [vmem:[%s5356_s12 + $0x4e8] sm:$0xff]  ;;  %v2453_v6 = vld [vmem:[%s5356_s12 + $0x5e0] sm:$0xff] }
 0xb75   : > { %v3728_v3 = vpack.c.bf16 %v2436_v2, %v2435_v63  ;;  %v3698_v7 = vpack.c.bf16 %v2422_v5, %v2421_v4  ;;  %v3730_v13 = vpack.c.bf16 %v2454_v8, %v2453_v6  ;;  %v2600_v5 = vld [vmem:[%s5354_s10 + $0x70] sm:$0xff] }
 0xb76   : > { %v2604_v6 = vld [vmem:[%s5354_s10 + $0xf0] sm:$0xff] }
 0xb77   : > { %3681 = vmatpush3.bf16.msra.mxu1 %v3680_v12  ;;  %3713 = vmatpush3.bf16.msra.mxu0 %v3712_v1  ;;  %v2406_v12 = vld [vmem:[%s5356_s12 + $0x468] sm:$0xff] }
 0xb78   : > { %3683 = vmatprep.subr.bf16.mxu1 %v3682_v22  ;;  %3715 = vmatprep.subr.bf16.mxu0 %v3714_v24  ;;  %v3700_v19 = vpack.c.bf16 %v2406_v12, %v2405_v10  ;;  %v2438_v1 = vld [vmem:[%s5356_s12 + $0x568] sm:$0xff]  ;;  %v3702_v24 = vpack.c.bf16 %v2424_v41, %v2423_v23  ;;  %v3748_v23 = vpack.c.bf16 %v2604_v6, %v2600_v5  ;;  %v2606_v41 = vld [vmem:[%s5354_s10 + $0x160] sm:$0xff]  ;;  %v2836_v5 = vld [vmem:[%s5356_s12 + $0x7b0] sm:$0xff] }
 0xb79   : > { %v3732_v22 = vpack.c.bf16 %v2438_v1, %v2437_v21  ;;  %v2611_v12 = vld [vmem:[%s5354_s10 + $0x1e8] sm:$0xff]  ;;  %v2837_v6 = vld [vmem:[%s5356_s12 + $0x7b8] sm:$0xff] }
 0xb7b   : > { %3685 = vmatpush3.bf16.msra.mxu1 %v3684_v28  ;;  %3717 = vmatpush3.bf16.msra.mxu0 %v3716_v32  ;;  %v3734_v28 = vpack.c.bf16 %v2456_v25, %v2455_v18  ;;  %v3736_v32 = vpack.c.bf16 %v2440_v31, %v2439_v30  ;;  %v2610_v18 = vld [vmem:[%s5354_s10 + $0x1e0] sm:$0xff]  ;;  %v2799_v31 = vld [vmem:[%s5356_s12 + $0x688] sm:$0xff] }
 0xb7c   : > { %3687 = vmatprep.subr.bf16.mxu1 %v3686_v33  ;;  %3719 = vmatprep.subr.bf16.mxu0 %v3718_v9  ;;  %v2599_v33 = vld [vmem:[%s5354_s10 + $0x68] sm:$0xff]  ;;  %v2605_v9 = vld [vmem:[%s5354_s10 + $0xf8] sm:$0xff]  ;;  %v2798_v30 = vld [vmem:[%s5356_s12 + $0x680] sm:$0xff] }
 0xb7d   : > { %v3738_v11 = vpack.c.bf16 %v2603_v35, %v2599_v33  ;;  %v3746_v37 = vpack.c.bf16 %v2605_v9, %v2601_v36  ;;  %v2831_v33 = vld [vmem:[%s5356_s12 + $0x788] sm:$0xff]  ;;  %v3744_v35 = vpack.c.bf16 %v2610_v18, %v2606_v41  ;;  %v2838_v41 = vld [vmem:[%s5356_s12 + $0x7c0] sm:$0xff] }
 0xb7e   : > { %v2783_v9 = vld [vmem:[%s5356_s12 + $0x608] sm:$0xff] }
 0xb7f   : > { %3689 = vmatpush3.bf16.msra.mxu1 %v3688_v45  ;;  %3721 = vmatpush3.bf16.msra.mxu0 %v3720_v46  ;;  %v2839_v18 = vld [vmem:[%s5356_s12 + $0x7c8] sm:$0xff] }
 0xb80   : > { %3691 = vmatprep.subr.bf16.mxu1 %v3690_v47  ;;  %3723 = vmatprep.subr.bf16.mxu0 %v3722_v34 }
 0xb83   : > { %3693 = vmatpush3.bf16.msra.mxu1 %v3692_v52  ;;  %3725 = vmatpush3.bf16.msra.mxu0 %v3724_v53  ;;  %v2225_v52 = vld [vmem:[%s5355_s11 + $0x8] sm:$0xf] }
 0xb84   : > { %3695 = vmatprep.subr.bf16.mxu1 %v3694_v57  ;;  %3727 = vmatprep.subr.bf16.mxu0 %v3726_v61  ;;  %v2230_v54 = vrot.slane %v2225_v52, %v4167_v42  ;;  %v2238_v55 = vrot.slane %v2225_v52, %v4576_v14  ;;  %v2234_v57 = vrot.slane %v2225_v52, %v4579_v16  ;;  %v2598_v61 = vld [vmem:[%s5354_s10 + $0x60] sm:$0xff] }
 0xb85   : > { %v2242_v58 = vrot.slane %v2225_v52, %v4582_v17  ;;  %v2817_v52 = vld [vmem:[%s5356_s12 + $0x718] sm:$0xff] }
 0xb87   : > { %3697 = vmatpush3.bf16.msra.mxu1 %v3696_v62  ;;  %3729 = vmatpush3.bf16.msra.mxu0 %v3728_v3  ;;  %v2602_v62 = vld [vmem:[%s5354_s10 + $0xe0] sm:$0xff] }
 0xb88   : > { %3699 = vmatprep.subr.bf16.mxu1 %v3698_v7  ;;  %3731 = vmatprep.subr.bf16.mxu0 %v3730_v13  ;;  %v2607_v7 = vld [vmem:[%s5354_s10 + $0x168] sm:$0xff]  ;;  %v2609_v13 = vld [vmem:[%s5354_s10 + $0x178] sm:$0xff] }
 0xb89   : > { %v3742_v26 = vpack.c.bf16 %v2611_v12, %v2607_v7  ;;  %v2789_v12 = vld [vmem:[%s5356_s12 + $0x638] sm:$0xff] }
 0xb8b   : > { %3701 = vmatpush3.bf16.msra.mxu1 %v3700_v19  ;;  %3733 = vmatpush3.bf16.msra.mxu0 %v3732_v22  ;;  %v2613_v19 = vld [vmem:[%s5354_s10 + $0x1f8] sm:$0xff]  ;;  %v3740_v22 = vpack.c.bf16 %v2602_v62, %v2598_v61  ;;  %v2787_v61 = vld [vmem:[%s5356_s12 + $0x628] sm:$0xff] }
 0xb8c   : > { %3703 = vmatprep.subr.bf16.mxu1 %v3702_v24  ;;  %3735 = vmatprep.subr.bf16.mxu0 %v3734_v28  ;;  %v3750_v27 = vpack.c.bf16 %v2613_v19, %v2609_v13  ;;  %v2608_v28 = vld [vmem:[%s5354_s10 + $0x170] sm:$0xff]  ;;  %v3798_v19 = vpack.c.bf16 %v2837_v6, %v2836_v5  ;;  %v2829_v5 = vld [vmem:[%s5356_s12 + $0x778] sm:$0xff] }
 0xb8f   : > { %3705 = vmatpush3.bf16.msra.mxu1 %v3704_v29  ;;  %3737 = vmatpush3.bf16.msra.mxu0 %v3736_v32  ;;  %v2612_v29 = vld [vmem:[%s5354_s10 + $0x1f0] sm:$0xff]  ;;  %v2830_v32 = vld [vmem:[%s5356_s12 + $0x780] sm:$0xff] }
 0xb90   : > { %3739 = vmatprep.subr.bf16.mxu1 %v3738_v11  ;;  %3747 = vmatprep.subr.bf16.mxu0 %v3746_v37  ;;  %v3752_v36 = vpack.c.bf16 %v2612_v29, %v2608_v28  ;;  %v2782_v11 = vld [vmem:[%s5356_s12 + $0x600] sm:$0xff]  ;;  %v3754_v37 = vpack.c.bf16 %v2799_v31, %v2798_v30  ;;  %v3802_v28 = vpack.c.bf16 %v2839_v18, %v2838_v41  ;;  %v2791_v29 = vld [vmem:[%s5356_s12 + $0x648] sm:$0xff] }
 0xb91   : > { %v2822_v30 = vld [vmem:[%s5356_s12 + $0x740] sm:$0xff]  ;;  %v2823_v31 = vld [vmem:[%s5356_s12 + $0x748] sm:$0xff] }
 0xc1d   : > { %v3176_v38 = vpop.f32.mrb[16].mxu1  ;;  %v3211_v39 = vpop.f32.mrb[12].mxu0 }
 0xc1e   : > { %v3177_v40 = vpop.f32.mrb[17].mxu1  ;;  %v3212_v43 = vpop.f32.mrb[13].mxu0 }
 0xc1f   : > { %v3178_v44 = vadd.f32 %v3177_v40, %v3176_v38  ;;  %v3213_v45 = vadd.f32 %v3212_v43, %v3211_v39  ;;  %v3786_v38 = vpack.c.bf16 %v2831_v33, %v2830_v32  ;;  %v2814_v39 = vld [vmem:[%s5356_s12 + $0x700] sm:$0xff]  ;;  %v2815_v40 = vld [vmem:[%s5356_s12 + $0x708] sm:$0xff]  ;;  %v2800_v43 = vld [vmem:[%s5356_s12 + $0x690] sm:$0xff]  ;;  %v3804_v33 = vpack.c.bf16 %v2823_v31, %v2822_v30 }
 0xc21   : > { %v2066_v46 = vadd.f32 %v3213_v45, %v3178_v44  ;;  %v2801_v44 = vld [vmem:[%s5356_s12 + $0x698] sm:$0xff]  ;;  %v2832_v45 = vld [vmem:[%s5356_s12 + $0x790] sm:$0xff] }
 0xc3d   : > { %v3246_v47 = vpop.f32.mrb[18].mxu1  ;;  %v3281_v48 = vpop.f32.mrb[14].mxu0 }
 0xc3e   : > { %v3247_v49 = vpop.f32.mrb[19].mxu1  ;;  %v3282_v34 = vpop.f32.mrb[15].mxu0 }
 0xc3f   : > { %v3248_v50 = vadd.f32 %v3247_v49, %v3246_v47  ;;  %v3283_v51 = vadd.f32 %v3282_v34, %v3281_v48  ;;  %v3756_v47 = vpack.c.bf16 %v2783_v9, %v2782_v11  ;;  %v3788_v48 = vpack.c.bf16 %v2815_v40, %v2814_v39  ;;  %v2785_v49 = vld [vmem:[%s5356_s12 + $0x618] sm:$0xff]  ;;  %v2840_v11 = vld [vmem:[%s5356_s12 + $0x7d0] sm:$0xff] }
 0xc40   : > { %v3758_v34 = vpack.c.bf16 %v2801_v44, %v2800_v43  ;;  %v2793_v39 = vld [vmem:[%s5356_s12 + $0x658] sm:$0xff]  ;;  %v2824_v44 = vld [vmem:[%s5356_s12 + $0x750] sm:$0xff] }
 0xc41   : > { %v2136_v53 = vadd.f32 %v3248_v50, %v2066_v46  ;;  %v2833_v46 = vld [vmem:[%s5356_s12 + $0x798] sm:$0xff] }
 0xc42   : > { %v3790_v50 = vpack.c.bf16 %v2833_v46, %v2832_v45  ;;  %v2825_v45 = vld [vmem:[%s5356_s12 + $0x758] sm:$0xff] }
 0xc43   : > { %v5046_v56 = vadd.f32 %v3283_v51, %v2136_v53  ;;  %v2816_v51 = vld [vmem:[%s5356_s12 + $0x710] sm:$0xff]  ;;  %v2802_v53 = vld [vmem:[%s5356_s12 + $0x6a0] sm:$0xff]  ;;  %v3808_v46 = vpack.c.bf16 %v2825_v45, %v2824_v44 }
 0xc45   : > { %v2313_v59 = vpop.f32.mrb[20].mxu1  ;;  %v2384_v60 = vpop.f32.mrb[16].mxu0 }
 0xc46   : > { %v2314_v63 = vadd.f32 %v2313_v59, %v2230_v54  ;;  %v2385_v2 = vadd.f32 %v2384_v60, %v2238_v55  ;;  %v2315_v3 = vpop.f32.mrb[21].mxu1  ;;  %v2386_v4 = vpop.f32.mrb[17].mxu0  ;;  %v2803_v54 = vld [vmem:[%s5356_s12 + $0x6a8] sm:$0xff]  ;;  %v2834_v55 = vld [vmem:[%s5356_s12 + $0x7a0] sm:$0xff]  ;;  %v3792_v59 = vpack.c.bf16 %v2817_v52, %v2816_v51 }
 0xc47   : > { %v2316_v8 = vadd.f32 %v2315_v3, %v2234_v57  ;;  %v2387_v10 = vadd.f32 %v2386_v4, %v2242_v58  ;;  %v2835_v57 = vld [vmem:[%s5356_s12 + $0x7a8] sm:$0xff]  ;;  %v2786_v60 = vld [vmem:[%s5356_s12 + $0x620] sm:$0xff]  ;;  %v3762_v62 = vpack.c.bf16 %v2803_v54, %v2802_v53  ;;  %v2804_v3 = vld [vmem:[%s5356_s12 + $0x6b0] sm:$0xff] }
 0xc48   : > { %v2389_v24 = vmax.f32 %v2314_v63, 0.0  ;;  %v2391_v25 = vmax.f32 %v2385_v2, 0.0  ;;  %v3794_v63 = vpack.c.bf16 %v2835_v57, %v2834_v55  ;;  %v2819_v2 = vld [vmem:[%s5356_s12 + $0x728] sm:$0xff]  ;;  %v2805_v4 = vld [vmem:[%s5356_s12 + $0x6b8] sm:$0xff]  ;;  %v3764_v7 = vpack.c.bf16 %v2787_v61, %v2786_v60  ;;  %v2826_v54 = vld [vmem:[%s5356_s12 + $0x760] sm:$0xff] }
 0xc49   : > { %v2390_v21 = vmax.f32 %v2316_v8, 0.0  ;;  %v2392_v1 = vmax.f32 %v2387_v10, 0.0  ;;  %v2788_v10 = vld [vmem:[%s5356_s12 + $0x630] sm:$0xff]  ;;  %v3766_v13 = vpack.c.bf16 %v2805_v4, %v2804_v3  ;;  %v2795_v51 = vld [vmem:[%s5356_s12 + $0x668] sm:$0xff] }
 0xc4a   : > { %v2827_v55 = vld [vmem:[%s5356_s12 + $0x768] sm:$0xff]  ;;  %v2844_v60 = vld [vmem:[%s5356_s12 + $0x7f0] sm:$0xff] }
 0xc4b   : > { %2521 = vmatprep.mubr.f32.mxu1 %v2390_v21  ;;  %2591 = vmatprep.mubr.f32.mxu0 %v2392_v1  ;;  %v2820_v21 = vld [vmem:[%s5356_s12 + $0x730] sm:$0xff]  ;;  %v2821_v1 = vld [vmem:[%s5356_s12 + $0x738] sm:$0xff]  ;;  %v3812_v57 = vpack.c.bf16 %v2827_v55, %v2826_v54 }
 0xc4c   : > { %2522 = vmatmul.mubr.f32.vlgmr.msra.gmra.mrb[22].mxu1 %v2389_v24  ;;  %2592 = vmatmul.mubr.f32.vlgmr.msra.gmra.mrb[18].mxu0 %v2391_v25  ;;  %v3768_v24 = vpack.c.bf16 %v2789_v12, %v2788_v10  ;;  %v3800_v25 = vpack.c.bf16 %v2821_v1, %v2820_v21  ;;  %v2828_v4 = vld [vmem:[%s5356_s12 + $0x770] sm:$0xff]  ;;  %v2614_v21 = vld [vmem:[%s5355_s11 + $0xc] sm:$0xf] }
 0xc4d   : > { %3741 = vmatpush1.bf16.msra.mxu1 %v3740_v22  ;;  %3749 = vmatpush1.bf16.msra.mxu0 %v3748_v23  ;;  %v2806_v22 = vld [vmem:[%s5356_s12 + $0x6c0] sm:$0xff]  ;;  %v2807_v23 = vld [vmem:[%s5356_s12 + $0x6c8] sm:$0xff]  ;;  %v3816_v6 = vpack.c.bf16 %v2829_v5, %v2828_v4  ;;  %v2623_v18 = vrot.slane %v2614_v21, %v4579_v16 }
 0xc4e   : > { %3743 = vmatprep.subr.bf16.mxu1 %v3742_v26  ;;  %3751 = vmatprep.subr.bf16.mxu0 %v3750_v27  ;;  %v2790_v26 = vld [vmem:[%s5356_s12 + $0x640] sm:$0xff]  ;;  %v3770_v27 = vpack.c.bf16 %v2807_v23, %v2806_v22  ;;  %v2619_v22 = vrot.slane %v2614_v21, %v4167_v42  ;;  %v2627_v23 = vrot.slane %v2614_v21, %v4576_v14 }
 0xc4f   : > { %2700 = vmatprep.mubr.f32.mxu1 %v3962_v0  ;;  %2771 = vmatprep.mubr.f32.mxu0 %v3962_v0  ;;  %v2784_v0 = vld [vmem:[%s5356_s12 + $0x610] sm:$0xff]  ;;  %v3772_v32 = vpack.c.bf16 %v2791_v29, %v2790_v26 }
 0xc50   : > { %v3760_v58 = vpack.c.bf16 %v2785_v49, %v2784_v0  ;;  %v2842_v0 = vld [vmem:[%s5356_s12 + $0x7e0] sm:$0xff] }
 0xc51   : > { %3745 = vmatpush1.bf16.msra.mxu1 %v3744_v35  ;;  %3753 = vmatpush1.bf16.msra.mxu0 %v3752_v36  ;;  %v2808_v35 = vld [vmem:[%s5356_s12 + $0x6d0] sm:$0xff]  ;;  %v2809_v36 = vld [vmem:[%s5356_s12 + $0x6d8] sm:$0xff] }
 0xc52   : > { %3755 = vmatprep.subr.bf16.mxu1 %v3754_v37  ;;  %3787 = vmatprep.subr.bf16.mxu0 %v3786_v38  ;;  %v3774_v9 = vpack.c.bf16 %v2809_v36, %v2808_v35  ;;  %v2841_v37 = vld [vmem:[%s5356_s12 + $0x7d8] sm:$0xff]  ;;  %v2792_v38 = vld [vmem:[%s5356_s12 + $0x650] sm:$0xff] }
 0xc53   : > { %v3806_v40 = vpack.c.bf16 %v2841_v37, %v2840_v11  ;;  %v3776_v43 = vpack.c.bf16 %v2793_v39, %v2792_v38  ;;  %v3113_v38 = vld [vmem:[%s5357_s13] ss:$0 sm:$0xff] }
 0xc54   : > { %3111 = vmatmul.mubr.msk.f32.vlgmr.msra.gmra.mrb[24].mxu1 %vm480_vm0, %v4346_v20  ;;  %3112 = vmatmul.mubr.msk.f32.vlgmr.msra.gmra.mrb[20].mxu0 %vm480_vm0, %v4346_v20  ;;  %v2818_v20 = vld [vmem:[%s5356_s12 + $0x720] sm:$0xff] }
 0xc55   : > { %3757 = vmatpush3.bf16.msra.mxu1 %v3756_v47  ;;  %3789 = vmatpush3.bf16.msra.mxu0 %v3788_v48  ;;  %v3796_v8 = vpack.c.bf16 %v2819_v2, %v2818_v20  ;;  %v2810_v47 = vld [vmem:[%s5356_s12 + $0x6e0] sm:$0xff]  ;;  %v2811_v48 = vld [vmem:[%s5356_s12 + $0x6e8] sm:$0xff]  ;;  %v2797_v20 = vld [vmem:[%s5356_s12 + $0x678] sm:$0xff] }
 0xc56   : > { %3759 = vmatprep.subr.bf16.mxu1 %v3758_v34  ;;  %3791 = vmatprep.subr.bf16.mxu0 %v3790_v50  ;;  %v3778_v49 = vpack.c.bf16 %v2811_v48, %v2810_v47  ;;  %v2843_v34 = vld [vmem:[%s5356_s12 + $0x7e8] sm:$0xff]  ;;  %v2794_v50 = vld [vmem:[%s5356_s12 + $0x660] sm:$0xff] }
 0xc57   : > { %v3810_v52 = vpack.c.bf16 %v2843_v34, %v2842_v0  ;;  %v3780_v53 = vpack.c.bf16 %v2795_v51, %v2794_v50 }
 0xc59   : > { %3761 = vmatpush3.bf16.msra.mxu1 %v3760_v58  ;;  %3793 = vmatpush3.bf16.msra.mxu0 %v3792_v59  ;;  %v2812_v58 = vld [vmem:[%s5356_s12 + $0x6f0] sm:$0xff]  ;;  %v2813_v59 = vld [vmem:[%s5356_s12 + $0x6f8] sm:$0xff] }
 0xc5a   : > { %3763 = vmatprep.subr.bf16.mxu1 %v3762_v62  ;;  %3795 = vmatprep.subr.bf16.mxu0 %v3794_v63  ;;  %v3782_v61 = vpack.c.bf16 %v2813_v59, %v2812_v58  ;;  %v2845_v62 = vld [vmem:[%s5356_s12 + $0x7f8] sm:$0xff]  ;;  %v2796_v63 = vld [vmem:[%s5356_s12 + $0x670] sm:$0xff] }
 0xc5b   : > { %v3814_v2 = vpack.c.bf16 %v2845_v62, %v2844_v60  ;;  %v3784_v3 = vpack.c.bf16 %v2797_v20, %v2796_v63 }
 0xc5d   : > { %3765 = vmatpush3.bf16.msra.mxu1 %v3764_v7  ;;  %3797 = vmatpush3.bf16.msra.mxu0 %v3796_v8 }
 0xc5e   : > { %3767 = vmatprep.subr.bf16.mxu1 %v3766_v13  ;;  %3799 = vmatprep.subr.bf16.mxu0 %v3798_v19 }
 0xc61   : > { %3769 = vmatpush3.bf16.msra.mxu1 %v3768_v24  ;;  %3801 = vmatpush3.bf16.msra.mxu0 %v3800_v25  ;;  %v2631_v24 = vrot.slane %v2614_v21, %v4582_v17 }
 0xc62   : > { %3771 = vmatprep.subr.bf16.mxu1 %v3770_v27  ;;  %3803 = vmatprep.subr.bf16.mxu0 %v3802_v28 }
 0xc65   : > { %3773 = vmatpush3.bf16.msra.mxu1 %v3772_v32  ;;  %3805 = vmatpush3.bf16.msra.mxu0 %v3804_v33 }
 0xc66   : > { %3775 = vmatprep.subr.bf16.mxu1 %v3774_v9  ;;  %3807 = vmatprep.subr.bf16.mxu0 %v3806_v40 }
 0xc69   : > { %3777 = vmatpush3.bf16.msra.mxu1 %v3776_v43  ;;  %3809 = vmatpush3.bf16.msra.mxu0 %v3808_v46 }
 0xc6a   : > { %3779 = vmatprep.subr.bf16.mxu1 %v3778_v49  ;;  %3811 = vmatprep.subr.bf16.mxu0 %v3810_v52 }
 0xc6d   : > { %3781 = vmatpush3.bf16.msra.mxu1 %v3780_v53  ;;  %3813 = vmatpush3.bf16.msra.mxu0 %v3812_v57 }
 0xc6e   : > { %3783 = vmatprep.subr.bf16.mxu1 %v3782_v61  ;;  %3815 = vmatprep.subr.bf16.mxu0 %v3814_v2 }
 0xc71   : > { %3785 = vmatpush3.bf16.msra.mxu1 %v3784_v3  ;;  %3817 = vmatpush3.bf16.msra.mxu0 %v3816_v6 }
 0xd1f   : > { %v3316_v7 = vpop.f32.mrb[22].mxu1  ;;  %v3351_v8 = vpop.f32.mrb[18].mxu0 }
 0xd20   : > { %v3317_v10 = vpop.f32.mrb[23].mxu1  ;;  %v3352_v12 = vpop.f32.mrb[19].mxu0 }
 0xd21   : > { %v3318_v13 = vadd.f32 %v3317_v10, %v3316_v7  ;;  %v3353_v19 = vadd.f32 %v3352_v12, %v3351_v8 }
 0xd23   : > { %v2594_v1 = vadd.f32 %v3353_v19, %v3318_v13 }
 0xd25   : > { %v2597_v41 = vadd.f32 %v2594_v1, %v5046_v56 }
 0xd27   : > { %v2702_v25 = vpop.f32.mrb[24].mxu1  ;;  %v2773_v26 = vpop.f32.mrb[20].mxu0 }
 0xd28   : > { %v2703_v27 = vadd.f32 %v2702_v25, %v2619_v22  ;;  %v2774_v28 = vadd.f32 %v2773_v26, %v2627_v23  ;;  %v2704_v29 = vpop.f32.mrb[25].mxu1  ;;  %v2775_v30 = vpop.f32.mrb[21].mxu0 }
 0xd29   : > { %v2705_v31 = vadd.f32 %v2704_v29, %v2623_v18  ;;  %v2776_v32 = vadd.f32 %v2775_v30, %v2631_v24 }
 0xd2a   : > { %v2778_v42 = vmax.f32 %v2703_v27, 0.0  ;;  %v2780_v36 = vmax.f32 %v2774_v28, 0.0 }
 0xd2b   : > { %v2779_v33 = vmax.f32 %v2705_v31, 0.0  ;;  %v2781_v35 = vmax.f32 %v2776_v32, 0.0 }
 0xd2d   : > { %2910 = vmatprep.mubr.f32.mxu1 %v2779_v33  ;;  %2980 = vmatprep.mubr.f32.mxu0 %v2781_v35 }
 0xd2e   : > { %2911 = vmatmul.mubr.f32.vlgmr.msra.gmra.mrb[26].mxu1 %v2778_v42  ;;  %2981 = vmatmul.mubr.f32.vlgmr.msra.gmra.mrb[22].mxu0 %v2780_v36 }
 0xe01   : > { %v3386_v14 = vpop.f32.mrb[26].mxu1  ;;  %v3421_v16 = vpop.f32.mrb[22].mxu0 }
 0xe02   : > { %v3387_v17 = vpop.f32.mrb[27].mxu1  ;;  %v3422_v56 = vpop.f32.mrb[23].mxu0 }
 0xe03   : > { %v3388_v11 = vadd.f32 %v3387_v17, %v3386_v14  ;;  %v3423_v9 = vadd.f32 %v3422_v56, %v3421_v16 }
 0xe05   : > { %v2983_v37 = vadd.f32 %v3423_v9, %v3388_v11 }
 0xe07   : > { %v2986_v39 = vadd.f32 %v2983_v37, %v2597_v41 }
 0xe09   : > { %v2994_v40 = vadd.f32 %v3113_v38, %v2986_v39 }
 0xe0b   : > { %v2995_v43 = vadd.f32 %v2994_v40, %v4239_v15 }
 0xe0d   : > { %2996 = vst.msk [vmem:[%s469_s18] sm:$0xff] %vm480_vm0, %v2995_v43 }
 0xe0e   : > { %3911 = shalt.err (!%p3908_p3)
}
 0xe0f   : > { %s3912_s21 = scalar_lea.hbm %s5301_s1, 128  ;;  %s3916_s18 = scalar_lea.hbm %s5358_s14, 256 }
 0xe10   : > { %p3913_p4 = scmp.ne.s32.totalorder %s5301_s1, %s3912_s21  ;;  %p3917_p9 = scmp.lt.u32.totalorder %s5301_s1, %s5358_s14 }
 0xe11   : > { %p3918_p10 = scmp.lt.u32.totalorder %s3916_s18, %s3912_s21  ;;  %p3920_p12 = scmp.lt.u32.totalorder %s3912_s21, %s5301_s1 }
 0xe12   : > { %p3914_p7 = pnand %p3913_p4, %p4093_p5 }
 0xe13   : > { %p3919_p11 = por %p3918_p10, %p3917_p9 }
 0xe14   : > { %p3915_p8 = pneg %p3914_p7 }
 0xe15   : > { %p3921_p13 = por %p3920_p12, %p3919_p11 }
 0xe17   : > { %p3922_p0 = pnand %p3921_p13, %p3915_p8 }
 0xe19   : > { %3925 = shalt.err (!%p3922_p0)
}
 0xe1a   : > { %3818 = dma.vmem_to_hbm [thread:$0]  (%p4093_p5), %s5303_s0, 128, %s5301_s1, %s2998_s25  }
 0xe1b PF: > { %p3824_p1 = scmp.ge.s32.totalorder %s3960_s16, 2  ;;  %s3023_s2 = sand.u32 1, %s3948_s29  }
 0xe1c   : > { %s3024_s17 = scalar_lea.sflag [#allocation4], %s3023_s2 }
 0xe1d   : > { %p3821_p2 = pnand %p3824_p1, %p4097_p6 }
 0xe1f   : > { %3943 = dma.done.wait (!%p3821_p2), %s3024_s17, 128  }
 0xe20   : > { %3945 = vsyncadd (!%p3821_p2), %s3024_s17, 4294967168  ;;  %s5370_s27 = sld [smem:[#allocation6_spill]]  ;;  %p24_p3 = scmp.ge.s32.totalorder %s4080_s19, 4  }
 0xe21   : > { %s5371_s29 = smov %s3952_s30  ;;  %s5372_s30 = smov %s3956_s15 }
 0xe22   : > { %s5374_s16 = smov %s4080_s19  ;;  %26 = sbr.rel (!%p24_p3) target bundleno = 8 (0x8), region = 114 }
 0xe26   : > { %s5373_s15 = smov %s5370_s27 }
 0xe29   :  { %3029 = vsyncpa [#allocation4], 1 }
 0xe2a   :  { %3031 = vsyncpa [#allocation4 + $0x1], 1 }

// kernel: tpu_custom_call.1
= control target key start
LH: loop header
LB: loop body
LE: loop exit
PB: predicated region body
PF: predicated region fallthrough
CT: control target
= control target key end

     0   :  { %s5344_s0 = inlined_call_operand.vmem [shape: f32[16,32], index: 0, kind: input, shape index: {}]   ;;  %s5345_s1 = inlined_call_operand.vmem [shape: f32[2,1,8], index: 1, kind: input, shape index: {}]   ;;  %s5346_s2 = inlined_call_operand.vmem [shape: f32[32,96], index: 2, kind: input, shape index: {}]   ;;  %s5347_s3 = inlined_call_operand.vmem [shape: f32[1,96], index: 3, kind: input, shape index: {}]   ;;  %s5348_s4 = inlined_call_operand.vmem [shape: f32[32,32], index: 4, kind: input, shape index: {}]   ;;  %s5349_s5 = inlined_call_operand.vmem [shape: f32[1,32], index: 5, kind: input, shape index: {}]   ;;  %s5350_s6 = inlined_call_operand.vmem [shape: f32[1,32], index: 6, kind: input, shape index: {}]   ;;  %s5351_s7 = inlined_call_operand.vmem [shape: f32[1,32], index: 7, kind: input, shape index: {}]   ;;  %s5352_s8 = inlined_call_operand.vmem [shape: f32[1,32], index: 8, kind: input, shape index: {}]   ;;  %s5353_s9 = inlined_call_operand.vmem [shape: f32[1,32], index: 9, kind: input, shape index: {}]   ;;  %s5354_s10 = inlined_call_operand.vmem [shape: f32[32,2048], index: 10, kind: input, shape index: {}]   ;;  %s5355_s11 = inlined_call_operand.vmem [shape: f32[1,2048], index: 11, kind: input, shape index: {}]   ;;  %s5356_s12 = inlined_call_operand.vmem [shape: f32[2048,32], index: 12, kind: input, shape index: {}]   ;;  %s5357_s13 = inlined_call_operand.vmem [shape: f32[1,32], index: 13, kind: input, shape index: {}]   ;;  %s5358_s14 = inlined_call_operand.hbm [shape: f32[16,32], index: 14, kind: output, shape index: {}]  }
   0x1   :  { %5359 = sst [smem:[#allocation7_spill]] %s5344_s0 }
   0x2   :  { %5360 = sst [smem:[#allocation8_spill]] %s5345_s1 }
   0x3   :  { %5361 = sst [smem:[#allocation9_spill]] %s5346_s2 }
   0x4   :  { %5362 = sst [smem:[#allocation10_spill]] %s5347_s3 }
   0x5   :  { %19 = vsyncpa [#allocation4], 0 }
   0x6   :  { %21 = vsyncpa [#allocation4 + $0x1], 0  ;;  %s4055_s29 = smov 0   ;;  %s4057_s30 = smov 0  }
   0x7   :  { %s4059_s15 = smov 0   ;;  %s4061_s16 = smov 0  }
   0x8 LB: > { %s4076_s17 = sadd.s32 4294967295, %s3960_s16   ;;  %s3079_s18 = sadd.s32 4294967294, %s3960_s16   ;;  %s3960_s16 = sphi %s4061_s16, %s5374_s16   ;;  %s3956_s15 = sphi %s4059_s15, %s5373_s15   ;;  %s3952_s30 = sphi %s4057_s30, %s5372_s30   ;;  %s3948_s29 = sphi %s4055_s29, %s5371_s29  }
   0x9   : > { %s4080_s19 = sadd.s32 1, %s3960_s16   ;;  %s338_s20 = sadd.s32 1, %s3956_s15 }
   0xa   : > { %s335_s21 = ssub.s32 %s3960_s16, %s4080_s19  ;;  %p348_p0 = scmp.ne.s32.totalorder %s3956_s15, %s3952_s30 }
   0xb   : > { %p336_p1 = scmp.eq.s32.totalorder %s335_s21, 0  ;;  %p349_p2 = scmp.eq.s32.totalorder %s4076_s17, 1 }
   0xc   : > { %p354_p3 = scmp.ne.s32.totalorder %s3952_s30, %s3948_s29  ;;  %p355_p4 = scmp.eq.s32.totalorder %s3079_s18, 1 }
   0xd   : > { %s4091_s22 = scalar_select %p336_p1, %s3956_s15, %s338_s20  }
   0xe   : > { %p4093_p5 = por %p349_p2, %p348_p0  ;;  %p4097_p6 = por %p355_p4, %p354_p3 }
   0xf   : > { %5363 = sst [smem:[#allocation6_spill]] %s4091_s22  ;;  %p3082_p7 = scmp.ge.s32.totalorder %s3960_s16, 1 }
  0x10   : > { %p422_p8 = scmp.lt.s32.totalorder %s3960_s16, 3 }
  0x12   : > { %p423_p9 = pnand %p3082_p7, %p422_p8 }
  0x13   : > { %p470_p10 = scmp.lt.s32.totalorder (!%p423_p9), %s4076_s17, 1  ;;  %v3962_v0 = vmov (!%p423_p9), 0.0   ;;  %vm480_vm0 = vcmask (!%p423_p9), 261120   ;;  %s5366_s0 = sld [smem:[#allocation7_spill]] (!%p423_p9)  ;;  %v3963_v11 = vmov (!%p423_p9), 0.0|0.0   ;;  %vm3964_vm1 = vmmov (!%p423_p9), 0  }
  0x14   : > { %426 = sbr.rel (%p423_p9) target bundleno = 3611 (0xe1b), region = 76  ;;  %3435 = vmatprep.subr.mxu1 (!%p423_p9), %v3962_v0  ;;  %s5367_s2 = sld [smem:[#allocation9_spill]] (!%p423_p9)  ;;  %3486 = vmatprep.subr.bf16.mxu0 (!%p423_p9), %v3963_v11  ;;  %v3085_v27 = vld [vmem:[%s5350_s6] ss:$0 sm:$0xff] (!%p423_p9)  ;;  %vm616_vm4 = vcmask (!%p423_p9), 64512   ;;  %v608_v39 = vlaneseq (!%p423_p9)  ;;  %vm955_vm6 = vcmask (!%p423_p9), 130112  }
  0x15   : > { %3432 = vmatprep.mubr.msk.f32.mxu0 (!%p423_p9), %vm3964_vm1, %v3962_v0  ;;  %3437 = vmatprep.mubr.msk.f32.mxu1 (!%p423_p9), %vm3964_vm1, %v3962_v0  ;;  %v3086_v29 = vld [vmem:[%s5351_s7] ss:$0 sm:$0xff] (!%p423_p9)  ;;  %s5368_s3 = sld [smem:[#allocation10_spill]] (!%p423_p9)  ;;  %s3965_s28 = smov (!%p423_p9), 64   ;;  %vm1129_vm7 = vcmask (!%p423_p9), 195712   ;;  %vm1303_vm8 = vcmask (!%p423_p9), 261312  }
  0x16   : > { %s5369_s1 = sld [smem:[#allocation8_spill]] (!%p423_p9)  ;;  %v4164_v41 = vshrl.u32 (!%p423_p9), %v608_v39, 7  ;;  %s3968_s21 = smov (!%p423_p9), 88  }
  0x17   : > { %s3969_s27 = smov (!%p423_p9), 120   ;;  %s3974_s22 = smov (!%p423_p9), 40  }
  0x18   : > { %v4167_v42 = vsub.s32 (!%p423_p9), 0, %v4164_v41 }
  0x1a   : > { %v519_v8 = vld [vmem:[%s5367_s2] sm:$0xff] (!%p423_p9)  ;;  %v520_v9 = vld [vmem:[%s5367_s2 + $0x8] sm:$0xff] (!%p423_p9)  ;;  %v521_v10 = vld [vmem:[%s5367_s2 + $0x10] sm:$0xff] (!%p423_p9) }
  0x1b   : > { %s4106_s25 = scalar_select %p470_p10, %s4076_s17, 1  ;;  %v3487_v12 = vpack.c.bf16 %v520_v9, %v519_v8  ;;  %v522_v13 = vld [vmem:[%s5367_s2 + $0x18] sm:$0xff]  ;;  %v3087_v32 = vld [vmem:[%s5368_s3] ss:$0 sm:$0xff] }
  0x1c   : > { %v3490_v14 = vpack.c.bf16 %v522_v13, %v521_v10 }
  0x1d   : > { %s3084_s26 = sshll.u32 %s4106_s25, 3  ;;  %3488 = vmatpush3.bf16.msra.mxu0 %v3487_v12  ;;  %s476_s20 = scalar_lea.vmem %s5369_s1, %s4106_s25 }
  0x1e   : > { %s473_s18 = scalar_lea.vmem %s5366_s0, %s3084_s26  ;;  %3489 = vmatprep.subr.bf16.mxu0 %v3963_v11  ;;  %v603_v40 = vld [vmem:[%s476_s20] sm:$0x1]  ;;  %s3967_s25 = smov 80  }
  0x1f   : > { %v4112_v1 = vld [vmem:[%s473_s18] sm:$0xff]  ;;  %s3966_s18 = smov 96   ;;  %vm604_vm5 = vcmp.eq.f32.partialorder %v603_v40, 0.0  ;;  %s3970_s26 = smov 112  }
  0x20   : > { %v481_v2 = vsel %vm480_vm0, %v4112_v1, 0.0  ;;  %v605_v43 = vsel %vm604_vm5, -1e+09, %v3962_v0  ;;  %s3973_s0 = smov 48   ;;  %s3975_s20 = smov 56  }
  0x21   : > { %482 = vadd.xlane.f32.xlu0 %v481_v2  ;;  %3491 = vmatpush3.bf16.msra.mxu0 %v3490_v14  ;;  %v4171_v44 = vrot.slane %v605_v43, %v4167_v42 }
  0x22   : > { %3455 = vmatprep.subr.mxu0 %v3962_v0 }
  0xae   : > { %v483_v3 = vpop.xlane.xlu0 %482 }
  0xaf   : > { %v485_v4 = vmul.f32 0.03125, %v483_v3 }
  0xb1   : > { %v486_v5 = vsub.f32 %v4112_v1, %v485_v4 }
  0xb3   : > { %v487_v6 = vmul.f32 %v486_v5, %v486_v5 }
  0xb5   : > { %v488_v7 = vsel %vm480_vm0, %v487_v6, 0.0 }
  0xb6   : > { %489 = vadd.xlane.f32.xlu0 %v488_v7 }
 0x143   : > { %v490_v15 = vpop.xlane.xlu0 %489 }
 0x144   : > { %v491_v16 = vmul.f32 0.032258064, %v490_v15 }
 0x146   : > { %3874 = vrsqrt.f32 %v491_v16  ;;  %vm494_vm2 = vcmp.eq.f32.partialorder %v491_v16, inf  ;;  %v497_v19 = vand.u32 2147483648, %v491_v16  ;;  %vm496_vm3 = vcmp.eq.f32.partialorder %v491_v16, 0.0 }
 0x150   : > { %v3875_v17 = vpop.eup %3874 }
 0x151   : > { %v493_v18 = vmul.f32 %v3875_v17, %v491_v16 }
 0x153   : > { %v495_v20 = vsel %vm494_vm2, %v491_v16, %v493_v18 }
 0x154   : > { %v498_v21 = vsel %vm496_vm3, %v497_v19, %v495_v20 }
 0x155   : > { %v499_v22 = vadd.f32 1e-06, %v498_v21 }
 0x157   : > { %3876 = vrcp.f32 %v499_v22 }
 0x161   : > { %v3877_v23 = vpop.eup %3876 }
 0x162   : > { %v501_v24 = vmul.f32 %v3877_v23, %v499_v22 }
 0x164   : > { %v502_v25 = vsub.f32 2.0, %v501_v24 }
 0x166   : > { %v503_v26 = vmul.f32 %v3877_v23, %v502_v25 }
 0x168   : > { %v504_v28 = vmul.f32 %v503_v26, %v486_v5 }
 0x16a   : > { %v511_v30 = vmul.f32 %v3085_v27, %v504_v28 }
 0x16c   : > { %v518_v31 = vadd.f32 %v3086_v29, %v511_v30 }
 0x16e   : > { %3433 = vmatmul.mubr.msk.f32.vlgmr.msra.gmra.mrb[0].mxu0 %vm480_vm0, %v518_v31 }
 0x16f   : > { %3457 = vmatprep.mubr.msk.f32.mxu0 %vm3964_vm1, %v3962_v0 }
 0x241   : > { %v599_v33 = vpop.f32.mrb[0].mxu0 }
 0x242   : > { %v4149_v34 = vadd.f32 %v3087_v32, %v599_v33  ;;  %v3434_v35 = vpop.f32.mrb[1].mxu0 }
 0x244   : > { %706 = vrot.lane.b32.xlu0 %v4149_v34, %s3965_s28  ;;  %614 = vrot.lane.b32.xlu1 %v4149_v34, %s3966_s18  ;;  %v606_v37 = vmul.f32 0.35355338, %v4149_v34  ;;  %s3971_s28 = smov 72   ;;  %s3972_s18 = smov 104  }
 0x2b6   : > { %v615_v36 = vpop.permute.xlu1 %614  ;;  %v707_v38 = vpop.permute.xlu0 %706 }
 0x2b7   : > { %3436 = vmatpush3.xpose.msk.msra.mxu1 %vm616_vm4, %v615_v36 }
 0x2b8   : > { %3440 = vmatprep.subr.mxu1 %v3962_v0 }
 0x2ba   : > { %3438 = vmatmul.mubr.msk.f32.vlgmr.msra.gmra.mrb[0].mxu1 %vm616_vm4, %v606_v37 }
 0x2bb   : > { %3441 = vmatpush3.msra.mxu1 %v707_v38  ;;  %3442 = vmatprep.mubr.msk.f32.mxu1 %vm3964_vm1, %v3962_v0 }
 0x2bc   : > { %3445 = vmatprep.subr.mxu1 %v3962_v0 }
 0x38d   : > { %v688_v45 = vpop.f32.mrb[0].mxu1 }
 0x38e   : > { %v689_v46 = vadd.f32 %v688_v45, %v4171_v44  ;;  %v3439_v47 = vpop.f32.mrb[1].mxu1 }
 0x390   : > { %v692_v48 = vsel %vm616_vm4, %v689_v46, -inf }
 0x391   : > { %693 = vmax.xlane.f32.xlu1 %v692_v48 }
 0x3a2   : > { %959 = vrot.lane.b32.xlu1 %v4149_v34, %s3967_s25  ;;  %s3977_s25 = smov 16  }
 0x41e   : > { %v694_v49 = vpop.xlane.xlu1 %693 }
 0x41f   : > { %v695_v50 = vsub.f32 %v689_v46, %v694_v49 }
 0x421   : > { %v696_v51 = vmul.f32 1.442695, %v695_v50 }
 0x422   : > { %v960_v52 = vpop.permute.xlu1 %959 }
 0x423   : > { %3878 = vpow2.f32 %v696_v51  ;;  %3456 = vmatpush3.xpose.msk.msra.mxu0 %vm616_vm4, %v960_v52 }
 0x424   : > { %3465 = vmatprep.subr.mxu0 %v3962_v0 }
 0x42d   : > { %v3879_v53 = vpop.eup %3878 }
 0x42e   : > { %v698_v54 = vsel %vm616_vm4, %v3879_v53, 0.0 }
 0x42f   : > { %699 = vadd.xlane.f32.xlu0 %v698_v54 }
 0x445   : > { %785 = vrot.lane.b32.xlu0 %v4149_v34, %s3968_s21  ;;  %s3978_s21 = smov 24  }
 0x449   : > { %783 = vrot.lane.b32.xlu0 %v606_v37, %s3969_s27 }
 0x44d   : > { %957 = vrot.lane.b32.xlu0 %v606_v37, %s3970_s26 }
 0x451   : > { %1133 = vrot.lane.b32.xlu0 %v4149_v34, %s3971_s28  ;;  %s3115_s28 = sshll.u32 %s4076_s17, 7  ;;  %s3979_s17 = smov [#allocation3]  }
 0x452   : > { %s5301_s1 = scalar_lea.hbm %s5358_s14, %s3115_s28 }
 0x455   : > { %1131 = vrot.lane.b32.xlu0 %v606_v37, %s3972_s18 }
 0x4bc   : > { %v700_v55 = vpop.xlane.xlu0 %699 }
 0x4bd   : > { %3880 = vrcp.f32 %v700_v55 }
 0x4c0   : > { %v786_v56 = vpop.permute.xlu0 %785 }
 0x4c4   : > { %v784_v57 = vpop.permute.xlu0 %783 }
 0x4c7   : > { %v3881_v58 = vpop.eup %3880 }
 0x4c8   : > { %v702_v59 = vmul.f32 %v3881_v58, %v700_v55  ;;  %v958_v60 = vpop.permute.xlu0 %957 }
 0x4c9   : > { %3458 = vmatmul.mubr.msk.f32.vlgmr.msra.gmra.mrb[2].mxu0 %vm616_vm4, %v958_v60  ;;  %v1308_v60 = vld [vmem:[%s5348_s4 + $0x10] sm:$0xff] }
 0x4ca   : > { %v703_v61 = vsub.f32 2.0, %v702_v59  ;;  %3467 = vmatprep.mubr.msk.f32.mxu0 %vm3964_vm1, %v3962_v0 }
 0x4cc   : > { %v704_v62 = vmul.f32 %v3881_v58, %v703_v61  ;;  %v1134_v63 = vpop.permute.xlu0 %1133  ;;  %v1307_v58 = vld [vmem:[%s5348_s4 + $0x8] sm:$0xff]  ;;  %v1309_v61 = vld [vmem:[%s5348_s4 + $0x18] sm:$0xff] }
 0x4cd   : > { %3466 = vmatpush3.xpose.msk.msra.mxu0 %vm616_vm4, %v1134_v63 }
 0x4ce   : > { %v705_v2 = vmul.f32 %v3879_v53, %v704_v62  ;;  %3492 = vmatprep.subr.bf16.mxu0 %v3963_v11  ;;  %v3496_v62 = vpack.c.bf16 %v1309_v61, %v1308_v60 }
 0x4d0   : > { %3443 = vmatmul.mubr.msk.f32.vlgmr.msra.gmra.mrb[2].mxu1 %vm616_vm4, %v705_v2  ;;  %v1132_v3 = vpop.permute.xlu0 %1131 }
 0x4d1   : > { %3446 = vmatpush3.xpose.msk.msra.mxu1 %vm616_vm4, %v786_v56  ;;  %3468 = vmatmul.mubr.msk.f32.vlgmr.msra.gmra.mrb[4].mxu0 %vm616_vm4, %v1132_v3 }
 0x4d2   : > { %3447 = vmatprep.mubr.msk.f32.mxu1 %vm3964_vm1, %v3962_v0  ;;  %3450 = vmatprep.subr.mxu1 %v3962_v0 }
 0x4d3   : > { %3483 = vmatprep.mubr.msk.f32.mxu0 %vm3964_vm1, %v3962_v0 }
 0x4d4   : > { %3448 = vmatmul.mubr.msk.f32.vlgmr.msra.gmra.mrb[4].mxu1 %vm616_vm4, %v784_v57  ;;  %v1306_v57 = vld [vmem:[%s5348_s4] sm:$0xff] }
 0x4d5   : > { %3452 = vmatprep.mubr.msk.f32.mxu1 %vm3964_vm1, %v3962_v0  ;;  %v3493_v59 = vpack.c.bf16 %v1307_v58, %v1306_v57 }
 0x4d7   : > { %3494 = vmatpush3.bf16.msra.mxu0 %v3493_v59 }
 0x4d8   : > { %3495 = vmatprep.subr.bf16.mxu0 %v3963_v11 }
 0x4db   : > { %3497 = vmatpush3.bf16.msra.mxu0 %v3496_v62 }
 0x59c   : > { %v1031_v4 = vpop.f32.mrb[2].mxu0 }
 0x59d   : > { %v1032_v5 = vadd.f32 %v1031_v4, %v4171_v44  ;;  %v3459_v6 = vpop.f32.mrb[3].mxu0 }
 0x59f   : > { %v1035_v7 = vsel %vm616_vm4, %v1032_v5, -inf }
 0x5a0   : > { %1036 = vmax.xlane.f32.xlu1 %v1035_v7 }
 0x5a3   : > { %v778_v8 = vpop.f32.mrb[2].mxu1 }
 0x5a4   : > { %782 = vst.msk [vmem:[#allocation2] sm:$0xff] %vm616_vm4, %v778_v8  ;;  %v3444_v9 = vpop.f32.mrb[3].mxu1  ;;  %v1205_v10 = vpop.f32.mrb[4].mxu0 }
 0x5a5   : > { %v3469_v12 = vpop.f32.mrb[5].mxu0  ;;  %v1206_v16 = vadd.f32 %v1205_v10, %v4171_v44  ;;  %v3101_v10 = vld [vmem:[%s5349_s5] ss:$0 sm:$0xff] }
 0x5a7   : > { %v857_v13 = vpop.f32.mrb[4].mxu1  ;;  %v1209_v18 = vsel %vm616_vm4, %v1206_v16, -inf }
 0x5a8   : > { %v858_v14 = vadd.f32 %v857_v13, %v4171_v44  ;;  %v3449_v15 = vpop.f32.mrb[5].mxu1 }
 0x5aa   : > { %v861_v17 = vsel %vm616_vm4, %v858_v14, -inf }
 0x5ab   : > { %862 = vmax.xlane.f32.xlu0 %v861_v17 }
 0x5af   : > { %1210 = vmax.xlane.f32.xlu0 %v1209_v18 }
 0x62d   : > { %v1037_v19 = vpop.xlane.xlu1 %1036 }
 0x62e   : > { %v1038_v20 = vsub.f32 %v1032_v5, %v1037_v19 }
 0x630   : > { %v1039_v23 = vmul.f32 1.442695, %v1038_v20 }
 0x638   : > { %v863_v21 = vpop.xlane.xlu0 %862 }
 0x639   : > { %v864_v22 = vsub.f32 %v858_v14, %v863_v21 }
 0x63b   : > { %v865_v24 = vmul.f32 1.442695, %v864_v22  ;;  %v1435_v22 = vld [vmem:[%s5354_s10 + $0x88] sm:$0xff] }
 0x63c   : > { %v1211_v25 = vpop.xlane.xlu0 %1210 }
 0x63d   : > { %3882 = vpow2.f32 %v865_v24  ;;  %v1212_v26 = vsub.f32 %v1206_v16, %v1211_v25  ;;  %v1437_v25 = vld [vmem:[%s5354_s10 + $0x98] sm:$0xff] }
 0x63e   : > { %3884 = vpow2.f32 %v1039_v23  ;;  %v1433_v23 = vld [vmem:[%s5354_s10 + $0x18] sm:$0xff] }
 0x63f   : > { %v1213_v27 = vmul.f32 1.442695, %v1212_v26  ;;  %v1430_v26 = vld [vmem:[%s5354_s10] sm:$0xff] }
 0x641   : > { %3886 = vpow2.f32 %v1213_v27  ;;  %v1434_v27 = vld [vmem:[%s5354_s10 + $0x80] sm:$0xff] }
 0x647   : > { %v3883_v28 = vpop.eup %3882 }
 0x648   : > { %v867_v29 = vsel %vm616_vm4, %v3883_v28, 0.0  ;;  %v3885_v30 = vpop.eup %3884 }
 0x649   : > { %868 = vadd.xlane.f32.xlu0 %v867_v29  ;;  %v1041_v32 = vsel %vm616_vm4, %v3885_v30, 0.0  ;;  %v3500_v29 = vpack.c.bf16 %v1434_v27, %v1430_v26  ;;  %v1913_v26 = vld [vmem:[%s5356_s12 + $0x380] sm:$0xff]  ;;  %v1914_v27 = vld [vmem:[%s5356_s12 + $0x388] sm:$0xff] }
 0x64b   : > { %v3887_v31 = vpop.eup %3886 }
 0x64c   : > { %v1215_v33 = vsel %vm616_vm4, %v3887_v31, 0.0 }
 0x64d   : > { %1042 = vadd.xlane.f32.xlu0 %v1041_v32  ;;  %1216 = vadd.xlane.f32.xlu1 %v1215_v33  ;;  %v1439_v33 = vld [vmem:[%s5354_s10 + $0x108] sm:$0xff] }
 0x65e   : > { %1049 = vrot.lane.b32.xlu1 %v4149_v34, %s3973_s0 }
 0x662   : > { %1223 = vrot.lane.b32.xlu1 %v4149_v34, %s3974_s22 }
 0x663   : > { %875 = vrot.lane.b32.xlu0 %v4149_v34, %s3975_s20  ;;  %s3976_s20 = smov 8  }
 0x6d6   : > { %v869_v35 = vpop.xlane.xlu0 %868 }
 0x6d7   : > { %3888 = vrcp.f32 %v869_v35 }
 0x6da   : > { %v1217_v36 = vpop.xlane.xlu1 %1216  ;;  %v1043_v37 = vpop.xlane.xlu0 %1042 }
 0x6db   : > { %3890 = vrcp.f32 %v1217_v36 }
 0x6dc   : > { %3892 = vrcp.f32 %v1043_v37 }
 0x6de   : > { %v876_v38 = vpop.permute.xlu0 %875  ;;  %v1050_v51 = vpop.permute.xlu1 %1049 }
 0x6df   : > { %3451 = vmatpush3.msra.mxu1 %v876_v38  ;;  %v1445_v38 = vld [vmem:[%s5354_s10 + $0x198] sm:$0xff] }
 0x6e0   : > { %3460 = vmatprep.subr.mxu1 %v3962_v0 }
 0x6e1   : > { %v3889_v39 = vpop.eup %3888 }
 0x6e2   : > { %v871_v40 = vmul.f32 %v3889_v39, %v869_v35  ;;  %v1224_v55 = vpop.permute.xlu1 %1223  ;;  %v1443_v35 = vld [vmem:[%s5354_s10 + $0x188] sm:$0xff] }
 0x6e4   : > { %v872_v43 = vsub.f32 2.0, %v871_v40  ;;  %v1442_v40 = vld [vmem:[%s5354_s10 + $0x180] sm:$0xff] }
 0x6e5   : > { %v3891_v44 = vpop.eup %3890 }
 0x6e6   : > { %v3893_v45 = vpop.eup %3892  ;;  %v873_v46 = vmul.f32 %v3889_v39, %v872_v43  ;;  %v1219_v47 = vmul.f32 %v3891_v44, %v1217_v36  ;;  %v1441_v36 = vld [vmem:[%s5354_s10 + $0x118] sm:$0xff]  ;;  %v1438_v39 = vld [vmem:[%s5354_s10 + $0x100] sm:$0xff] }
 0x6e7   : > { %v1045_v48 = vmul.f32 %v3893_v45, %v1043_v37  ;;  %v3502_v37 = vpack.c.bf16 %v1443_v35, %v1439_v33  ;;  %v3510_v43 = vpack.c.bf16 %v1445_v38, %v1441_v36  ;;  %v3562_v33 = vpack.c.bf16 %v1914_v27, %v1913_v26  ;;  %v1897_v35 = vld [vmem:[%s5356_s12 + $0x300] sm:$0xff]  ;;  %v1898_v36 = vld [vmem:[%s5356_s12 + $0x308] sm:$0xff]  ;;  %v1884_v38 = vld [vmem:[%s5356_s12 + $0x298] sm:$0xff] }
 0x6e8   : > { %v874_v49 = vmul.f32 %v3883_v28, %v873_v46  ;;  %v1220_v34 = vsub.f32 2.0, %v1219_v47  ;;  %v3506_v28 = vpack.c.bf16 %v1437_v25, %v1433_v23  ;;  %v1444_v46 = vld [vmem:[%s5354_s10 + $0x190] sm:$0xff]  ;;  %v1882_v25 = vld [vmem:[%s5356_s12 + $0x288] sm:$0xff] }
 0x6e9   : > { %v1046_v50 = vsub.f32 2.0, %v1045_v48  ;;  %v1682_v48 = vld [vmem:[%s5354_s10 + $0x28] sm:$0xff]  ;;  %v1695_v23 = vld [vmem:[%s5354_s10 + $0x1b0] sm:$0xff] }
 0x6ea   : > { %3453 = vmatmul.mubr.msk.f32.vlgmr.msra.gmra.mrb[6].mxu1 %vm616_vm4, %v874_v49  ;;  %v1221_v53 = vmul.f32 %v3891_v44, %v1220_v34  ;;  %3507 = vmatprep.subr.bf16.mxu0 %v3506_v28  ;;  %v3504_v44 = vpack.c.bf16 %v1442_v40, %v1438_v39  ;;  %v1686_v49 = vld [vmem:[%s5354_s10 + $0xa8] sm:$0xff]  ;;  %v1684_v34 = vld [vmem:[%s5354_s10 + $0x38] sm:$0xff]  ;;  %v1915_v39 = vld [vmem:[%s5356_s12 + $0x390] sm:$0xff] }
 0x6eb   : > { %v1047_v52 = vmul.f32 %v3893_v45, %v1046_v50  ;;  %3461 = vmatpush3.msra.mxu1 %v1050_v51  ;;  %3462 = vmatprep.mubr.msk.f32.mxu1 %vm3964_vm1, %v3962_v0  ;;  %v1440_v45 = vld [vmem:[%s5354_s10 + $0x110] sm:$0xff]  ;;  %v3514_v50 = vpack.c.bf16 %v1686_v49, %v1682_v48  ;;  %v1688_v51 = vld [vmem:[%s5354_s10 + $0xb8] sm:$0xff] }
 0x6ec   : > { %3470 = vmatprep.subr.mxu1 %v3962_v0  ;;  %v1222_v56 = vmul.f32 %v3887_v31, %v1221_v53  ;;  %v1436_v31 = vld [vmem:[%s5354_s10 + $0x90] sm:$0xff]  ;;  %v3512_v47 = vpack.c.bf16 %v1444_v46, %v1440_v45  ;;  %v1916_v40 = vld [vmem:[%s5356_s12 + $0x398] sm:$0xff] }
 0x6ed   : > { %v1048_v54 = vmul.f32 %v3885_v30, %v1047_v52  ;;  %v1432_v30 = vld [vmem:[%s5354_s10 + $0x10] sm:$0xff]  ;;  %v3522_v52 = vpack.c.bf16 %v1688_v51, %v1684_v34  ;;  %v1868_v46 = vld [vmem:[%s5356_s12 + $0x218] sm:$0xff]  ;;  %v3566_v48 = vpack.c.bf16 %v1916_v40, %v1915_v39  ;;  %v1886_v51 = vld [vmem:[%s5356_s12 + $0x2a8] sm:$0xff] }
 0x6ee   : > { %v3508_v32 = vpack.c.bf16 %v1436_v31, %v1432_v30  ;;  %v1865_v30 = vld [vmem:[%s5356_s12 + $0x200] sm:$0xff]  ;;  %v1866_v31 = vld [vmem:[%s5356_s12 + $0x208] sm:$0xff]  ;;  %v1867_v45 = vld [vmem:[%s5356_s12 + $0x210] sm:$0xff] }
 0x6ef   : > { %3463 = vmatmul.mubr.msk.f32.vlgmr.msra.gmra.mrb[8].mxu1 %vm616_vm4, %v1048_v54  ;;  %v1899_v49 = vld [vmem:[%s5356_s12 + $0x310] sm:$0xff]  ;;  %v1900_v34 = vld [vmem:[%s5356_s12 + $0x318] sm:$0xff]  ;;  %v1893_v40 = vld [vmem:[%s5356_s12 + $0x2e0] sm:$0xff] }
 0x6f0   : > { %3471 = vmatpush3.msra.mxu1 %v1224_v55  ;;  %3472 = vmatprep.mubr.msk.f32.mxu1 %vm3964_vm1, %v3962_v0  ;;  %v1891_v27 = vld [vmem:[%s5356_s12 + $0x2d0] sm:$0xff] }
 0x6f3   : > { %3473 = vmatmul.mubr.msk.f32.vlgmr.msra.gmra.mrb[10].mxu1 %vm616_vm4, %v1222_v56 }
 0x6f4   : > { %1535 = vmatprep.mubr.f32.mxu1 %v3962_v0 }
 0x7bd   : > { %v947_v63 = vpop.f32.mrb[6].mxu1 }
 0x7be   : > { %952 = vrot.lane.b32.xlu1 %v947_v63, %s3976_s20  ;;  %v3454_v2 = vpop.f32.mrb[7].mxu1 }
 0x7bf   : > { %v3103_v2 = vld [vmem:[%s5352_s8] ss:$0 sm:$0xff] }
 0x7c2   : > { %v1121_v3 = vpop.f32.mrb[8].mxu1 }
 0x7c3   : > { %1126 = vrot.lane.b32.xlu0 %v1121_v3, %s3977_s25  ;;  %v3464_v4 = vpop.f32.mrb[9].mxu1 }
 0x7c4   : > { %v3104_v4 = vld [vmem:[%s5353_s9] ss:$0 sm:$0xff] }
 0x7c6   : > { %v1295_v5 = vpop.f32.mrb[10].mxu1 }
 0x7c7   : > { %1300 = vrot.lane.b32.xlu1 %v1295_v5, %s3978_s21  ;;  %v3474_v6 = vpop.f32.mrb[11].mxu1  ;;  %v1681_v5 = vld [vmem:[%s5354_s10 + $0x20] sm:$0xff]  ;;  %s467_s21 = sand.u32 1, %s3952_s30  }
 0x7c8   : > { %v1685_v6 = vld [vmem:[%s5354_s10 + $0xa0] sm:$0xff]  ;;  %s3083_s27 = sshll.u32 %s467_s21, 3  ;;  %s2998_s25 = scalar_lea.sflag [#allocation4], %s467_s21 }
 0x7c9   : > { %s469_s18 = scalar_lea.vmem [#allocation3], %s3083_s27  ;;  %s3902_s27 = sshll.u32 %s3979_s17, 4  ;;  %s3903_s27 = int_to_ptr.vmem [resolvable:$false] %s3902_s27 }
 0x7ca   : > { %s3011_s0 = sshll.u32 %s469_s18, 4  ;;  %s3904_s3 = scalar_lea.vmem %s3903_s27, 256  ;;  %s5303_s0 = int_to_ptr.vmem [resolvable:$true] %s3011_s0 }
 0x7cb   : > { %s3898_s2 = scalar_lea.vmem %s5303_s0, 128  ;;  %p3905_p0 = scmp.lt.s32.totalorder %s5303_s0, %s3903_s27 }
 0x7cc   : > { %p3899_p11 = scmp.ne.s32.totalorder %s5303_s0, %s3898_s2  ;;  %p3906_p1 = scmp.lt.s32.totalorder %s3904_s3, %s3898_s2 }
 0x7ce   : > { %p3900_p12 = pnand %p3899_p11, %p4093_p5  ;;  %p3907_p2 = por %p3906_p1, %p3905_p0 }
 0x7d0   : > { %p3901_p13 = pneg %p3900_p12 }
 0x7d2   : > { %p3908_p3 = pnand %p3907_p2, %p3901_p13 }
 0x830   : > { %v953_v7 = vpop.permute.xlu1 %952 }
 0x831   : > { %956 = vst.msk [vmem:[#allocation2] sm:$0xff] %vm955_vm6, %v953_v7 }
 0x835   : > { %v1127_v8 = vpop.permute.xlu0 %1126 }
 0x836   : > { %1130 = vst.msk [vmem:[#allocation2] sm:$0xff] %vm1129_vm7, %v1127_v8  ;;  %v1683_v8 = vld [vmem:[%s5354_s10 + $0x30] sm:$0xff] }
 0x839   : > { %v1301_v11 = vpop.permute.xlu1 %1300 }
 0x83a   : > { %1304 = vst.msk [vmem:[#allocation2] sm:$0xff] %vm1303_vm8, %v1301_v11  ;;  %v1687_v11 = vld [vmem:[%s5354_s10 + $0xb0] sm:$0xff] }
 0x841   : > { %v1305_v9 = vld [vmem:[#allocation2] sm:$0xff] }
 0x842   : > { %3484 = vmatmul.mubr.msk.f32.vlgmr.msra.gmra.mrb[6].mxu0 %vm480_vm0, %v1305_v9  ;;  %v1690_v9 = vld [vmem:[%s5354_s10 + $0x128] sm:$0xff] }
 0x843   : > { %1606 = vmatprep.mubr.f32.mxu0 %v3962_v0  ;;  %3509 = vmatpush1.bf16.msra.mxu0 %v3508_v32 }
 0x844   : > { %3511 = vmatprep.subr.bf16.mxu0 %v3510_v43  ;;  %v3532_v43 = vpack.c.bf16 %v1866_v31, %v1865_v30  ;;  %v1924_v31 = vld [vmem:[%s5356_s12 + $0x3d8] sm:$0xff] }
 0x847   : > { %3513 = vmatpush1.bf16.msra.mxu0 %v3512_v47 }
 0x848   : > { %3523 = vmatprep.subr.bf16.mxu0 %v3522_v52  ;;  %v1917_v52 = vld [vmem:[%s5356_s12 + $0x3a0] sm:$0xff] }
 0x915   : > { %v1386_v12 = vpop.f32.mrb[6].mxu0 }
 0x916   : > { %v1387_v13 = vadd.f32 %v3101_v10, %v1386_v12  ;;  %v3485_v14 = vpop.f32.mrb[7].mxu0  ;;  %v1694_v10 = vld [vmem:[%s5354_s10 + $0x1a8] sm:$0xff]  ;;  %v1692_v12 = vld [vmem:[%s5354_s10 + $0x138] sm:$0xff] }
 0x918   : > { %v4239_v15 = vadd.f32 %v1387_v13, %v4112_v1  ;;  %v1431_v1 = vld [vmem:[%s5354_s10 + $0x8] sm:$0xff]  ;;  %v1696_v13 = vld [vmem:[%s5354_s10 + $0x1b8] sm:$0xff] }
 0x919   : > { %v3498_v24 = vpack.c.bf16 %v1435_v22, %v1431_v1  ;;  %v3526_v1 = vpack.c.bf16 %v1696_v13, %v1692_v12  ;;  %v1691_v22 = vld [vmem:[%s5354_s10 + $0x130] sm:$0xff]  ;;  %v1889_v12 = vld [vmem:[%s5356_s12 + $0x2c0] sm:$0xff]  ;;  %v1890_v13 = vld [vmem:[%s5356_s12 + $0x2c8] sm:$0xff] }
 0x91a   : > { %v1393_v16 = vsel %vm480_vm0, %v4239_v15, 0.0 }
 0x91b   : > { %1394 = vadd.xlane.f32.xlu0 %v1393_v16  ;;  %3499 = vmatprep.subr.bf16.mxu1 %v3498_v24  ;;  %v3516_v16 = vpack.c.bf16 %v1685_v6, %v1681_v5  ;;  %v1881_v24 = vld [vmem:[%s5356_s12 + $0x280] sm:$0xff]  ;;  %v1871_v6 = vld [vmem:[%s5356_s12 + $0x230] sm:$0xff] }
 0x91c   : > { %3501 = vmatpush1.bf16.msra.mxu1 %v3500_v29  ;;  %v3528_v29 = vpack.c.bf16 %v1695_v23, %v1691_v22  ;;  %v3530_v32 = vpack.c.bf16 %v1882_v25, %v1881_v24  ;;  %v1874_v22 = vld [vmem:[%s5356_s12 + $0x248] sm:$0xff]  ;;  %v1905_v23 = vld [vmem:[%s5356_s12 + $0x340] sm:$0xff] }
 0x91d   : > { %3503 = vmatprep.subr.bf16.mxu1 %v3502_v37  ;;  %v1883_v37 = vld [vmem:[%s5356_s12 + $0x290] sm:$0xff]  ;;  %v1906_v24 = vld [vmem:[%s5356_s12 + $0x348] sm:$0xff] }
 0x91e   : > { %v3534_v47 = vpack.c.bf16 %v1884_v38, %v1883_v37  ;;  %v3580_v26 = vpack.c.bf16 %v1906_v24, %v1905_v23  ;;  %v1907_v37 = vld [vmem:[%s5356_s12 + $0x350] sm:$0xff]  ;;  %v1908_v38 = vld [vmem:[%s5356_s12 + $0x358] sm:$0xff] }
 0x91f   : > { %v3584_v39 = vpack.c.bf16 %v1908_v38, %v1907_v37  ;;  %v1635_v37 = vld [vmem:[%s5356_s12 + $0x90] sm:$0xff] }
 0x920   : > { %3505 = vmatpush1.bf16.msra.mxu1 %v3504_v44  ;;  %v3564_v44 = vpack.c.bf16 %v1898_v36, %v1897_v35 }
 0x921   : > { %3515 = vmatprep.subr.bf16.mxu1 %v3514_v50  ;;  %v1885_v50 = vld [vmem:[%s5356_s12 + $0x2a0] sm:$0xff] }
 0x9a8   : > { %v1395_v17 = vpop.xlane.xlu0 %1394 }
 0x9a9   : > { %v1396_v18 = vmul.f32 0.03125, %v1395_v17  ;;  %v3524_v17 = vpack.c.bf16 %v1687_v11, %v1683_v8 }
 0x9ab   : > { %v4244_v19 = vsub.f32 %v4239_v15, %v1396_v18  ;;  %v1689_v18 = vld [vmem:[%s5354_s10 + $0x120] sm:$0xff] }
 0x9ad   : > { %v1398_v20 = vmul.f32 %v4244_v19, %v4244_v19 }
 0x9af   : > { %v1399_v21 = vsel %vm480_vm0, %v1398_v20, 0.0 }
 0x9b0   : > { %1400 = vadd.xlane.f32.xlu1 %v1399_v21  ;;  %v3518_v21 = vpack.c.bf16 %v1694_v10, %v1690_v9  ;;  %v1903_v9 = vld [vmem:[%s5356_s12 + $0x330] sm:$0xff]  ;;  %v1904_v10 = vld [vmem:[%s5356_s12 + $0x338] sm:$0xff] }
 0xa3d   : > { %v1401_v53 = vpop.xlane.xlu1 %1400 }
 0xa3e   : > { %v1402_v54 = vmul.f32 0.032258064, %v1401_v53  ;;  %v1918_v53 = vld [vmem:[%s5356_s12 + $0x3a8] sm:$0xff] }
 0xa40   : > { %3894 = vrsqrt.f32 %v1402_v54  ;;  %vm1405_vm9 = vcmp.eq.f32.partialorder %v1402_v54, inf  ;;  %v1408_v57 = vand.u32 2147483648, %v1402_v54  ;;  %vm1407_vm10 = vcmp.eq.f32.partialorder %v1402_v54, 0.0 }
 0xa4a   : > { %v3895_v55 = vpop.eup %3894 }
 0xa4b   : > { %v1404_v56 = vmul.f32 %v3895_v55, %v1402_v54  ;;  %v3568_v55 = vpack.c.bf16 %v1900_v34, %v1899_v49 }
 0xa4d   : > { %v1406_v58 = vsel %vm1405_vm9, %v1402_v54, %v1404_v56  ;;  %v3536_v54 = vpack.c.bf16 %v1868_v46, %v1867_v45  ;;  %v1869_v56 = vld [vmem:[%s5356_s12 + $0x220] sm:$0xff]  ;;  %v1926_v46 = vld [vmem:[%s5356_s12 + $0x3e8] sm:$0xff] }
 0xa4e   : > { %v1409_v59 = vsel %vm1407_vm10, %v1408_v57, %v1406_v58  ;;  %v1870_v57 = vld [vmem:[%s5356_s12 + $0x228] sm:$0xff]  ;;  %v3538_v58 = vpack.c.bf16 %v1886_v51, %v1885_v50  ;;  %v1909_v50 = vld [vmem:[%s5356_s12 + $0x360] sm:$0xff] }
 0xa4f   : > { %v1410_v60 = vadd.f32 1e-06, %v1409_v59  ;;  %v3570_v59 = vpack.c.bf16 %v1918_v53, %v1917_v52  ;;  %v1910_v51 = vld [vmem:[%s5356_s12 + $0x368] sm:$0xff]  ;;  %v1895_v53 = vld [vmem:[%s5356_s12 + $0x2f0] sm:$0xff] }
 0xa50   : > { %v3588_v52 = vpack.c.bf16 %v1910_v51, %v1909_v50 }
 0xa51   : > { %3896 = vrcp.f32 %v1410_v60 }
 0xa5b   : > { %v3897_v61 = vpop.eup %3896 }
 0xa5c   : > { %v1412_v62 = vmul.f32 %v3897_v61, %v1410_v60  ;;  %v1901_v60 = vld [vmem:[%s5356_s12 + $0x320] sm:$0xff] }
 0xa5e   : > { %v1413_v63 = vsub.f32 2.0, %v1412_v62  ;;  %v1887_v62 = vld [vmem:[%s5356_s12 + $0x2b0] sm:$0xff] }
 0xa60   : > { %v1414_v3 = vmul.f32 %v3897_v61, %v1413_v63  ;;  %v1902_v61 = vld [vmem:[%s5356_s12 + $0x328] sm:$0xff]  ;;  %v1888_v63 = vld [vmem:[%s5356_s12 + $0x2b8] sm:$0xff] }
 0xa61   : > { %v3572_v5 = vpack.c.bf16 %v1902_v61, %v1901_v60  ;;  %v3542_v8 = vpack.c.bf16 %v1888_v63, %v1887_v62  ;;  %v1911_v62 = vld [vmem:[%s5356_s12 + $0x370] sm:$0xff]  ;;  %v1912_v63 = vld [vmem:[%s5356_s12 + $0x378] sm:$0xff] }
 0xa62   : > { %v1415_v7 = vmul.f32 %v1414_v3, %v4244_v19  ;;  %v1693_v19 = vld [vmem:[%s5354_s10 + $0x1a0] sm:$0xff]  ;;  %v1920_v3 = vld [vmem:[%s5356_s12 + $0x3b8] sm:$0xff] }
 0xa63   : > { %v3520_v28 = vpack.c.bf16 %v1693_v19, %v1689_v18  ;;  %v3576_v18 = vpack.c.bf16 %v1904_v10, %v1903_v9  ;;  %v1873_v19 = vld [vmem:[%s5356_s12 + $0x240] sm:$0xff] }
 0xa64   : > { %v1422_v14 = vmul.f32 %v3103_v2, %v1415_v7  ;;  %v1919_v2 = vld [vmem:[%s5356_s12 + $0x3b0] sm:$0xff]  ;;  %v1872_v7 = vld [vmem:[%s5356_s12 + $0x238] sm:$0xff]  ;;  %v3548_v25 = vpack.c.bf16 %v1874_v22, %v1873_v19 }
 0xa65   : > { %v3574_v11 = vpack.c.bf16 %v1920_v3, %v1919_v2  ;;  %v3592_v2 = vpack.c.bf16 %v1912_v63, %v1911_v62  ;;  %v1633_v3 = vld [vmem:[%s5356_s12 + $0x80] sm:$0xff] }
 0xa66   : > { %v4346_v20 = vadd.f32 %v3104_v4, %v1422_v14  ;;  %v3540_v4 = vpack.c.bf16 %v1870_v57, %v1869_v56  ;;  %v1921_v14 = vld [vmem:[%s5356_s12 + $0x3c0] sm:$0xff]  ;;  %v1928_v57 = vld [vmem:[%s5356_s12 + $0x3f8] sm:$0xff] }
 0xa68   : > { %3105 = vmatmul.mubr.msk.f32.vlgmr.msra.gmra.mrb[12].mxu1 %vm480_vm0, %v4346_v20  ;;  %3106 = vmatmul.mubr.msk.f32.vlgmr.msra.gmra.mrb[8].mxu0 %vm480_vm0, %v4346_v20 }
 0xa69   : > { %3517 = vmatpush1.bf16.msra.mxu1 %v3516_v16  ;;  %3525 = vmatpush1.bf16.msra.mxu0 %v3524_v17  ;;  %v1922_v16 = vld [vmem:[%s5356_s12 + $0x3c8] sm:$0xff]  ;;  %v3544_v17 = vpack.c.bf16 %v1872_v7, %v1871_v6 }
 0xa6a   : > { %3519 = vmatprep.subr.bf16.mxu1 %v3518_v21  ;;  %3527 = vmatprep.subr.bf16.mxu0 %v3526_v1  ;;  %v3546_v21 = vpack.c.bf16 %v1890_v13, %v1889_v12  ;;  %v3578_v1 = vpack.c.bf16 %v1922_v16, %v1921_v14  ;;  %v1666_v7 = vld [vmem:[%s5356_s12 + $0x188] sm:$0xff]  ;;  %v1697_v13 = vld [vmem:[%s5355_s11 + $0x4] sm:$0xf]  ;;  %v4576_v14 = vsub.s32 2, %v4164_v41  ;;  %v4579_v16 = vsub.s32 1, %v4164_v41 }
 0xa6b   : > { %1783 = vmatprep.mubr.f32.mxu1 %v3962_v0  ;;  %1854 = vmatprep.mubr.f32.mxu0 %v3962_v0  ;;  %v1702_v19 = vrot.slane %v1697_v13, %v4167_v42 }
 0xa6d   : > { %3521 = vmatpush1.bf16.msra.mxu1 %v3520_v28  ;;  %3529 = vmatpush1.bf16.msra.mxu0 %v3528_v29  ;;  %v1892_v28 = vld [vmem:[%s5356_s12 + $0x2d8] sm:$0xff]  ;;  %v1923_v29 = vld [vmem:[%s5356_s12 + $0x3d0] sm:$0xff] }
 0xa6e   : > { %3531 = vmatprep.subr.bf16.mxu1 %v3530_v32  ;;  %3563 = vmatprep.subr.bf16.mxu0 %v3562_v33  ;;  %v3550_v30 = vpack.c.bf16 %v1892_v28, %v1891_v27  ;;  %v1875_v32 = vld [vmem:[%s5356_s12 + $0x250] sm:$0xff]  ;;  %v1876_v33 = vld [vmem:[%s5356_s12 + $0x258] sm:$0xff]  ;;  %v3582_v35 = vpack.c.bf16 %v1924_v31, %v1923_v29  ;;  %v1618_v31 = vld [vmem:[%s5356_s12 + $0x8] sm:$0xff] }
 0xa6f   : > { %v3552_v36 = vpack.c.bf16 %v1876_v33, %v1875_v32  ;;  %v1649_v32 = vld [vmem:[%s5356_s12 + $0x100] sm:$0xff]  ;;  %v1650_v33 = vld [vmem:[%s5356_s12 + $0x108] sm:$0xff] }
 0xa70   : > { %3107 = vmatmul.mubr.msk.f32.vlgmr.msra.gmra.mrb[14].mxu1 %vm480_vm0, %v4346_v20  ;;  %3108 = vmatmul.mubr.msk.f32.vlgmr.msra.gmra.mrb[10].mxu0 %vm480_vm0, %v4346_v20 }
 0xa71   : > { %3533 = vmatpush3.bf16.msra.mxu1 %v3532_v43  ;;  %3565 = vmatpush3.bf16.msra.mxu0 %v3564_v44  ;;  %v1894_v43 = vld [vmem:[%s5356_s12 + $0x2e8] sm:$0xff]  ;;  %v1925_v44 = vld [vmem:[%s5356_s12 + $0x3e0] sm:$0xff] }
 0xa72   : > { %3535 = vmatprep.subr.bf16.mxu1 %v3534_v47  ;;  %3567 = vmatprep.subr.bf16.mxu0 %v3566_v48  ;;  %v3554_v45 = vpack.c.bf16 %v1894_v43, %v1893_v40  ;;  %v1877_v47 = vld [vmem:[%s5356_s12 + $0x260] sm:$0xff]  ;;  %v1878_v48 = vld [vmem:[%s5356_s12 + $0x268] sm:$0xff]  ;;  %v3586_v49 = vpack.c.bf16 %v1926_v46, %v1925_v44  ;;  %v1636_v40 = vld [vmem:[%s5356_s12 + $0x98] sm:$0xff] }
 0xa73   : > { %v3556_v34 = vpack.c.bf16 %v1878_v48, %v1877_v47  ;;  %v1667_v43 = vld [vmem:[%s5356_s12 + $0x190] sm:$0xff]  ;;  %v1668_v44 = vld [vmem:[%s5356_s12 + $0x198] sm:$0xff]  ;;  %v3628_v48 = vpack.c.bf16 %v1650_v33, %v1649_v32  ;;  %v1625_v32 = vld [vmem:[%s5356_s12 + $0x40] sm:$0xff] }
 0xa74   : > { %v1626_v33 = vld [vmem:[%s5356_s12 + $0x48] sm:$0xff] }
 0xa75   : > { %3537 = vmatpush3.bf16.msra.mxu1 %v3536_v54  ;;  %3569 = vmatpush3.bf16.msra.mxu0 %v3568_v55  ;;  %v1896_v54 = vld [vmem:[%s5356_s12 + $0x2f8] sm:$0xff]  ;;  %v1927_v55 = vld [vmem:[%s5356_s12 + $0x3f0] sm:$0xff] }
 0xa76   : > { %3539 = vmatprep.subr.bf16.mxu1 %v3538_v58  ;;  %3571 = vmatprep.subr.bf16.mxu0 %v3570_v59  ;;  %v3558_v56 = vpack.c.bf16 %v1896_v54, %v1895_v53  ;;  %v1879_v58 = vld [vmem:[%s5356_s12 + $0x270] sm:$0xff]  ;;  %v1880_v59 = vld [vmem:[%s5356_s12 + $0x278] sm:$0xff]  ;;  %v3590_v60 = vpack.c.bf16 %v1928_v57, %v1927_v55  ;;  %v1637_v54 = vld [vmem:[%s5356_s12 + $0xa0] sm:$0xff]  ;;  %v3598_v55 = vpack.c.bf16 %v1636_v40, %v1635_v37 }
 0xa77   : > { %v3560_v61 = vpack.c.bf16 %v1880_v59, %v1879_v58  ;;  %v1652_v53 = vld [vmem:[%s5356_s12 + $0x118] sm:$0xff]  ;;  %v1638_v57 = vld [vmem:[%s5356_s12 + $0xa8] sm:$0xff]  ;;  %v1669_v58 = vld [vmem:[%s5356_s12 + $0x1a0] sm:$0xff] }
 0xa78   : > { %v1670_v59 = vld [vmem:[%s5356_s12 + $0x1a8] sm:$0xff]  ;;  %v1657_v37 = vld [vmem:[%s5356_s12 + $0x140] sm:$0xff]  ;;  %v1644_v40 = vld [vmem:[%s5356_s12 + $0xd8] sm:$0xff] }
 0xa79   : > { %3541 = vmatpush3.bf16.msra.mxu1 %v3540_v4  ;;  %3573 = vmatpush3.bf16.msra.mxu0 %v3572_v5  ;;  %v1634_v4 = vld [vmem:[%s5356_s12 + $0x88] sm:$0xff]  ;;  %v1665_v5 = vld [vmem:[%s5356_s12 + $0x180] sm:$0xff] }
 0xa7a   : > { %3543 = vmatprep.subr.bf16.mxu1 %v3542_v8  ;;  %3575 = vmatprep.subr.bf16.mxu0 %v3574_v11  ;;  %v3594_v6 = vpack.c.bf16 %v1634_v4, %v1633_v3  ;;  %v3626_v8 = vpack.c.bf16 %v1666_v7, %v1665_v5  ;;  %v1622_v3 = vld [vmem:[%s5356_s12 + $0x28] sm:$0xff]  ;;  %v3602_v4 = vpack.c.bf16 %v1638_v57, %v1637_v54  ;;  %v1677_v54 = vld [vmem:[%s5356_s12 + $0x1e0] sm:$0xff] }
 0xa7b   : > { %v3634_v5 = vpack.c.bf16 %v1670_v59, %v1669_v58  ;;  %v1654_v7 = vld [vmem:[%s5356_s12 + $0x128] sm:$0xff]  ;;  %v1629_v58 = vld [vmem:[%s5356_s12 + $0x60] sm:$0xff] }
 0xa7c   : > { %v1630_v59 = vld [vmem:[%s5356_s12 + $0x68] sm:$0xff] }
 0xa7d   : > { %3545 = vmatpush3.bf16.msra.mxu1 %v3544_v17  ;;  %3577 = vmatpush3.bf16.msra.mxu0 %v3576_v18  ;;  %v4582_v17 = vsub.s32 3, %v4164_v41  ;;  %v4587_v18 = vld [vmem:[%s5355_s11] sm:$0xf] }
 0xa7e   : > { %3547 = vmatprep.subr.bf16.mxu1 %v3546_v21  ;;  %3579 = vmatprep.subr.bf16.mxu0 %v3578_v1  ;;  %v1710_v21 = vrot.slane %v1697_v13, %v4576_v14  ;;  %v1706_v1 = vrot.slane %v1697_v13, %v4579_v16  ;;  %v1455_v23 = vrot.slane %v4587_v18, %v4579_v16 }
 0xa7f   : > { %v1714_v22 = vrot.slane %v1697_v13, %v4582_v17  ;;  %v1463_v41 = vrot.slane %v4587_v18, %v4582_v17  ;;  %v1672_v13 = vld [vmem:[%s5356_s12 + $0x1b8] sm:$0xff] }
 0xa81   : > { %3549 = vmatpush3.bf16.msra.mxu1 %v3548_v25  ;;  %3581 = vmatpush3.bf16.msra.mxu0 %v3580_v26  ;;  %v1617_v26 = vld [vmem:[%s5356_s12] sm:$0xff] }
 0xa82   : > { %3551 = vmatprep.subr.bf16.mxu1 %v3550_v30  ;;  %3583 = vmatprep.subr.bf16.mxu0 %v3582_v35  ;;  %v3596_v47 = vpack.c.bf16 %v1618_v31, %v1617_v26  ;;  %v1641_v26 = vld [vmem:[%s5356_s12 + $0xc0] sm:$0xff] }
 0xa85   : > { %3553 = vmatpush3.bf16.msra.mxu1 %v3552_v36  ;;  %3585 = vmatpush3.bf16.msra.mxu0 %v3584_v39 }
 0xa86   : > { %3555 = vmatprep.subr.bf16.mxu1 %v3554_v45  ;;  %3587 = vmatprep.subr.bf16.mxu0 %v3586_v49  ;;  %v1619_v49 = vld [vmem:[%s5356_s12 + $0x10] sm:$0xff] }
 0xa89   : > { %3557 = vmatpush3.bf16.msra.mxu1 %v3556_v34  ;;  %3589 = vmatpush3.bf16.msra.mxu0 %v3588_v52  ;;  %v1620_v34 = vld [vmem:[%s5356_s12 + $0x18] sm:$0xff]  ;;  %v1651_v52 = vld [vmem:[%s5356_s12 + $0x110] sm:$0xff] }
 0xa8a   : > { %3559 = vmatprep.subr.bf16.mxu1 %v3558_v56  ;;  %3591 = vmatprep.subr.bf16.mxu0 %v3590_v60  ;;  %v3630_v56 = vpack.c.bf16 %v1668_v44, %v1667_v43  ;;  %v3600_v62 = vpack.c.bf16 %v1620_v34, %v1619_v49  ;;  %v3632_v63 = vpack.c.bf16 %v1652_v53, %v1651_v52  ;;  %v1675_v43 = vld [vmem:[%s5356_s12 + $0x1d0] sm:$0xff]  ;;  %v1676_v44 = vld [vmem:[%s5356_s12 + $0x1d8] sm:$0xff]  ;;  %v1645_v52 = vld [vmem:[%s5356_s12 + $0xe0] sm:$0xff] }
 0xa8b   : > { %v3646_v34 = vpack.c.bf16 %v1676_v44, %v1675_v43  ;;  %v1646_v53 = vld [vmem:[%s5356_s12 + $0xe8] sm:$0xff] }
 0xa8d   : > { %3561 = vmatpush3.bf16.msra.mxu1 %v3560_v61  ;;  %3593 = vmatpush3.bf16.msra.mxu0 %v3592_v2  ;;  %v1621_v2 = vld [vmem:[%s5356_s12 + $0x20] sm:$0xff] }
 0xa8e   : > { %3595 = vmatprep.subr.bf16.mxu1 %v3594_v6  ;;  %3627 = vmatprep.subr.bf16.mxu0 %v3626_v8  ;;  %v1653_v6 = vld [vmem:[%s5356_s12 + $0x120] sm:$0xff]  ;;  %v1639_v8 = vld [vmem:[%s5356_s12 + $0xb0] sm:$0xff] }
 0xb3b   : > { %v4568_v11 = vpop.f32.mrb[12].mxu1  ;;  %v4570_v9 = vpop.f32.mrb[8].mxu0 }
 0xb3c   : > { %v1539_v10 = vpop.f32.mrb[13].mxu1  ;;  %v1610_v12 = vpop.f32.mrb[9].mxu0 }
 0xb3d   : > { %v1540_v38 = vadd.f32 %v1539_v10, %v1455_v23  ;;  %v1611_v39 = vadd.f32 %v1610_v12, %v1463_v41  ;;  %v1640_v10 = vld [vmem:[%s5356_s12 + $0xb8] sm:$0xff]  ;;  %v1671_v12 = vld [vmem:[%s5356_s12 + $0x1b0] sm:$0xff] }
 0xb3e   : > { %v3606_v23 = vpack.c.bf16 %v1640_v10, %v1639_v8  ;;  %v3638_v41 = vpack.c.bf16 %v1672_v13, %v1671_v12  ;;  %v1631_v10 = vld [vmem:[%s5356_s12 + $0x70] sm:$0xff]  ;;  %v1632_v12 = vld [vmem:[%s5356_s12 + $0x78] sm:$0xff] }
 0xb3f   : > { %v1614_v60 = vmax.f32 %v1540_v38, 0.0  ;;  %v1616_v61 = vmax.f32 %v1611_v39, 0.0  ;;  %v1658_v38 = vld [vmem:[%s5356_s12 + $0x148] sm:$0xff]  ;;  %v1643_v39 = vld [vmem:[%s5356_s12 + $0xd0] sm:$0xff] }
 0xb40   : > { %v3614_v49 = vpack.c.bf16 %v1644_v40, %v1643_v39  ;;  %v1663_v13 = vld [vmem:[%s5356_s12 + $0x170] sm:$0xff]  ;;  %v2217_v40 = vld [vmem:[%s5354_s10 + $0x140] sm:$0xff] }
 0xb43   : > { %v1785_v24 = vpop.f32.mrb[14].mxu1  ;;  %v1856_v25 = vpop.f32.mrb[10].mxu0 }
 0xb44   : > { %v1786_v27 = vadd.f32 %v1785_v24, %v1702_v19  ;;  %v1857_v28 = vadd.f32 %v1856_v25, %v1710_v21  ;;  %v1787_v29 = vpop.f32.mrb[15].mxu1  ;;  %v1858_v30 = vpop.f32.mrb[11].mxu0  ;;  %v3604_v19 = vpack.c.bf16 %v1622_v3, %v1621_v2  ;;  %v3636_v21 = vpack.c.bf16 %v1654_v7, %v1653_v6  ;;  %v1655_v24 = vld [vmem:[%s5356_s12 + $0x130] sm:$0xff]  ;;  %v1656_v25 = vld [vmem:[%s5356_s12 + $0x138] sm:$0xff] }
 0xb45   : > { %v1788_v35 = vadd.f32 %v1787_v29, %v1706_v1  ;;  %v1859_v36 = vadd.f32 %v1858_v30, %v1714_v22  ;;  %v1623_v1 = vld [vmem:[%s5356_s12 + $0x30] sm:$0xff]  ;;  %v1624_v22 = vld [vmem:[%s5356_s12 + $0x38] sm:$0xff]  ;;  %v1674_v29 = vld [vmem:[%s5356_s12 + $0x1c8] sm:$0xff]  ;;  %v3640_v31 = vpack.c.bf16 %v1656_v25, %v1655_v24  ;;  %v1451_v6 = vrot.slane %v4587_v18, %v4167_v42 }
 0xb46   : > { %v1861_v50 = vmax.f32 %v1786_v27, 0.0  ;;  %v1863_v51 = vmax.f32 %v1857_v28, 0.0  ;;  %v1642_v27 = vld [vmem:[%s5356_s12 + $0xc8] sm:$0xff]  ;;  %v1673_v28 = vld [vmem:[%s5356_s12 + $0x1c0] sm:$0xff]  ;;  %v3608_v30 = vpack.c.bf16 %v1624_v22, %v1623_v1  ;;  %v1647_v2 = vld [vmem:[%s5356_s12 + $0xf0] sm:$0xff]  ;;  %v3620_v7 = vpack.c.bf16 %v1630_v59, %v1629_v58 }
 0xb47   : > { %v1862_v45 = vmax.f32 %v1788_v35, 0.0  ;;  %v1864_v46 = vmax.f32 %v1859_v36, 0.0  ;;  %v3610_v35 = vpack.c.bf16 %v1642_v27, %v1641_v26  ;;  %v3642_v36 = vpack.c.bf16 %v1674_v29, %v1673_v28  ;;  %v1648_v3 = vld [vmem:[%s5356_s12 + $0xf8] sm:$0xff]  ;;  %v2209_v28 = vld [vmem:[%s5354_s10 + $0x40] sm:$0xff] }
 0xb48   : > { %v1664_v22 = vld [vmem:[%s5356_s12 + $0x178] sm:$0xff]  ;;  %v3624_v25 = vpack.c.bf16 %v1632_v12, %v1631_v10  ;;  %v2213_v29 = vld [vmem:[%s5354_s10 + $0xc0] sm:$0xff]  ;;  %v2427_v10 = vld [vmem:[%s5356_s12 + $0x510] sm:$0xff] }
 0xb49   : > { %1993 = vmatprep.mubr.f32.mxu1 %v1862_v45  ;;  %2063 = vmatprep.mubr.f32.mxu0 %v1864_v46  ;;  %v3612_v45 = vpack.c.bf16 %v1626_v33, %v1625_v32  ;;  %v3644_v46 = vpack.c.bf16 %v1658_v38, %v1657_v37  ;;  %v2216_v24 = vld [vmem:[%s5354_s10 + $0xd8] sm:$0xff]  ;;  %v3656_v26 = vpack.c.bf16 %v1664_v22, %v1663_v13  ;;  %v2211_v33 = vld [vmem:[%s5354_s10 + $0x50] sm:$0xff] }
 0xb4a   : > { %1994 = vmatmul.mubr.f32.vlgmr.msra.gmra.mrb[16].mxu1 %v1861_v50  ;;  %2064 = vmatmul.mubr.f32.vlgmr.msra.gmra.mrb[12].mxu0 %v1863_v51  ;;  %v1659_v50 = vld [vmem:[%s5356_s12 + $0x150] sm:$0xff]  ;;  %v1660_v51 = vld [vmem:[%s5356_s12 + $0x158] sm:$0xff]  ;;  %v3660_v38 = vpack.c.bf16 %v2213_v29, %v2209_v28 }
 0xb4b   : > { %3597 = vmatpush3.bf16.msra.mxu1 %v3596_v47  ;;  %3629 = vmatpush3.bf16.msra.mxu0 %v3628_v48  ;;  %v1627_v47 = vld [vmem:[%s5356_s12 + $0x50] sm:$0xff]  ;;  %v1628_v48 = vld [vmem:[%s5356_s12 + $0x58] sm:$0xff]  ;;  %v3648_v57 = vpack.c.bf16 %v1660_v51, %v1659_v50  ;;  %v2409_v51 = vld [vmem:[%s5356_s12 + $0x480] sm:$0xff] }
 0xb4c   : > { %2133 = vmatprep.mubr.f32.mxu1 %v1614_v60  ;;  %2203 = vmatprep.mubr.f32.mxu0 %v1616_v61  ;;  %v3618_v60 = vpack.c.bf16 %v1646_v53, %v1645_v52  ;;  %v2224_v37 = vld [vmem:[%s5354_s10 + $0x1d8] sm:$0xff]  ;;  %v2410_v52 = vld [vmem:[%s5356_s12 + $0x488] sm:$0xff]  ;;  %v2441_v53 = vld [vmem:[%s5356_s12 + $0x580] sm:$0xff] }
 0xb4d   : > { %3599 = vmatprep.subr.bf16.mxu1 %v3598_v55  ;;  %3631 = vmatprep.subr.bf16.mxu0 %v3630_v56  ;;  %v1678_v55 = vld [vmem:[%s5356_s12 + $0x1e8] sm:$0xff]  ;;  %v3616_v56 = vpack.c.bf16 %v1628_v48, %v1627_v47  ;;  %v2221_v47 = vld [vmem:[%s5354_s10 + $0x1c0] sm:$0xff]  ;;  %v2219_v48 = vld [vmem:[%s5354_s10 + $0x150] sm:$0xff] }
 0xb4e   : > { %v3650_v61 = vpack.c.bf16 %v1678_v55, %v1677_v54  ;;  %v3674_v54 = vpack.c.bf16 %v2410_v52, %v2409_v51  ;;  %v2442_v55 = vld [vmem:[%s5356_s12 + $0x588] sm:$0xff]  ;;  %v2428_v13 = vld [vmem:[%s5356_s12 + $0x518] sm:$0xff]  ;;  %v2415_v29 = vld [vmem:[%s5356_s12 + $0x4b0] sm:$0xff] }
 0xb4f   : > { %3601 = vmatpush3.bf16.msra.mxu1 %v3600_v62  ;;  %3633 = vmatpush3.bf16.msra.mxu0 %v3632_v63  ;;  %v1661_v62 = vld [vmem:[%s5356_s12 + $0x160] sm:$0xff]  ;;  %v1662_v63 = vld [vmem:[%s5356_s12 + $0x168] sm:$0xff]  ;;  %v3706_v58 = vpack.c.bf16 %v2442_v55, %v2441_v53  ;;  %v2420_v55 = vld [vmem:[%s5356_s12 + $0x4d8] sm:$0xff] }
 0xb50   : > { %3603 = vmatprep.subr.bf16.mxu1 %v3602_v4  ;;  %3635 = vmatprep.subr.bf16.mxu0 %v3634_v5  ;;  %v1679_v4 = vld [vmem:[%s5356_s12 + $0x1f0] sm:$0xff]  ;;  %v1680_v5 = vld [vmem:[%s5356_s12 + $0x1f8] sm:$0xff]  ;;  %v3652_v8 = vpack.c.bf16 %v1662_v63, %v1661_v62  ;;  %v2434_v51 = vld [vmem:[%s5356_s12 + $0x548] sm:$0xff] }
 0xb51   : > { %v3654_v1 = vpack.c.bf16 %v1680_v5, %v1679_v4  ;;  %v2411_v62 = vld [vmem:[%s5356_s12 + $0x490] sm:$0xff]  ;;  %v2444_v4 = vld [vmem:[%s5356_s12 + $0x598] sm:$0xff] }
 0xb53   : > { %3605 = vmatpush3.bf16.msra.mxu1 %v3604_v19  ;;  %3637 = vmatpush3.bf16.msra.mxu0 %v3636_v21  ;;  %v1459_v19 = vrot.slane %v4587_v18, %v4576_v14  ;;  %v3622_v21 = vpack.c.bf16 %v1648_v3, %v1647_v2  ;;  %v2212_v18 = vld [vmem:[%s5354_s10 + $0x58] sm:$0xff]  ;;  %v2443_v3 = vld [vmem:[%s5356_s12 + $0x590] sm:$0xff] }
 0xb54   : > { %3607 = vmatprep.subr.bf16.mxu1 %v3606_v23  ;;  %3639 = vmatprep.subr.bf16.mxu0 %v3638_v41  ;;  %v2210_v23 = vld [vmem:[%s5354_s10 + $0x48] sm:$0xff]  ;;  %v3666_v32 = vpack.c.bf16 %v2216_v24, %v2212_v18  ;;  %v2412_v2 = vld [vmem:[%s5356_s12 + $0x498] sm:$0xff]  ;;  %v2397_v18 = vld [vmem:[%s5356_s12 + $0x420] sm:$0xff] }
 0xb55   : > { %v2214_v41 = vld [vmem:[%s5354_s10 + $0xc8] sm:$0xff]  ;;  %v3678_v5 = vpack.c.bf16 %v2412_v2, %v2411_v62  ;;  %v2436_v2 = vld [vmem:[%s5356_s12 + $0x558] sm:$0xff] }
 0xb56   : > { %v3658_v27 = vpack.c.bf16 %v2214_v41, %v2210_v23  ;;  %v2445_v23 = vld [vmem:[%s5356_s12 + $0x5a0] sm:$0xff]  ;;  %v2446_v41 = vld [vmem:[%s5356_s12 + $0x5a8] sm:$0xff] }
 0xb57   : > { %3609 = vmatpush3.bf16.msra.mxu1 %v3608_v30  ;;  %3641 = vmatpush3.bf16.msra.mxu0 %v3640_v31  ;;  %v1538_v30 = vadd.f32 %v4568_v11, %v1451_v6  ;;  %v1609_v31 = vadd.f32 %v4570_v9, %v1459_v19  ;;  %v2222_v11 = vld [vmem:[%s5354_s10 + $0x1c8] sm:$0xff]  ;;  %v2220_v9 = vld [vmem:[%s5354_s10 + $0x158] sm:$0xff]  ;;  %v3710_v6 = vpack.c.bf16 %v2444_v4, %v2443_v3  ;;  %v2413_v19 = vld [vmem:[%s5356_s12 + $0x4a0] sm:$0xff] }
 0xb58   : > { %3611 = vmatprep.subr.bf16.mxu1 %v3610_v35  ;;  %3643 = vmatprep.subr.bf16.mxu0 %v3642_v36  ;;  %v2215_v35 = vld [vmem:[%s5354_s10 + $0xd0] sm:$0xff]  ;;  %v2218_v36 = vld [vmem:[%s5354_s10 + $0x148] sm:$0xff]  ;;  %v3714_v24 = vpack.c.bf16 %v2446_v41, %v2445_v23  ;;  %v2421_v4 = vld [vmem:[%s5356_s12 + $0x4e0] sm:$0xff] }
 0xb59   : > { %v3668_v39 = vpack.c.bf16 %v2215_v35, %v2211_v33  ;;  %v1613_v43 = vmax.f32 %v1538_v30, 0.0  ;;  %v1615_v44 = vmax.f32 %v1609_v31, 0.0  ;;  %v2416_v30 = vld [vmem:[%s5356_s12 + $0x4b8] sm:$0xff]  ;;  %v2447_v31 = vld [vmem:[%s5356_s12 + $0x5b0] sm:$0xff] }
 0xb5a   : > { %v3686_v33 = vpack.c.bf16 %v2416_v30, %v2415_v29  ;;  %v2448_v35 = vld [vmem:[%s5356_s12 + $0x5b8] sm:$0xff]  ;;  %v2423_v23 = vld [vmem:[%s5356_s12 + $0x4f0] sm:$0xff] }
 0xb5b   : > { %3613 = vmatpush3.bf16.msra.mxu1 %v3612_v45  ;;  %3645 = vmatpush3.bf16.msra.mxu0 %v3644_v46  ;;  %v3662_v45 = vpack.c.bf16 %v2222_v11, %v2218_v36  ;;  %v3670_v46 = vpack.c.bf16 %v2224_v37, %v2220_v9  ;;  %v2399_v36 = vld [vmem:[%s5356_s12 + $0x430] sm:$0xff]  ;;  %v2400_v11 = vld [vmem:[%s5356_s12 + $0x438] sm:$0xff]  ;;  %v3718_v9 = vpack.c.bf16 %v2448_v35, %v2447_v31  ;;  %v2603_v35 = vld [vmem:[%s5354_s10 + $0xe8] sm:$0xff] }
 0xb5c   : > { %3615 = vmatprep.subr.bf16.mxu1 %v3614_v49  ;;  %3647 = vmatprep.subr.bf16.mxu0 %v3646_v34  ;;  %v2223_v49 = vld [vmem:[%s5354_s10 + $0x1d0] sm:$0xff]  ;;  %v3664_v34 = vpack.c.bf16 %v2221_v47, %v2217_v40  ;;  %v2418_v40 = vld [vmem:[%s5356_s12 + $0x4c8] sm:$0xff]  ;;  %v2424_v41 = vld [vmem:[%s5356_s12 + $0x4f8] sm:$0xff] }
 0xb5d   : > { %v3672_v50 = vpack.c.bf16 %v2223_v49, %v2219_v48  ;;  %v2431_v37 = vld [vmem:[%s5356_s12 + $0x530] sm:$0xff]  ;;  %v2401_v48 = vld [vmem:[%s5356_s12 + $0x440] sm:$0xff]  ;;  %v2402_v49 = vld [vmem:[%s5356_s12 + $0x448] sm:$0xff] }
 0xb5e   : > { %v3692_v52 = vpack.c.bf16 %v2402_v49, %v2401_v48  ;;  %v2439_v30 = vld [vmem:[%s5356_s12 + $0x570] sm:$0xff]  ;;  %v2440_v31 = vld [vmem:[%s5356_s12 + $0x578] sm:$0xff] }
 0xb5f   : > { %3617 = vmatpush3.bf16.msra.mxu1 %v3616_v56  ;;  %3649 = vmatpush3.bf16.msra.mxu0 %v3648_v57  ;;  %v2393_v56 = vld [vmem:[%s5356_s12 + $0x400] sm:$0xff]  ;;  %v2394_v57 = vld [vmem:[%s5356_s12 + $0x408] sm:$0xff] }
 0xb60   : > { %3619 = vmatprep.subr.bf16.mxu1 %v3618_v60  ;;  %3651 = vmatprep.subr.bf16.mxu0 %v3650_v61  ;;  %v3676_v59 = vpack.c.bf16 %v2394_v57, %v2393_v56  ;;  %v2425_v60 = vld [vmem:[%s5356_s12 + $0x500] sm:$0xff]  ;;  %v2426_v61 = vld [vmem:[%s5356_s12 + $0x508] sm:$0xff]  ;;  %v2451_v56 = vld [vmem:[%s5356_s12 + $0x5d0] sm:$0xff] }
 0xb61   : > { %v3708_v63 = vpack.c.bf16 %v2426_v61, %v2425_v60  ;;  %v2404_v60 = vld [vmem:[%s5356_s12 + $0x458] sm:$0xff] }
 0xb63   : > { %3621 = vmatpush3.bf16.msra.mxu1 %v3620_v7  ;;  %3653 = vmatpush3.bf16.msra.mxu0 %v3652_v8  ;;  %v2395_v7 = vld [vmem:[%s5356_s12 + $0x410] sm:$0xff]  ;;  %v2396_v8 = vld [vmem:[%s5356_s12 + $0x418] sm:$0xff] }
 0xb64   : > { %3623 = vmatprep.subr.bf16.mxu1 %v3622_v21  ;;  %3655 = vmatprep.subr.bf16.mxu0 %v3654_v1  ;;  %v3680_v12 = vpack.c.bf16 %v2396_v8, %v2395_v7  ;;  %v2414_v21 = vld [vmem:[%s5356_s12 + $0x4a8] sm:$0xff]  ;;  %v3712_v1 = vpack.c.bf16 %v2428_v13, %v2427_v10  ;;  %v2405_v10 = vld [vmem:[%s5356_s12 + $0x460] sm:$0xff] }
 0xb65   : > { %v3682_v22 = vpack.c.bf16 %v2414_v21, %v2413_v19  ;;  %v2454_v8 = vld [vmem:[%s5356_s12 + $0x5e8] sm:$0xff]  ;;  %v2437_v21 = vld [vmem:[%s5356_s12 + $0x560] sm:$0xff] }
 0xb67   : > { %3625 = vmatpush3.bf16.msra.mxu1 %v3624_v25  ;;  %3657 = vmatpush3.bf16.msra.mxu0 %v3656_v26  ;;  %v2398_v25 = vld [vmem:[%s5356_s12 + $0x428] sm:$0xff]  ;;  %v2429_v26 = vld [vmem:[%s5356_s12 + $0x520] sm:$0xff] }
 0xb68   : > { %3659 = vmatprep.subr.bf16.mxu1 %v3658_v27  ;;  %3667 = vmatprep.subr.bf16.mxu0 %v3666_v32  ;;  %v2430_v27 = vld [vmem:[%s5356_s12 + $0x528] sm:$0xff]  ;;  %v3684_v28 = vpack.c.bf16 %v2398_v25, %v2397_v18  ;;  %v2455_v18 = vld [vmem:[%s5356_s12 + $0x5f0] sm:$0xff]  ;;  %v2456_v25 = vld [vmem:[%s5356_s12 + $0x5f8] sm:$0xff] }
 0xb69   : > { %v3716_v32 = vpack.c.bf16 %v2430_v27, %v2429_v26  ;;  %v2407_v26 = vld [vmem:[%s5356_s12 + $0x470] sm:$0xff]  ;;  %v2408_v27 = vld [vmem:[%s5356_s12 + $0x478] sm:$0xff] }
 0xb6a   : > { %2134 = vmatmul.mubr.f32.vlgmr.msra.gmra.mrb[18].mxu1 %v1613_v43  ;;  %2204 = vmatmul.mubr.f32.vlgmr.msra.gmra.mrb[14].mxu0 %v1615_v44  ;;  %v2449_v43 = vld [vmem:[%s5356_s12 + $0x5c0] sm:$0xff]  ;;  %v2450_v44 = vld [vmem:[%s5356_s12 + $0x5c8] sm:$0xff]  ;;  %v3704_v29 = vpack.c.bf16 %v2408_v27, %v2407_v26 }
 0xb6b   : > { %3661 = vmatpush1.bf16.msra.mxu1 %v3660_v38  ;;  %3669 = vmatpush1.bf16.msra.mxu0 %v3668_v39  ;;  %v2432_v38 = vld [vmem:[%s5356_s12 + $0x538] sm:$0xff]  ;;  %v2417_v39 = vld [vmem:[%s5356_s12 + $0x4c0] sm:$0xff] }
 0xb6c   : > { %3663 = vmatprep.subr.bf16.mxu1 %v3662_v45  ;;  %3671 = vmatprep.subr.bf16.mxu0 %v3670_v46  ;;  %v3688_v45 = vpack.c.bf16 %v2400_v11, %v2399_v36  ;;  %v3720_v46 = vpack.c.bf16 %v2432_v38, %v2431_v37  ;;  %v3690_v47 = vpack.c.bf16 %v2418_v40, %v2417_v39  ;;  %v2601_v36 = vld [vmem:[%s5354_s10 + $0x78] sm:$0xff] }
 0xb6d   : > { %2311 = vmatprep.mubr.f32.mxu1 %v3962_v0  ;;  %2382 = vmatprep.mubr.f32.mxu0 %v3962_v0 }
 0xb6f   : > { %3665 = vmatpush1.bf16.msra.mxu1 %v3664_v34  ;;  %3673 = vmatpush1.bf16.msra.mxu0 %v3672_v50  ;;  %v3722_v34 = vpack.c.bf16 %v2450_v44, %v2449_v43  ;;  %v2433_v50 = vld [vmem:[%s5356_s12 + $0x540] sm:$0xff] }
 0xb70   : > { %3675 = vmatprep.subr.bf16.mxu1 %v3674_v54  ;;  %3707 = vmatprep.subr.bf16.mxu0 %v3706_v58  ;;  %v3724_v53 = vpack.c.bf16 %v2434_v51, %v2433_v50  ;;  %v2419_v54 = vld [vmem:[%s5356_s12 + $0x4d0] sm:$0xff]  ;;  %v2452_v58 = vld [vmem:[%s5356_s12 + $0x5d8] sm:$0xff] }
 0xb71   : > { %v3694_v57 = vpack.c.bf16 %v2420_v55, %v2419_v54  ;;  %v3726_v61 = vpack.c.bf16 %v2452_v58, %v2451_v56 }
 0xb72   : > { %3109 = vmatmul.mubr.msk.f32.vlgmr.msra.gmra.mrb[20].mxu1 %vm480_vm0, %v4346_v20  ;;  %3110 = vmatmul.mubr.msk.f32.vlgmr.msra.gmra.mrb[16].mxu0 %vm480_vm0, %v4346_v20 }
 0xb73   : > { %3677 = vmatpush3.bf16.msra.mxu1 %v3676_v59  ;;  %3709 = vmatpush3.bf16.msra.mxu0 %v3708_v63  ;;  %v2403_v59 = vld [vmem:[%s5356_s12 + $0x450] sm:$0xff] }
 0xb74   : > { %3679 = vmatprep.subr.bf16.mxu1 %v3678_v5  ;;  %3711 = vmatprep.subr.bf16.mxu0 %v3710_v6  ;;  %v3696_v62 = vpack.c.bf16 %v2404_v60, %v2403_v59  ;;  %v2435_v63 = vld [vmem:[%s5356_s12 + $0x550] sm:$0xff]  ;;  %v2422_v5 = vld [vmem:[%s5356_s12 + $0x4e8] sm:$0xff]  ;;  %v2453_v6 = vld [vmem:[%s5356_s12 + $0x5e0] sm:$0xff] }
 0xb75   : > { %v3728_v3 = vpack.c.bf16 %v2436_v2, %v2435_v63  ;;  %v3698_v7 = vpack.c.bf16 %v2422_v5, %v2421_v4  ;;  %v3730_v13 = vpack.c.bf16 %v2454_v8, %v2453_v6  ;;  %v2600_v5 = vld [vmem:[%s5354_s10 + $0x70] sm:$0xff] }
 0xb76   : > { %v2604_v6 = vld [vmem:[%s5354_s10 + $0xf0] sm:$0xff] }
 0xb77   : > { %3681 = vmatpush3.bf16.msra.mxu1 %v3680_v12  ;;  %3713 = vmatpush3.bf16.msra.mxu0 %v3712_v1  ;;  %v2406_v12 = vld [vmem:[%s5356_s12 + $0x468] sm:$0xff] }
 0xb78   : > { %3683 = vmatprep.subr.bf16.mxu1 %v3682_v22  ;;  %3715 = vmatprep.subr.bf16.mxu0 %v3714_v24  ;;  %v3700_v19 = vpack.c.bf16 %v2406_v12, %v2405_v10  ;;  %v2438_v1 = vld [vmem:[%s5356_s12 + $0x568] sm:$0xff]  ;;  %v3702_v24 = vpack.c.bf16 %v2424_v41, %v2423_v23  ;;  %v3748_v23 = vpack.c.bf16 %v2604_v6, %v2600_v5  ;;  %v2606_v41 = vld [vmem:[%s5354_s10 + $0x160] sm:$0xff]  ;;  %v2836_v5 = vld [vmem:[%s5356_s12 + $0x7b0] sm:$0xff] }
 0xb79   : > { %v3732_v22 = vpack.c.bf16 %v2438_v1, %v2437_v21  ;;  %v2611_v12 = vld [vmem:[%s5354_s10 + $0x1e8] sm:$0xff]  ;;  %v2837_v6 = vld [vmem:[%s5356_s12 + $0x7b8] sm:$0xff] }
 0xb7b   : > { %3685 = vmatpush3.bf16.msra.mxu1 %v3684_v28  ;;  %3717 = vmatpush3.bf16.msra.mxu0 %v3716_v32  ;;  %v3734_v28 = vpack.c.bf16 %v2456_v25, %v2455_v18  ;;  %v3736_v32 = vpack.c.bf16 %v2440_v31, %v2439_v30  ;;  %v2610_v18 = vld [vmem:[%s5354_s10 + $0x1e0] sm:$0xff]  ;;  %v2799_v31 = vld [vmem:[%s5356_s12 + $0x688] sm:$0xff] }
 0xb7c   : > { %3687 = vmatprep.subr.bf16.mxu1 %v3686_v33  ;;  %3719 = vmatprep.subr.bf16.mxu0 %v3718_v9  ;;  %v2599_v33 = vld [vmem:[%s5354_s10 + $0x68] sm:$0xff]  ;;  %v2605_v9 = vld [vmem:[%s5354_s10 + $0xf8] sm:$0xff]  ;;  %v2798_v30 = vld [vmem:[%s5356_s12 + $0x680] sm:$0xff] }
 0xb7d   : > { %v3738_v11 = vpack.c.bf16 %v2603_v35, %v2599_v33  ;;  %v3746_v37 = vpack.c.bf16 %v2605_v9, %v2601_v36  ;;  %v2831_v33 = vld [vmem:[%s5356_s12 + $0x788] sm:$0xff]  ;;  %v3744_v35 = vpack.c.bf16 %v2610_v18, %v2606_v41  ;;  %v2838_v41 = vld [vmem:[%s5356_s12 + $0x7c0] sm:$0xff] }
 0xb7e   : > { %v2783_v9 = vld [vmem:[%s5356_s12 + $0x608] sm:$0xff] }
 0xb7f   : > { %3689 = vmatpush3.bf16.msra.mxu1 %v3688_v45  ;;  %3721 = vmatpush3.bf16.msra.mxu0 %v3720_v46  ;;  %v2839_v18 = vld [vmem:[%s5356_s12 + $0x7c8] sm:$0xff] }
 0xb80   : > { %3691 = vmatprep.subr.bf16.mxu1 %v3690_v47  ;;  %3723 = vmatprep.subr.bf16.mxu0 %v3722_v34 }
 0xb83   : > { %3693 = vmatpush3.bf16.msra.mxu1 %v3692_v52  ;;  %3725 = vmatpush3.bf16.msra.mxu0 %v3724_v53  ;;  %v2225_v52 = vld [vmem:[%s5355_s11 + $0x8] sm:$0xf] }
 0xb84   : > { %3695 = vmatprep.subr.bf16.mxu1 %v3694_v57  ;;  %3727 = vmatprep.subr.bf16.mxu0 %v3726_v61  ;;  %v2230_v54 = vrot.slane %v2225_v52, %v4167_v42  ;;  %v2238_v55 = vrot.slane %v2225_v52, %v4576_v14  ;;  %v2234_v57 = vrot.slane %v2225_v52, %v4579_v16  ;;  %v2598_v61 = vld [vmem:[%s5354_s10 + $0x60] sm:$0xff] }
 0xb85   : > { %v2242_v58 = vrot.slane %v2225_v52, %v4582_v17  ;;  %v2817_v52 = vld [vmem:[%s5356_s12 + $0x718] sm:$0xff] }
 0xb87   : > { %3697 = vmatpush3.bf16.msra.mxu1 %v3696_v62  ;;  %3729 = vmatpush3.bf16.msra.mxu0 %v3728_v3  ;;  %v2602_v62 = vld [vmem:[%s5354_s10 + $0xe0] sm:$0xff] }
 0xb88   : > { %3699 = vmatprep.subr.bf16.mxu1 %v3698_v7  ;;  %3731 = vmatprep.subr.bf16.mxu0 %v3730_v13  ;;  %v2607_v7 = vld [vmem:[%s5354_s10 + $0x168] sm:$0xff]  ;;  %v2609_v13 = vld [vmem:[%s5354_s10 + $0x178] sm:$0xff] }
 0xb89   : > { %v3742_v26 = vpack.c.bf16 %v2611_v12, %v2607_v7  ;;  %v2789_v12 = vld [vmem:[%s5356_s12 + $0x638] sm:$0xff] }
 0xb8b   : > { %3701 = vmatpush3.bf16.msra.mxu1 %v3700_v19  ;;  %3733 = vmatpush3.bf16.msra.mxu0 %v3732_v22  ;;  %v2613_v19 = vld [vmem:[%s5354_s10 + $0x1f8] sm:$0xff]  ;;  %v3740_v22 = vpack.c.bf16 %v2602_v62, %v2598_v61  ;;  %v2787_v61 = vld [vmem:[%s5356_s12 + $0x628] sm:$0xff] }
 0xb8c   : > { %3703 = vmatprep.subr.bf16.mxu1 %v3702_v24  ;;  %3735 = vmatprep.subr.bf16.mxu0 %v3734_v28  ;;  %v3750_v27 = vpack.c.bf16 %v2613_v19, %v2609_v13  ;;  %v2608_v28 = vld [vmem:[%s5354_s10 + $0x170] sm:$0xff]  ;;  %v3798_v19 = vpack.c.bf16 %v2837_v6, %v2836_v5  ;;  %v2829_v5 = vld [vmem:[%s5356_s12 + $0x778] sm:$0xff] }
 0xb8f   : > { %3705 = vmatpush3.bf16.msra.mxu1 %v3704_v29  ;;  %3737 = vmatpush3.bf16.msra.mxu0 %v3736_v32  ;;  %v2612_v29 = vld [vmem:[%s5354_s10 + $0x1f0] sm:$0xff]  ;;  %v2830_v32 = vld [vmem:[%s5356_s12 + $0x780] sm:$0xff] }
 0xb90   : > { %3739 = vmatprep.subr.bf16.mxu1 %v3738_v11  ;;  %3747 = vmatprep.subr.bf16.mxu0 %v3746_v37  ;;  %v3752_v36 = vpack.c.bf16 %v2612_v29, %v2608_v28  ;;  %v2782_v11 = vld [vmem:[%s5356_s12 + $0x600] sm:$0xff]  ;;  %v3754_v37 = vpack.c.bf16 %v2799_v31, %v2798_v30  ;;  %v3802_v28 = vpack.c.bf16 %v2839_v18, %v2838_v41  ;;  %v2791_v29 = vld [vmem:[%s5356_s12 + $0x648] sm:$0xff] }
 0xb91   : > { %v2822_v30 = vld [vmem:[%s5356_s12 + $0x740] sm:$0xff]  ;;  %v2823_v31 = vld [vmem:[%s5356_s12 + $0x748] sm:$0xff] }
 0xc1d   : > { %v3176_v38 = vpop.f32.mrb[16].mxu1  ;;  %v3211_v39 = vpop.f32.mrb[12].mxu0 }
 0xc1e   : > { %v3177_v40 = vpop.f32.mrb[17].mxu1  ;;  %v3212_v43 = vpop.f32.mrb[13].mxu0 }
 0xc1f   : > { %v3178_v44 = vadd.f32 %v3177_v40, %v3176_v38  ;;  %v3213_v45 = vadd.f32 %v3212_v43, %v3211_v39  ;;  %v3786_v38 = vpack.c.bf16 %v2831_v33, %v2830_v32  ;;  %v2814_v39 = vld [vmem:[%s5356_s12 + $0x700] sm:$0xff]  ;;  %v2815_v40 = vld [vmem:[%s5356_s12 + $0x708] sm:$0xff]  ;;  %v2800_v43 = vld [vmem:[%s5356_s12 + $0x690] sm:$0xff]  ;;  %v3804_v33 = vpack.c.bf16 %v2823_v31, %v2822_v30 }
 0xc21   : > { %v2066_v46 = vadd.f32 %v3213_v45, %v3178_v44  ;;  %v2801_v44 = vld [vmem:[%s5356_s12 + $0x698] sm:$0xff]  ;;  %v2832_v45 = vld [vmem:[%s5356_s12 + $0x790] sm:$0xff] }
 0xc3d   : > { %v3246_v47 = vpop.f32.mrb[18].mxu1  ;;  %v3281_v48 = vpop.f32.mrb[14].mxu0 }
 0xc3e   : > { %v3247_v49 = vpop.f32.mrb[19].mxu1  ;;  %v3282_v34 = vpop.f32.mrb[15].mxu0 }
 0xc3f   : > { %v3248_v50 = vadd.f32 %v3247_v49, %v3246_v47  ;;  %v3283_v51 = vadd.f32 %v3282_v34, %v3281_v48  ;;  %v3756_v47 = vpack.c.bf16 %v2783_v9, %v2782_v11  ;;  %v3788_v48 = vpack.c.bf16 %v2815_v40, %v2814_v39  ;;  %v2785_v49 = vld [vmem:[%s5356_s12 + $0x618] sm:$0xff]  ;;  %v2840_v11 = vld [vmem:[%s5356_s12 + $0x7d0] sm:$0xff] }
 0xc40   : > { %v3758_v34 = vpack.c.bf16 %v2801_v44, %v2800_v43  ;;  %v2793_v39 = vld [vmem:[%s5356_s12 + $0x658] sm:$0xff]  ;;  %v2824_v44 = vld [vmem:[%s5356_s12 + $0x750] sm:$0xff] }
 0xc41   : > { %v2136_v53 = vadd.f32 %v3248_v50, %v2066_v46  ;;  %v2833_v46 = vld [vmem:[%s5356_s12 + $0x798] sm:$0xff] }
 0xc42   : > { %v3790_v50 = vpack.c.bf16 %v2833_v46, %v2832_v45  ;;  %v2825_v45 = vld [vmem:[%s5356_s12 + $0x758] sm:$0xff] }
 0xc43   : > { %v5046_v56 = vadd.f32 %v3283_v51, %v2136_v53  ;;  %v2816_v51 = vld [vmem:[%s5356_s12 + $0x710] sm:$0xff]  ;;  %v2802_v53 = vld [vmem:[%s5356_s12 + $0x6a0] sm:$0xff]  ;;  %v3808_v46 = vpack.c.bf16 %v2825_v45, %v2824_v44 }
 0xc45   : > { %v2313_v59 = vpop.f32.mrb[20].mxu1  ;;  %v2384_v60 = vpop.f32.mrb[16].mxu0 }
 0xc46   : > { %v2314_v63 = vadd.f32 %v2313_v59, %v2230_v54  ;;  %v2385_v2 = vadd.f32 %v2384_v60, %v2238_v55  ;;  %v2315_v3 = vpop.f32.mrb[21].mxu1  ;;  %v2386_v4 = vpop.f32.mrb[17].mxu0  ;;  %v2803_v54 = vld [vmem:[%s5356_s12 + $0x6a8] sm:$0xff]  ;;  %v2834_v55 = vld [vmem:[%s5356_s12 + $0x7a0] sm:$0xff]  ;;  %v3792_v59 = vpack.c.bf16 %v2817_v52, %v2816_v51 }
 0xc47   : > { %v2316_v8 = vadd.f32 %v2315_v3, %v2234_v57  ;;  %v2387_v10 = vadd.f32 %v2386_v4, %v2242_v58  ;;  %v2835_v57 = vld [vmem:[%s5356_s12 + $0x7a8] sm:$0xff]  ;;  %v2786_v60 = vld [vmem:[%s5356_s12 + $0x620] sm:$0xff]  ;;  %v3762_v62 = vpack.c.bf16 %v2803_v54, %v2802_v53  ;;  %v2804_v3 = vld [vmem:[%s5356_s12 + $0x6b0] sm:$0xff] }
 0xc48   : > { %v2389_v24 = vmax.f32 %v2314_v63, 0.0  ;;  %v2391_v25 = vmax.f32 %v2385_v2, 0.0  ;;  %v3794_v63 = vpack.c.bf16 %v2835_v57, %v2834_v55  ;;  %v2819_v2 = vld [vmem:[%s5356_s12 + $0x728] sm:$0xff]  ;;  %v2805_v4 = vld [vmem:[%s5356_s12 + $0x6b8] sm:$0xff]  ;;  %v3764_v7 = vpack.c.bf16 %v2787_v61, %v2786_v60  ;;  %v2826_v54 = vld [vmem:[%s5356_s12 + $0x760] sm:$0xff] }
 0xc49   : > { %v2390_v21 = vmax.f32 %v2316_v8, 0.0  ;;  %v2392_v1 = vmax.f32 %v2387_v10, 0.0  ;;  %v2788_v10 = vld [vmem:[%s5356_s12 + $0x630] sm:$0xff]  ;;  %v3766_v13 = vpack.c.bf16 %v2805_v4, %v2804_v3  ;;  %v2795_v51 = vld [vmem:[%s5356_s12 + $0x668] sm:$0xff] }
 0xc4a   : > { %v2827_v55 = vld [vmem:[%s5356_s12 + $0x768] sm:$0xff]  ;;  %v2844_v60 = vld [vmem:[%s5356_s12 + $0x7f0] sm:$0xff] }
 0xc4b   : > { %2521 = vmatprep.mubr.f32.mxu1 %v2390_v21  ;;  %2591 = vmatprep.mubr.f32.mxu0 %v2392_v1  ;;  %v2820_v21 = vld [vmem:[%s5356_s12 + $0x730] sm:$0xff]  ;;  %v2821_v1 = vld [vmem:[%s5356_s12 + $0x738] sm:$0xff]  ;;  %v3812_v57 = vpack.c.bf16 %v2827_v55, %v2826_v54 }
 0xc4c   : > { %2522 = vmatmul.mubr.f32.vlgmr.msra.gmra.mrb[22].mxu1 %v2389_v24  ;;  %2592 = vmatmul.mubr.f32.vlgmr.msra.gmra.mrb[18].mxu0 %v2391_v25  ;;  %v3768_v24 = vpack.c.bf16 %v2789_v12, %v2788_v10  ;;  %v3800_v25 = vpack.c.bf16 %v2821_v1, %v2820_v21  ;;  %v2828_v4 = vld [vmem:[%s5356_s12 + $0x770] sm:$0xff]  ;;  %v2614_v21 = vld [vmem:[%s5355_s11 + $0xc] sm:$0xf] }
 0xc4d   : > { %3741 = vmatpush1.bf16.msra.mxu1 %v3740_v22  ;;  %3749 = vmatpush1.bf16.msra.mxu0 %v3748_v23  ;;  %v2806_v22 = vld [vmem:[%s5356_s12 + $0x6c0] sm:$0xff]  ;;  %v2807_v23 = vld [vmem:[%s5356_s12 + $0x6c8] sm:$0xff]  ;;  %v3816_v6 = vpack.c.bf16 %v2829_v5, %v2828_v4  ;;  %v2623_v18 = vrot.slane %v2614_v21, %v4579_v16 }
 0xc4e   : > { %3743 = vmatprep.subr.bf16.mxu1 %v3742_v26  ;;  %3751 = vmatprep.subr.bf16.mxu0 %v3750_v27  ;;  %v2790_v26 = vld [vmem:[%s5356_s12 + $0x640] sm:$0xff]  ;;  %v3770_v27 = vpack.c.bf16 %v2807_v23, %v2806_v22  ;;  %v2619_v22 = vrot.slane %v2614_v21, %v4167_v42  ;;  %v2627_v23 = vrot.slane %v2614_v21, %v4576_v14 }
 0xc4f   : > { %2700 = vmatprep.mubr.f32.mxu1 %v3962_v0  ;;  %2771 = vmatprep.mubr.f32.mxu0 %v3962_v0  ;;  %v2784_v0 = vld [vmem:[%s5356_s12 + $0x610] sm:$0xff]  ;;  %v3772_v32 = vpack.c.bf16 %v2791_v29, %v2790_v26 }
 0xc50   : > { %v3760_v58 = vpack.c.bf16 %v2785_v49, %v2784_v0  ;;  %v2842_v0 = vld [vmem:[%s5356_s12 + $0x7e0] sm:$0xff] }
 0xc51   : > { %3745 = vmatpush1.bf16.msra.mxu1 %v3744_v35  ;;  %3753 = vmatpush1.bf16.msra.mxu0 %v3752_v36  ;;  %v2808_v35 = vld [vmem:[%s5356_s12 + $0x6d0] sm:$0xff]  ;;  %v2809_v36 = vld [vmem:[%s5356_s12 + $0x6d8] sm:$0xff] }
 0xc52   : > { %3755 = vmatprep.subr.bf16.mxu1 %v3754_v37  ;;  %3787 = vmatprep.subr.bf16.mxu0 %v3786_v38  ;;  %v3774_v9 = vpack.c.bf16 %v2809_v36, %v2808_v35  ;;  %v2841_v37 = vld [vmem:[%s5356_s12 + $0x7d8] sm:$0xff]  ;;  %v2792_v38 = vld [vmem:[%s5356_s12 + $0x650] sm:$0xff] }
 0xc53   : > { %v3806_v40 = vpack.c.bf16 %v2841_v37, %v2840_v11  ;;  %v3776_v43 = vpack.c.bf16 %v2793_v39, %v2792_v38  ;;  %v3113_v38 = vld [vmem:[%s5357_s13] ss:$0 sm:$0xff] }
 0xc54   : > { %3111 = vmatmul.mubr.msk.f32.vlgmr.msra.gmra.mrb[24].mxu1 %vm480_vm0, %v4346_v20  ;;  %3112 = vmatmul.mubr.msk.f32.vlgmr.msra.gmra.mrb[20].mxu0 %vm480_vm0, %v4346_v20  ;;  %v2818_v20 = vld [vmem:[%s5356_s12 + $0x720] sm:$0xff] }
 0xc55   : > { %3757 = vmatpush3.bf16.msra.mxu1 %v3756_v47  ;;  %3789 = vmatpush3.bf16.msra.mxu0 %v3788_v48  ;;  %v3796_v8 = vpack.c.bf16 %v2819_v2, %v2818_v20  ;;  %v2810_v47 = vld [vmem:[%s5356_s12 + $0x6e0] sm:$0xff]  ;;  %v2811_v48 = vld [vmem:[%s5356_s12 + $0x6e8] sm:$0xff]  ;;  %v2797_v20 = vld [vmem:[%s5356_s12 + $0x678] sm:$0xff] }
 0xc56   : > { %3759 = vmatprep.subr.bf16.mxu1 %v3758_v34  ;;  %3791 = vmatprep.subr.bf16.mxu0 %v3790_v50  ;;  %v3778_v49 = vpack.c.bf16 %v2811_v48, %v2810_v47  ;;  %v2843_v34 = vld [vmem:[%s5356_s12 + $0x7e8] sm:$0xff]  ;;  %v2794_v50 = vld [vmem:[%s5356_s12 + $0x660] sm:$0xff] }
 0xc57   : > { %v3810_v52 = vpack.c.bf16 %v2843_v34, %v2842_v0  ;;  %v3780_v53 = vpack.c.bf16 %v2795_v51, %v2794_v50 }
 0xc59   : > { %3761 = vmatpush3.bf16.msra.mxu1 %v3760_v58  ;;  %3793 = vmatpush3.bf16.msra.mxu0 %v3792_v59  ;;  %v2812_v58 = vld [vmem:[%s5356_s12 + $0x6f0] sm:$0xff]  ;;  %v2813_v59 = vld [vmem:[%s5356_s12 + $0x6f8] sm:$0xff] }
 0xc5a   : > { %3763 = vmatprep.subr.bf16.mxu1 %v3762_v62  ;;  %3795 = vmatprep.subr.bf16.mxu0 %v3794_v63  ;;  %v3782_v61 = vpack.c.bf16 %v2813_v59, %v2812_v58  ;;  %v2845_v62 = vld [vmem:[%s5356_s12 + $0x7f8] sm:$0xff]  ;;  %v2796_v63 = vld [vmem:[%s5356_s12 + $0x670] sm:$0xff] }
 0xc5b   : > { %v3814_v2 = vpack.c.bf16 %v2845_v62, %v2844_v60  ;;  %v3784_v3 = vpack.c.bf16 %v2797_v20, %v2796_v63 }
 0xc5d   : > { %3765 = vmatpush3.bf16.msra.mxu1 %v3764_v7  ;;  %3797 = vmatpush3.bf16.msra.mxu0 %v3796_v8 }
 0xc5e   : > { %3767 = vmatprep.subr.bf16.mxu1 %v3766_v13  ;;  %3799 = vmatprep.subr.bf16.mxu0 %v3798_v19 }
 0xc61   : > { %3769 = vmatpush3.bf16.msra.mxu1 %v3768_v24  ;;  %3801 = vmatpush3.bf16.msra.mxu0 %v3800_v25  ;;  %v2631_v24 = vrot.slane %v2614_v21, %v4582_v17 }
 0xc62   : > { %3771 = vmatprep.subr.bf16.mxu1 %v3770_v27  ;;  %3803 = vmatprep.subr.bf16.mxu0 %v3802_v28 }
 0xc65   : > { %3773 = vmatpush3.bf16.msra.mxu1 %v3772_v32  ;;  %3805 = vmatpush3.bf16.msra.mxu0 %v3804_v33 }
 0xc66   : > { %3775 = vmatprep.subr.bf16.mxu1 %v3774_v9  ;;  %3807 = vmatprep.subr.bf16.mxu0 %v3806_v40 }
 0xc69   : > { %3777 = vmatpush3.bf16.msra.mxu1 %v3776_v43  ;;  %3809 = vmatpush3.bf16.msra.mxu0 %v3808_v46 }
 0xc6a   : > { %3779 = vmatprep.subr.bf16.mxu1 %v3778_v49  ;;  %3811 = vmatprep.subr.bf16.mxu0 %v3810_v52 }
 0xc6d   : > { %3781 = vmatpush3.bf16.msra.mxu1 %v3780_v53  ;;  %3813 = vmatpush3.bf16.msra.mxu0 %v3812_v57 }
 0xc6e   : > { %3783 = vmatprep.subr.bf16.mxu1 %v3782_v61  ;;  %3815 = vmatprep.subr.bf16.mxu0 %v3814_v2 }
 0xc71   : > { %3785 = vmatpush3.bf16.msra.mxu1 %v3784_v3  ;;  %3817 = vmatpush3.bf16.msra.mxu0 %v3816_v6 }
 0xd1f   : > { %v3316_v7 = vpop.f32.mrb[22].mxu1  ;;  %v3351_v8 = vpop.f32.mrb[18].mxu0 }
 0xd20   : > { %v3317_v10 = vpop.f32.mrb[23].mxu1  ;;  %v3352_v12 = vpop.f32.mrb[19].mxu0 }
 0xd21   : > { %v3318_v13 = vadd.f32 %v3317_v10, %v3316_v7  ;;  %v3353_v19 = vadd.f32 %v3352_v12, %v3351_v8 }
 0xd23   : > { %v2594_v1 = vadd.f32 %v3353_v19, %v3318_v13 }
 0xd25   : > { %v2597_v41 = vadd.f32 %v2594_v1, %v5046_v56 }
 0xd27   : > { %v2702_v25 = vpop.f32.mrb[24].mxu1  ;;  %v2773_v26 = vpop.f32.mrb[20].mxu0 }
 0xd28   : > { %v2703_v27 = vadd.f32 %v2702_v25, %v2619_v22  ;;  %v2774_v28 = vadd.f32 %v2773_v26, %v2627_v23  ;;  %v2704_v29 = vpop.f32.mrb[25].mxu1  ;;  %v2775_v30 = vpop.f32.mrb[21].mxu0 }
 0xd29   : > { %v2705_v31 = vadd.f32 %v2704_v29, %v2623_v18  ;;  %v2776_v32 = vadd.f32 %v2775_v30, %v2631_v24 }
 0xd2a   : > { %v2778_v42 = vmax.f32 %v2703_v27, 0.0  ;;  %v2780_v36 = vmax.f32 %v2774_v28, 0.0 }
 0xd2b   : > { %v2779_v33 = vmax.f32 %v2705_v31, 0.0  ;;  %v2781_v35 = vmax.f32 %v2776_v32, 0.0 }
 0xd2d   : > { %2910 = vmatprep.mubr.f32.mxu1 %v2779_v33  ;;  %2980 = vmatprep.mubr.f32.mxu0 %v2781_v35 }
 0xd2e   : > { %2911 = vmatmul.mubr.f32.vlgmr.msra.gmra.mrb[26].mxu1 %v2778_v42  ;;  %2981 = vmatmul.mubr.f32.vlgmr.msra.gmra.mrb[22].mxu0 %v2780_v36 }
 0xe01   : > { %v3386_v14 = vpop.f32.mrb[26].mxu1  ;;  %v3421_v16 = vpop.f32.mrb[22].mxu0 }
 0xe02   : > { %v3387_v17 = vpop.f32.mrb[27].mxu1  ;;  %v3422_v56 = vpop.f32.mrb[23].mxu0 }
 0xe03   : > { %v3388_v11 = vadd.f32 %v3387_v17, %v3386_v14  ;;  %v3423_v9 = vadd.f32 %v3422_v56, %v3421_v16 }
 0xe05   : > { %v2983_v37 = vadd.f32 %v3423_v9, %v3388_v11 }
 0xe07   : > { %v2986_v39 = vadd.f32 %v2983_v37, %v2597_v41 }
 0xe09   : > { %v2994_v40 = vadd.f32 %v3113_v38, %v2986_v39 }
 0xe0b   : > { %v2995_v43 = vadd.f32 %v2994_v40, %v4239_v15 }
 0xe0d   : > { %2996 = vst.msk [vmem:[%s469_s18] sm:$0xff] %vm480_vm0, %v2995_v43 }
 0xe0e   : > { %3911 = shalt.err (!%p3908_p3)
}
 0xe0f   : > { %s3912_s21 = scalar_lea.hbm %s5301_s1, 128  ;;  %s3916_s18 = scalar_lea.hbm %s5358_s14, 256 }
 0xe10   : > { %p3913_p4 = scmp.ne.s32.totalorder %s5301_s1, %s3912_s21  ;;  %p3917_p9 = scmp.lt.u32.totalorder %s5301_s1, %s5358_s14 }
 0xe11   : > { %p3918_p10 = scmp.lt.u32.totalorder %s3916_s18, %s3912_s21  ;;  %p3920_p12 = scmp.lt.u32.totalorder %s3912_s21, %s5301_s1 }
 0xe12   : > { %p3914_p7 = pnand %p3913_p4, %p4093_p5 }
 0xe13   : > { %p3919_p11 = por %p3918_p10, %p3917_p9 }
 0xe14   : > { %p3915_p8 = pneg %p3914_p7 }
 0xe15   : > { %p3921_p13 = por %p3920_p12, %p3919_p11 }
 0xe17   : > { %p3922_p0 = pnand %p3921_p13, %p3915_p8 }
 0xe19   : > { %3925 = shalt.err (!%p3922_p0)
}
 0xe1a   : > { %3818 = dma.vmem_to_hbm [thread:$0]  (%p4093_p5), %s5303_s0, 128, %s5301_s1, %s2998_s25  }
 0xe1b PF: > { %p3824_p1 = scmp.ge.s32.totalorder %s3960_s16, 2  ;;  %s3023_s2 = sand.u32 1, %s3948_s29  }
 0xe1c   : > { %s3024_s17 = scalar_lea.sflag [#allocation4], %s3023_s2 }
 0xe1d   : > { %p3821_p2 = pnand %p3824_p1, %p4097_p6 }
 0xe1f   : > { %3943 = dma.done.wait (!%p3821_p2), %s3024_s17, 128  }
 0xe20   : > { %3945 = vsyncadd (!%p3821_p2), %s3024_s17, 4294967168  ;;  %s5370_s27 = sld [smem:[#allocation6_spill]]  ;;  %p24_p3 = scmp.ge.s32.totalorder %s4080_s19, 4  }
 0xe21   : > { %s5371_s29 = smov %s3952_s30  ;;  %s5372_s30 = smov %s3956_s15 }
 0xe22   : > { %s5374_s16 = smov %s4080_s19  ;;  %26 = sbr.rel (!%p24_p3) target bundleno = 8 (0x8), region = 114 }
 0xe26   : > { %s5373_s15 = smov %s5370_s27 }
 0xe29   :  { %3029 = vsyncpa [#allocation4], 1 }
 0xe2a   :  { %3031 = vsyncpa [#allocation4 + $0x1], 1 }

</bundles_post_ra>
